<compile_context>
chip_gen: v5e
topology: v5e:2x2
jax: 0.10.0
libtpu: 0.0.40
codegen_flags: <defaults>
</compile_context>

<pallas_src>
import functools

import jax
import jax.numpy as jnp
from jax.experimental import pallas as pl
from jax.experimental.pallas import tpu as pltpu

EPS = 1e-5
LANE = 128
VMEM_LIMIT = 32 * 1024 * 1024


def _round_up(x, m):
    return (x + m - 1) // m * m


# ---------------------------------------------------------------------------
# Pallas kernel 1: fused conv matmul.
#   y   = dot(a, w)                                (bf16 x bf16 -> f32 on MXU)
#   raw = y[:, :128]                               (optional, stored bf16)
#   z   = y * scale + bias [+ res]                 (f32 epilogue)
#   act = relu on the first `relu_cols` lanes only (stored bf16)
# Single K tile, single N tile (128 or 256 lanes), grid = (M tiles,).
# ---------------------------------------------------------------------------
def _fused_mm_kernel(*refs, relu_cols, has_affine, has_res, emit_raw):
    it = iter(refs)
    a_ref = next(it)
    w_ref = next(it)
    sb_ref = next(it) if has_affine else None
    r_ref = next(it) if has_res else None
    o_ref = next(it)
    raw_ref = next(it) if emit_raw else None

    y = jnp.dot(a_ref[...], w_ref[...], preferred_element_type=jnp.float32)
    if emit_raw:
        raw_ref[...] = y[:, :raw_ref.shape[-1]].astype(raw_ref.dtype)

    z = y
    if has_affine:
        sb = sb_ref[...]
        z = z * sb[0:1, :] + sb[1:2, :]
    if has_res:
        z = z + r_ref[...].astype(jnp.float32)

    n = z.shape[-1]
    if relu_cols >= n:
        o_ref[...] = jnp.maximum(z, 0.0).astype(o_ref.dtype)
    elif relu_cols == 0:
        o_ref[...] = z.astype(o_ref.dtype)
    else:
        # conv1+shortcut combined call: relu only on conv1's lanes.
        o_ref[:, :relu_cols] = jnp.maximum(z[:, :relu_cols], 0.0).astype(o_ref.dtype)
        o_ref[:, relu_cols:] = z[:, relu_cols:].astype(o_ref.dtype)


def fused_matmul(a, conv, *, relu_cols, residual=None, res_col=0, emit_raw=False):
    """a: (M, K) bf16 im2col activations.  conv['w']: (K, Np) bf16 packed weights
    (Np = 128 or 256).  conv['sb']: optional (2, Np) f32 [scale; bias].
    residual: optional already lane-padded (Mp, c*128) bf16 slab; res_col selects
    which 128-lane block of it to add."""
    w = conv['w']
    sb = conv['sb']
    M, K = a.shape
    Kr, Np = w.shape
    assert K == Kr, (K, Kr)

    tm = LANE if M >= LANE else _round_up(M, 8)
    Mp = _round_up(M, tm)
    a_p = a.astype(jnp.bfloat16)
    if Mp != M:
        a_p = jnp.pad(a_p, ((0, Mp - M), (0, 0)))

    inputs = [a_p, w]
    in_specs = [pl.BlockSpec((tm, K), lambda i: (i, 0)),
                pl.BlockSpec((K, Np), lambda i: (0, 0))]

    has_affine = sb is not None
    if has_affine:
        inputs.append(sb)
        in_specs.append(pl.BlockSpec((2, Np), lambda i: (0, 0)))

    has_res = residual is not None
    if has_res:
        rM, rC = residual.shape
        assert rM == Mp and rC % LANE == 0 and (res_col + 1) * LANE <= rC
        inputs.append(residual)
        in_specs.append(pl.BlockSpec((tm, LANE), lambda i, _c=res_col: (i, _c)))

    out_shapes = [jax.ShapeDtypeStruct((Mp, Np), jnp.bfloat16)]
    out_specs = [pl.BlockSpec((tm, Np), lambda i: (i, 0))]
    if emit_raw:
        out_shapes.append(jax.ShapeDtypeStruct((Mp, LANE), jnp.bfloat16))
        out_specs.append(pl.BlockSpec((tm, LANE), lambda i: (i, 0)))

    kern = functools.partial(_fused_mm_kernel, relu_cols=relu_cols,
                             has_affine=has_affine, has_res=has_res,
                             emit_raw=emit_raw)
    outs = pl.pallas_call(
        kern,
        out_shape=tuple(out_shapes),
        grid_spec=pltpu.PrefetchScalarGridSpec(
            num_scalar_prefetch=0,
            grid=(Mp // tm,),
            in_specs=in_specs,
            out_specs=out_specs),
        compiler_params=pltpu.CompilerParams(
            dimension_semantics=("parallel",),
            vmem_limit_bytes=VMEM_LIMIT),
    )(*inputs)

    if emit_raw:
        act_p, raw_p = outs
    else:
        act_p = outs[0] if isinstance(outs, (tuple, list)) else outs
        raw_p = None
    return act_p, raw_p


# ---------------------------------------------------------------------------
# Pallas kernel 2: fused head — global avg-pool + (BN1d-folded) Linear + bias.
# ---------------------------------------------------------------------------
def _head_kernel(x_ref, w_ref, b_ref, o_ref):
    pooled = jnp.mean(x_ref[...].astype(jnp.float32), axis=1)   # (Nb, 128)
    y = jnp.dot(pooled.astype(jnp.bfloat16), w_ref[...],
                preferred_element_type=jnp.float32)
    o_ref[...] = y + b_ref[...]


def head_forward(out_slab, N, HW, head):
    # out_slab: (N*HW, 128) lane-padded bf16 slab straight from the last conv.
    x3 = out_slab.reshape(N, HW, LANE)
    Nb = _round_up(max(N, 8), 8)
    if Nb != N:
        x3 = jnp.pad(x3, ((0, Nb - N), (0, 0), (0, 0)))
    out = pl.pallas_call(
        _head_kernel,
        out_shape=jax.ShapeDtypeStruct((Nb, LANE), jnp.float32),
        grid=(1,),
        in_specs=[pl.BlockSpec((Nb, HW, LANE), lambda i: (0, 0, 0)),
                  pl.BlockSpec((LANE, LANE), lambda i: (0, 0)),
                  pl.BlockSpec((1, LANE), lambda i: (0, 0))],
        out_specs=pl.BlockSpec((Nb, LANE), lambda i: (0, 0)),
        compiler_params=pltpu.CompilerParams(vmem_limit_bytes=VMEM_LIMIT),
    )(x3, head['w'], head['b'])
    return out[:N, :head['num_classes']]


# ---------------------------------------------------------------------------
# im2col (XLA glue, bf16) — feeds the fused matmul.  K already rounded to the
# packed weight's K (extra zeros fused into the same concat, no separate pad).
# ---------------------------------------------------------------------------
def _im2col(x_bf16, KH, KW, stride, pad, k_round):
    N, H, W, Cin = x_bf16.shape
    xp = jnp.pad(x_bf16, ((0, 0), (pad, pad), (pad, pad), (0, 0))) if pad else x_bf16
    Ho = (H + 2 * pad - KH) // stride + 1
    Wo = (W + 2 * pad - KW) // stride + 1
    cols = [xp[:, i:i + stride * Ho:stride, j:j + stride * Wo:stride, :]
            for i in range(KH) for j in range(KW)]
    K = KH * KW * Cin
    if k_round > K:
        cols.append(jnp.zeros((N, Ho, Wo, k_round - K), x_bf16.dtype))
    patches = jnp.concatenate(cols, axis=-1)      # (N, Ho, Wo, k_round) bf16
    return patches.reshape(N * Ho * Wo, k_round), (N, Ho, Wo)


def conv_call(x_bf16, conv, *, relu_cols, residual=None, res_col=0, emit_raw=False):
    KH, KW, Cin, Cout = conv['shape']
    a, (N, Ho, Wo) = _im2col(x_bf16, KH, KW, conv['stride'], conv['pad'],
                             conv['w'].shape[0])
    act_p, raw_p = fused_matmul(a, conv, relu_cols=relu_cols, residual=residual,
                                res_col=res_col, emit_raw=emit_raw)
    M = N * Ho * Wo
    act = act_p[:M, :Cout].reshape(N, Ho, Wo, Cout)
    raw = raw_p[:M, :Cout].reshape(N, Ho, Wo, Cout) if raw_p is not None else None
    return act, raw, act_p, (N, Ho, Wo)


def basic_block_forward(x, x_slab, bp):
    """x: NHWC bf16 block input; x_slab: its lane-padded (M,128) bf16 slab.
    Returns (out, out_slab, dims, conv1_raw, conv2_raw)."""
    if bp['combined'] is not None:
        # conv1 + downsample shortcut in ONE call (act lanes 0..127 relu'd,
        # shortcut-BN lanes 128..255 not relu'd).
        act1, raw1, slab1, _ = conv_call(x, bp['combined'], relu_cols=LANE,
                                         emit_raw=True)
        res_slab, res_col = slab1, 1
    else:
        act1, raw1, slab1, _ = conv_call(x, bp['conv1'], relu_cols=LANE,
                                         emit_raw=True)
        res_slab, res_col = x_slab, 0            # identity shortcut, already padded
    act2, raw2, slab2, dims = conv_call(act1, bp['conv2'], relu_cols=LANE,
                                        emit_raw=True, residual=res_slab,
                                        res_col=res_col)
    return act2, slab2, dims, raw1, raw2


# ---------------------------------------------------------------------------
# Parameter init (deterministic, synthetic) + one-time packing.
# ---------------------------------------------------------------------------
class _KeyGen:
    def __init__(self, key):
        self.key = key

    def __call__(self):
        self.key, k = jax.random.split(self.key)
        return k


def _bn_init(c):
    return dict(gamma=jnp.ones((c,), jnp.float32),
                beta=jnp.zeros((c,), jnp.float32),
                mean=jnp.zeros((c,), jnp.float32),
                var=jnp.ones((c,), jnp.float32))


def _bn_affine(bn):
    scale = bn['gamma'] / jnp.sqrt(bn['var'] + EPS)
    bias = bn['beta'] - bn['mean'] * scale
    return scale, bias


def init_resnet_params(key, num_blocks=(1, 1, 1), num_classes=10):
    kg = _KeyGen(key)

    def conv_w(kh, kw, cin, cout):
        return jax.random.normal(kg(), (kh, kw, cin, cout), jnp.float32) * 0.1

    params = {'conv1_w': conv_w(3, 3, 3, 16)}
    in_planes = 16
    for layer_name, planes, stride0, nb in (('layer1', 16, 1, num_blocks[0]),
                                            ('layer2', 32, 2, num_blocks[1]),
                                            ('layer3', 64, 2, num_blocks[2])):
        blocks = []
        strides = [stride0] + [1] * (nb - 1)
        for s in strides:
            bp = {'conv1_w': conv_w(3, 3, in_planes, planes),
                  'bn1': _bn_init(planes),
                  'conv2_w': conv_w(3, 3, planes, planes),
                  'bn2': _bn_init(planes)}
            if s != 1 or in_planes != planes:
                bp['sc_w'] = conv_w(1, 1, in_planes, planes)
                bp['sc_bn'] = _bn_init(planes)
            blocks.append((s, bp))
            in_planes = planes
        params[layer_name] = blocks
    params['bn2'] = _bn_init(64)
    params['linear_w'] = jax.random.normal(kg(), (64, num_classes), jnp.float32) * 0.1
    params['linear_b'] = jnp.zeros((num_classes,), jnp.float32)
    return params


def _pad_cols(v, n):
    return jnp.pad(v.astype(jnp.float32), (0, n - v.shape[0]))


def _pack_w(w_hwio, n_lanes):
    KH, KW, Cin, Cout = w_hwio.shape
    K = KH * KW * Cin
    Kr = _round_up(K, 16)                         # bf16 sublane-friendly true-K
    w = jnp.pad(w_hwio.reshape(K, Cout), ((0, Kr - K), (0, n_lanes - Cout)))
    return w, Kr


def _pack_conv(w_hwio, stride, pad, scale_vec=None, bias_vec=None):
    KH, KW, Cin, Cout = w_hwio.shape
    w, _ = _pack_w(w_hwio, LANE)
    sb = None
    if scale_vec is not None:
        sb = jnp.stack([_pad_cols(scale_vec, LANE), _pad_cols(bias_vec, LANE)])
    return {'w': w.astype(jnp.bfloat16), 'sb': sb,
            'shape': (KH, KW, Cin, Cout), 'stride': stride, 'pad': pad}


def _pack_combined(w1_hwio, s1, b1, wsc_hwio, ssc, bsc, stride):
    """Pack conv1 (3x3) + 1x1 downsample shortcut as one (K, 256) weight.
    The shortcut's rows are exactly the center-tap rows of conv1's im2col; its
    BN scale is folded into the weights (its raw output is never needed)."""
    KH, KW, Cin, Cout = w1_hwio.shape
    w1, Kr = _pack_w(w1_hwio, LANE)
    csc = wsc_hwio.shape[-1]
    wsc = wsc_hwio.reshape(Cin, csc) * ssc[None, :]
    wsc_full = jnp.zeros((Kr, LANE), jnp.float32)
    wsc_full = wsc_full.at[4 * Cin:5 * Cin, :csc].set(wsc)   # center tap rows
    w_comb = jnp.concatenate([w1, wsc_full], axis=1).astype(jnp.bfloat16)
    scale = jnp.concatenate([_pad_cols(s1, LANE), jnp.ones((LANE,), jnp.float32)])
    bias = jnp.concatenate([_pad_cols(b1, LANE), _pad_cols(bsc, LANE)])
    return {'w': w_comb, 'sb': jnp.stack([scale, bias]),
            'shape': (KH, KW, Cin, Cout), 'stride': stride, 'pad': 1}


def _pack_head(bn2, linear_w, linear_b):
    s, t = _bn_affine(bn2)
    w_f = s[:, None] * linear_w                   # fold BN1d into Linear
    b_f = t @ linear_w + linear_b
    C, nc = w_f.shape
    w_p = jnp.pad(w_f, ((0, LANE - C), (0, LANE - nc))).astype(jnp.bfloat16)
    b_p = jnp.pad(b_f, (0, LANE - nc)).reshape(1, LANE).astype(jnp.float32)
    return {'w': w_p, 'b': b_p, 'num_classes': nc}


def pack_params(params):
    packed = {}
    # Stem: relu(conv1(x)); bn1 unused in the reference forward -> no affine operand.
    packed['stem'] = _pack_conv(params['conv1_w'], 1, 1)
    for layer_name in ('layer1', 'layer2', 'layer3'):
        blocks = []
        for stride, bp in params[layer_name]:
            s1, b1 = _bn_affine(bp['bn1'])
            s2, b2 = _bn_affine(bp['bn2'])
            pb = {'conv1': None, 'combined': None,
                  'conv2': _pack_conv(bp['conv2_w'], 1, 1, s2, b2)}
            if 'sc_w' in bp:
                ss, sbias = _bn_affine(bp['sc_bn'])
                pb['combined'] = _pack_combined(bp['conv1_w'], s1, b1,
                                                bp['sc_w'], ss, sbias, stride)
            else:
                pb['conv1'] = _pack_conv(bp['conv1_w'], stride, 1, s1, b1)
            blocks.append(pb)
        packed[layer_name] = blocks
    packed['head'] = _pack_head(params['bn2'], params['linear_w'],
                                params['linear_b'])
    return packed


# ---------------------------------------------------------------------------
# Full forward.
# ---------------------------------------------------------------------------
def resnet_forward(x_nchw, packed):
    # NCHW -> NHWC (lane-dense) at the boundary, bf16 for the MXU path.
    x = jnp.transpose(x_nchw, (0, 2, 3, 1)).astype(jnp.bfloat16)
    ret = {}

    # stem: relu(conv1(x))  (bn1 is unused in the reference forward)
    out, _, out_slab, dims = conv_call(x, packed['stem'], relu_cols=LANE,
                                       emit_raw=False)

    for li, layer_name in enumerate(('layer1', 'layer2', 'layer3'), start=1):
        for bi, bp in enumerate(packed[layer_name]):
            out, out_slab, dims, raw1, raw2 = basic_block_forward(out, out_slab, bp)
            # ret_dict values stay NCHW f32 to match the PyTorch module's layout.
            ret['layer{}_{}_conv1'.format(li, bi)] = (
                jnp.transpose(raw1, (0, 3, 1, 2)).astype(jnp.float32))
            ret['layer{}_{}_conv2'.format(li, bi)] = (
                jnp.transpose(raw2, (0, 3, 1, 2)).astype(jnp.float32))

    N, Ho, Wo = dims
    # avgpool + bn2 + linear, straight off the lane-padded slab (padded lanes are 0).
    ret['out'] = head_forward(out_slab[:N * Ho * Wo], N, Ho * Wo, packed['head'])
    return ret


if __name__ == "__main__":
    key = jax.random.PRNGKey(0)
    kp, kx = jax.random.split(key)
    params = init_resnet_params(kp, num_blocks=(1, 1, 1), num_classes=10)
    packed = pack_params(params)                  # pack/pad/cast weights once
    x = jax.random.normal(kx, (2, 3, 16, 16), jnp.float32)    # NCHW, like PyTorch

    fwd = jax.jit(lambda xin: resnet_forward(xin, packed))
    ret = fwd(x)
    jax.block_until_ready(ret['out'])

    # sanity checks on shapes implied by the module
    assert ret['out'].shape == (2, 10)
    assert ret['layer1_0_conv1'].shape == (2, 16, 16, 16)
    assert ret['layer2_0_conv1'].shape == (2, 32, 8, 8)
    assert ret['layer2_0_conv2'].shape == (2, 32, 8, 8)
    assert ret['layer3_0_conv2'].shape == (2, 64, 4, 4)
    assert all(bool(jnp.isfinite(v.astype(jnp.float32)).all()) for v in ret.values())

    print("KERNEL_OK")
</pallas_src>

<mosaic_0001>
module attributes {stable_mosaic.version = 11 : i64} {
  func.func @_fused_mm_kernel(%arg0: i32, %arg1: memref<128x32xbf16, #tpu.memory_space<vmem>>, %arg2: memref<32x128xbf16, #tpu.memory_space<vmem>>, %arg3: memref<128x128xbf16, #tpu.memory_space<vmem>>) attributes {dimension_semantics = [#tpu.dimension_semantics<parallel>], iteration_bounds = array<i64: 4>, scalar_prefetch = 0 : i64, scratch_operands = 0 : i64, tpu.core_type = #tpu.core_type<tc>, window_params = [{transform_indices = @transform_0, window_bounds = array<i64: 128, 32>}, {pipeline_mode = #tpu.pipeline_mode<synchronous>, transform_indices = @transform_1, window_bounds = array<i64: 32, 128>}, {transform_indices = @transform_2, window_bounds = array<i64: 128, 128>}]} {
    %c0 = arith.constant 0 : index
    %c0_0 = arith.constant 0 : index
    %0 = vector.load %arg1[%c0, %c0_0] : memref<128x32xbf16, #tpu.memory_space<vmem>>, vector<128x32xbf16>
    %c0_1 = arith.constant 0 : index
    %c0_2 = arith.constant 0 : index
    %1 = vector.load %arg2[%c0_1, %c0_2] : memref<32x128xbf16, #tpu.memory_space<vmem>>, vector<32x128xbf16>
    %cst = arith.constant dense<0.000000e+00> : vector<128x128xf32>
    %2 = tpu.matmul %0, %1, %cst {dimension_numbers = #tpu.dot_dimension_numbers<[1], [0], [0], [1], [0, 0, 1, 1], [], []>} : vector<128x32xbf16>, vector<32x128xbf16>, vector<128x128xf32> -> vector<128x128xf32>
    %cst_3 = arith.constant 0.000000e+00 : f32
    %3 = vector.broadcast %cst_3 : f32 to vector<128x128xf32>
    %4 = arith.maximumf %2, %3 : vector<128x128xf32>
    %5 = arith.truncf %4 : vector<128x128xf32> to vector<128x128xbf16>
    %c0_4 = arith.constant 0 : index
    %c0_5 = arith.constant 0 : index
    %6 = vector.load %arg3[%c0_4, %c0_5] : memref<128x128xbf16, #tpu.memory_space<vmem>>, vector<128x128xbf16>
    tpu.vector_store %arg3[%c0_4, %c0_5], %5 {strides = array<i32>} : memref<128x128xbf16, #tpu.memory_space<vmem>>, vector<128x128xbf16>,
    return
  }
  func.func @transform_0(%arg0: i32) -> (i32, i32) {
    %c0_i32 = arith.constant 0 : i32
    %c0_i32_0 = arith.constant 0 : i32
    return %arg0, %c0_i32 : i32, i32
  }
  func.func @transform_1(%arg0: i32) -> (i32, i32) {
    %c0_i32 = arith.constant 0 : i32
    %c0_i32_0 = arith.constant 0 : i32
    %c0_i32_1 = arith.constant 0 : i32
    return %c0_i32, %c0_i32_0 : i32, i32
  }
  func.func @transform_2(%arg0: i32) -> (i32, i32) {
    %c0_i32 = arith.constant 0 : i32
    %c0_i32_0 = arith.constant 0 : i32
    return %arg0, %c0_i32 : i32, i32
  }
}

module attributes {stable_mosaic.version = 11 : i64} {
  func.func @_fused_mm_kernel(%arg0: i32, %arg1: memref<128x144xbf16, #tpu.memory_space<vmem>>, %arg2: memref<144x128xbf16, #tpu.memory_space<vmem>>, %arg3: memref<2x128xf32, #tpu.memory_space<vmem>>, %arg4: memref<128x128xbf16, #tpu.memory_space<vmem>>, %arg5: memref<128x128xbf16, #tpu.memory_space<vmem>>) attributes {dimension_semantics = [#tpu.dimension_semantics<parallel>], iteration_bounds = array<i64: 4>, scalar_prefetch = 0 : i64, scratch_operands = 0 : i64, tpu.core_type = #tpu.core_type<tc>, window_params = [{transform_indices = @transform_0, window_bounds = array<i64: 128, 144>}, {pipeline_mode = #tpu.pipeline_mode<synchronous>, transform_indices = @transform_1, window_bounds = array<i64: 144, 128>}, {pipeline_mode = #tpu.pipeline_mode<synchronous>, transform_indices = @transform_2, window_bounds = array<i64: 2, 128>}, {transform_indices = @transform_3, window_bounds = array<i64: 128, 128>}, {transform_indices = @transform_4, window_bounds = array<i64: 128, 128>}]} {
    %c0 = arith.constant 0 : index
    %c0_0 = arith.constant 0 : index
    %0 = vector.load %arg1[%c0, %c0_0] : memref<128x144xbf16, #tpu.memory_space<vmem>>, vector<128x144xbf16>
    %c0_1 = arith.constant 0 : index
    %c0_2 = arith.constant 0 : index
    %1 = vector.load %arg2[%c0_1, %c0_2] : memref<144x128xbf16, #tpu.memory_space<vmem>>, vector<144x128xbf16>
    %cst = arith.constant dense<0.000000e+00> : vector<128x128xf32>
    %2 = tpu.matmul %0, %1, %cst {dimension_numbers = #tpu.dot_dimension_numbers<[1], [0], [0], [1], [0, 0, 1, 1], [], []>} : vector<128x144xbf16>, vector<144x128xbf16>, vector<128x128xf32> -> vector<128x128xf32>
    %3 = arith.truncf %2 : vector<128x128xf32> to vector<128x128xbf16>
    %c0_3 = arith.constant 0 : index
    %c0_4 = arith.constant 0 : index
    %4 = vector.load %arg5[%c0_3, %c0_4] : memref<128x128xbf16, #tpu.memory_space<vmem>>, vector<128x128xbf16>
    tpu.vector_store %arg5[%c0_3, %c0_4], %3 {strides = array<i32>} : memref<128x128xbf16, #tpu.memory_space<vmem>>, vector<128x128xbf16>,
    %c0_5 = arith.constant 0 : index
    %c0_6 = arith.constant 0 : index
    %5 = vector.load %arg3[%c0_5, %c0_6] : memref<2x128xf32, #tpu.memory_space<vmem>>, vector<2x128xf32>
    %6 = vector.extract_strided_slice %5 {offsets = [0, 0], sizes = [1, 128], strides = [1, 1]} : vector<2x128xf32> to vector<1x128xf32>
    %7 = vector.broadcast %6 : vector<1x128xf32> to vector<128x128xf32>
    %8 = arith.mulf %2, %7 : vector<128x128xf32>
    %9 = vector.extract_strided_slice %5 {offsets = [1, 0], sizes = [1, 128], strides = [1, 1]} : vector<2x128xf32> to vector<1x128xf32>
    %10 = vector.broadcast %9 : vector<1x128xf32> to vector<128x128xf32>
    %11 = arith.addf %8, %10 : vector<128x128xf32>
    %cst_7 = arith.constant 0.000000e+00 : f32
    %12 = vector.broadcast %cst_7 : f32 to vector<128x128xf32>
    %13 = arith.maximumf %11, %12 : vector<128x128xf32>
    %14 = arith.truncf %13 : vector<128x128xf32> to vector<128x128xbf16>
    %c0_8 = arith.constant 0 : index
    %c0_9 = arith.constant 0 : index
    %15 = vector.load %arg4[%c0_8, %c0_9] : memref<128x128xbf16, #tpu.memory_space<vmem>>, vector<128x128xbf16>
    tpu.vector_store %arg4[%c0_8, %c0_9], %14 {strides = array<i32>} : memref<128x128xbf16, #tpu.memory_space<vmem>>, vector<128x128xbf16>,
    return
  }
  func.func @transform_0(%arg0: i32) -> (i32, i32) {
    %c0_i32 = arith.constant 0 : i32
    %c0_i32_0 = arith.constant 0 : i32
    return %arg0, %c0_i32 : i32, i32
  }
  func.func @transform_1(%arg0: i32) -> (i32, i32) {
    %c0_i32 = arith.constant 0 : i32
    %c0_i32_0 = arith.constant 0 : i32
    %c0_i32_1 = arith.constant 0 : i32
    return %c0_i32, %c0_i32_0 : i32, i32
  }
  func.func @transform_2(%arg0: i32) -> (i32, i32) {
    %c0_i32 = arith.constant 0 : i32
    %c0_i32_0 = arith.constant 0 : i32
    %c0_i32_1 = arith.constant 0 : i32
    return %c0_i32, %c0_i32_0 : i32, i32
  }
  func.func @transform_3(%arg0: i32) -> (i32, i32) {
    %c0_i32 = arith.constant 0 : i32
    %c0_i32_0 = arith.constant 0 : i32
    return %arg0, %c0_i32 : i32, i32
  }
  func.func @transform_4(%arg0: i32) -> (i32, i32) {
    %c0_i32 = arith.constant 0 : i32
    %c0_i32_0 = arith.constant 0 : i32
    return %arg0, %c0_i32 : i32, i32
  }
}

module attributes {stable_mosaic.version = 11 : i64} {
  func.func @_fused_mm_kernel(%arg0: i32, %arg1: memref<128x144xbf16, #tpu.memory_space<vmem>>, %arg2: memref<144x128xbf16, #tpu.memory_space<vmem>>, %arg3: memref<2x128xf32, #tpu.memory_space<vmem>>, %arg4: memref<128x128xbf16, #tpu.memory_space<vmem>>, %arg5: memref<128x128xbf16, #tpu.memory_space<vmem>>, %arg6: memref<128x128xbf16, #tpu.memory_space<vmem>>) attributes {dimension_semantics = [#tpu.dimension_semantics<parallel>], iteration_bounds = array<i64: 4>, scalar_prefetch = 0 : i64, scratch_operands = 0 : i64, tpu.core_type = #tpu.core_type<tc>, window_params = [{transform_indices = @transform_0, window_bounds = array<i64: 128, 144>}, {pipeline_mode = #tpu.pipeline_mode<synchronous>, transform_indices = @transform_1, window_bounds = array<i64: 144, 128>}, {pipeline_mode = #tpu.pipeline_mode<synchronous>, transform_indices = @transform_2, window_bounds = array<i64: 2, 128>}, {transform_indices = @transform_3, window_bounds = array<i64: 128, 128>}, {transform_indices = @transform_4, window_bounds = array<i64: 128, 128>}, {transform_indices = @transform_5, window_bounds = array<i64: 128, 128>}]} {
    %c0 = arith.constant 0 : index
    %c0_0 = arith.constant 0 : index
    %0 = vector.load %arg1[%c0, %c0_0] : memref<128x144xbf16, #tpu.memory_space<vmem>>, vector<128x144xbf16>
    %c0_1 = arith.constant 0 : index
    %c0_2 = arith.constant 0 : index
    %1 = vector.load %arg2[%c0_1, %c0_2] : memref<144x128xbf16, #tpu.memory_space<vmem>>, vector<144x128xbf16>
    %cst = arith.constant dense<0.000000e+00> : vector<128x128xf32>
    %2 = tpu.matmul %0, %1, %cst {dimension_numbers = #tpu.dot_dimension_numbers<[1], [0], [0], [1], [0, 0, 1, 1], [], []>} : vector<128x144xbf16>, vector<144x128xbf16>, vector<128x128xf32> -> vector<128x128xf32>
    %3 = arith.truncf %2 : vector<128x128xf32> to vector<128x128xbf16>
    %c0_3 = arith.constant 0 : index
    %c0_4 = arith.constant 0 : index
    %4 = vector.load %arg6[%c0_3, %c0_4] : memref<128x128xbf16, #tpu.memory_space<vmem>>, vector<128x128xbf16>
    tpu.vector_store %arg6[%c0_3, %c0_4], %3 {strides = array<i32>} : memref<128x128xbf16, #tpu.memory_space<vmem>>, vector<128x128xbf16>,
    %c0_5 = arith.constant 0 : index
    %c0_6 = arith.constant 0 : index
    %5 = vector.load %arg3[%c0_5, %c0_6] : memref<2x128xf32, #tpu.memory_space<vmem>>, vector<2x128xf32>
    %6 = vector.extract_strided_slice %5 {offsets = [0, 0], sizes = [1, 128], strides = [1, 1]} : vector<2x128xf32> to vector<1x128xf32>
    %7 = vector.broadcast %6 : vector<1x128xf32> to vector<128x128xf32>
    %8 = arith.mulf %2, %7 : vector<128x128xf32>
    %9 = vector.extract_strided_slice %5 {offsets = [1, 0], sizes = [1, 128], strides = [1, 1]} : vector<2x128xf32> to vector<1x128xf32>
    %10 = vector.broadcast %9 : vector<1x128xf32> to vector<128x128xf32>
    %11 = arith.addf %8, %10 : vector<128x128xf32>
    %c0_7 = arith.constant 0 : index
    %c0_8 = arith.constant 0 : index
    %12 = vector.load %arg4[%c0_7, %c0_8] : memref<128x128xbf16, #tpu.memory_space<vmem>>, vector<128x128xbf16>
    %13 = arith.extf %12 : vector<128x128xbf16> to vector<128x128xf32>
    %14 = arith.addf %11, %13 : vector<128x128xf32>
    %cst_9 = arith.constant 0.000000e+00 : f32
    %15 = vector.broadcast %cst_9 : f32 to vector<128x128xf32>
    %16 = arith.maximumf %14, %15 : vector<128x128xf32>
    %17 = arith.truncf %16 : vector<128x128xf32> to vector<128x128xbf16>
    %c0_10 = arith.constant 0 : index
    %c0_11 = arith.constant 0 : index
    %18 = vector.load %arg5[%c0_10, %c0_11] : memref<128x128xbf16, #tpu.memory_space<vmem>>, vector<128x128xbf16>
    tpu.vector_store %arg5[%c0_10, %c0_11], %17 {strides = array<i32>} : memref<128x128xbf16, #tpu.memory_space<vmem>>, vector<128x128xbf16>,
    return
  }
  func.func @transform_0(%arg0: i32) -> (i32, i32) {
    %c0_i32 = arith.constant 0 : i32
    %c0_i32_0 = arith.constant 0 : i32
    return %arg0, %c0_i32 : i32, i32
  }
  func.func @transform_1(%arg0: i32) -> (i32, i32) {
    %c0_i32 = arith.constant 0 : i32
    %c0_i32_0 = arith.constant 0 : i32
    %c0_i32_1 = arith.constant 0 : i32
    return %c0_i32, %c0_i32_0 : i32, i32
  }
  func.func @transform_2(%arg0: i32) -> (i32, i32) {
    %c0_i32 = arith.constant 0 : i32
    %c0_i32_0 = arith.constant 0 : i32
    %c0_i32_1 = arith.constant 0 : i32
    return %c0_i32, %c0_i32_0 : i32, i32
  }
  func.func @transform_3(%arg0: i32) -> (i32, i32) {
    %c0_i32 = arith.constant 0 : i32
    %c0_i32_0 = arith.constant 0 : i32
    return %arg0, %c0_i32 : i32, i32
  }
  func.func @transform_4(%arg0: i32) -> (i32, i32) {
    %c0_i32 = arith.constant 0 : i32
    %c0_i32_0 = arith.constant 0 : i32
    return %arg0, %c0_i32 : i32, i32
  }
  func.func @transform_5(%arg0: i32) -> (i32, i32) {
    %c0_i32 = arith.constant 0 : i32
    %c0_i32_0 = arith.constant 0 : i32
    return %arg0, %c0_i32 : i32, i32
  }
}

module attributes {stable_mosaic.version = 11 : i64} {
  func.func @_fused_mm_kernel(%arg0: i32, %arg1: memref<128x144xbf16, #tpu.memory_space<vmem>>, %arg2: memref<144x256xbf16, #tpu.memory_space<vmem>>, %arg3: memref<2x256xf32, #tpu.memory_space<vmem>>, %arg4: memref<128x256xbf16, #tpu.memory_space<vmem>>, %arg5: memref<128x128xbf16, #tpu.memory_space<vmem>>) attributes {dimension_semantics = [#tpu.dimension_semantics<parallel>], iteration_bounds = array<i64: 1>, scalar_prefetch = 0 : i64, scratch_operands = 0 : i64, tpu.core_type = #tpu.core_type<tc>, window_params = [{transform_indices = @transform_0, window_bounds = array<i64: 128, 144>}, {pipeline_mode = #tpu.pipeline_mode<synchronous>, transform_indices = @transform_1, window_bounds = array<i64: 144, 256>}, {pipeline_mode = #tpu.pipeline_mode<synchronous>, transform_indices = @transform_2, window_bounds = array<i64: 2, 256>}, {transform_indices = @transform_3, window_bounds = array<i64: 128, 256>}, {transform_indices = @transform_4, window_bounds = array<i64: 128, 128>}]} {
    %c0 = arith.constant 0 : index
    %c0_0 = arith.constant 0 : index
    %0 = vector.load %arg1[%c0, %c0_0] : memref<128x144xbf16, #tpu.memory_space<vmem>>, vector<128x144xbf16>
    %c0_1 = arith.constant 0 : index
    %c0_2 = arith.constant 0 : index
    %1 = vector.load %arg2[%c0_1, %c0_2] : memref<144x256xbf16, #tpu.memory_space<vmem>>, vector<144x256xbf16>
    %cst = arith.constant dense<0.000000e+00> : vector<128x256xf32>
    %2 = tpu.matmul %0, %1, %cst {dimension_numbers = #tpu.dot_dimension_numbers<[1], [0], [0], [1], [0, 0, 1, 1], [], []>} : vector<128x144xbf16>, vector<144x256xbf16>, vector<128x256xf32> -> vector<128x256xf32>
    %3 = vector.extract_strided_slice %2 {offsets = [0, 0], sizes = [128, 128], strides = [1, 1]} : vector<128x256xf32> to vector<128x128xf32>
    %4 = arith.truncf %3 : vector<128x128xf32> to vector<128x128xbf16>
    %c0_3 = arith.constant 0 : index
    %c0_4 = arith.constant 0 : index
    %5 = vector.load %arg5[%c0_3, %c0_4] : memref<128x128xbf16, #tpu.memory_space<vmem>>, vector<128x128xbf16>
    tpu.vector_store %arg5[%c0_3, %c0_4], %4 {strides = array<i32>} : memref<128x128xbf16, #tpu.memory_space<vmem>>, vector<128x128xbf16>,
    %c0_5 = arith.constant 0 : index
    %c0_6 = arith.constant 0 : index
    %6 = vector.load %arg3[%c0_5, %c0_6] : memref<2x256xf32, #tpu.memory_space<vmem>>, vector<2x256xf32>
    %7 = vector.extract_strided_slice %6 {offsets = [0, 0], sizes = [1, 256], strides = [1, 1]} : vector<2x256xf32> to vector<1x256xf32>
    %8 = vector.broadcast %7 : vector<1x256xf32> to vector<128x256xf32>
    %9 = arith.mulf %2, %8 : vector<128x256xf32>
    %10 = vector.extract_strided_slice %6 {offsets = [1, 0], sizes = [1, 256], strides = [1, 1]} : vector<2x256xf32> to vector<1x256xf32>
    %11 = vector.broadcast %10 : vector<1x256xf32> to vector<128x256xf32>
    %12 = arith.addf %9, %11 : vector<128x256xf32>
    %13 = vector.extract_strided_slice %12 {offsets = [0, 0], sizes = [128, 128], strides = [1, 1]} : vector<128x256xf32> to vector<128x128xf32>
    %cst_7 = arith.constant 0.000000e+00 : f32
    %14 = vector.broadcast %cst_7 : f32 to vector<128x128xf32>
    %15 = arith.maximumf %13, %14 : vector<128x128xf32>
    %16 = arith.truncf %15 : vector<128x128xf32> to vector<128x128xbf16>
    %c0_8 = arith.constant 0 : index
    %c0_9 = arith.constant 0 : index
    %17 = vector.load %arg4[%c0_8, %c0_9] : memref<128x256xbf16, #tpu.memory_space<vmem>>, vector<128x128xbf16>
    tpu.vector_store %arg4[%c0_8, %c0_9], %16 {strides = array<i32>} : memref<128x256xbf16, #tpu.memory_space<vmem>>, vector<128x128xbf16>,
    %18 = vector.extract_strided_slice %12 {offsets = [0, 128], sizes = [128, 128], strides = [1, 1]} : vector<128x256xf32> to vector<128x128xf32>
    %19 = arith.truncf %18 : vector<128x128xf32> to vector<128x128xbf16>
    %c0_10 = arith.constant 0 : index
    %c128 = arith.constant 128 : index
    %20 = vector.load %arg4[%c0_10, %c128] : memref<128x256xbf16, #tpu.memory_space<vmem>>, vector<128x128xbf16>
    tpu.vector_store %arg4[%c0_10, %c128], %19 {strides = array<i32>} : memref<128x256xbf16, #tpu.memory_space<vmem>>, vector<128x128xbf16>,
    return
  }
  func.func @transform_0(%arg0: i32) -> (i32, i32) {
    %c0_i32 = arith.constant 0 : i32
    %c0_i32_0 = arith.constant 0 : i32
    return %arg0, %c0_i32 : i32, i32
  }
  func.func @transform_1(%arg0: i32) -> (i32, i32) {
    %c0_i32 = arith.constant 0 : i32
    %c0_i32_0 = arith.constant 0 : i32
    %c0_i32_1 = arith.constant 0 : i32
    return %c0_i32, %c0_i32_0 : i32, i32
  }
  func.func @transform_2(%arg0: i32) -> (i32, i32) {
    %c0_i32 = arith.constant 0 : i32
    %c0_i32_0 = arith.constant 0 : i32
    %c0_i32_1 = arith.constant 0 : i32
    return %c0_i32, %c0_i32_0 : i32, i32
  }
  func.func @transform_3(%arg0: i32) -> (i32, i32) {
    %c0_i32 = arith.constant 0 : i32
    %c0_i32_0 = arith.constant 0 : i32
    return %arg0, %c0_i32 : i32, i32
  }
  func.func @transform_4(%arg0: i32) -> (i32, i32) {
    %c0_i32 = arith.constant 0 : i32
    %c0_i32_0 = arith.constant 0 : i32
    return %arg0, %c0_i32 : i32, i32
  }
}

module attributes {stable_mosaic.version = 11 : i64} {
  func.func @_fused_mm_kernel(%arg0: i32, %arg1: memref<128x288xbf16, #tpu.memory_space<vmem>>, %arg2: memref<288x128xbf16, #tpu.memory_space<vmem>>, %arg3: memref<2x128xf32, #tpu.memory_space<vmem>>, %arg4: memref<128x128xbf16, #tpu.memory_space<vmem>>, %arg5: memref<128x128xbf16, #tpu.memory_space<vmem>>, %arg6: memref<128x128xbf16, #tpu.memory_space<vmem>>) attributes {dimension_semantics = [#tpu.dimension_semantics<parallel>], iteration_bounds = array<i64: 1>, scalar_prefetch = 0 : i64, scratch_operands = 0 : i64, tpu.core_type = #tpu.core_type<tc>, window_params = [{transform_indices = @transform_0, window_bounds = array<i64: 128, 288>}, {pipeline_mode = #tpu.pipeline_mode<synchronous>, transform_indices = @transform_1, window_bounds = array<i64: 288, 128>}, {pipeline_mode = #tpu.pipeline_mode<synchronous>, transform_indices = @transform_2, window_bounds = array<i64: 2, 128>}, {transform_indices = @transform_3, window_bounds = array<i64: 128, 128>}, {transform_indices = @transform_4, window_bounds = array<i64: 128, 128>}, {transform_indices = @transform_5, window_bounds = array<i64: 128, 128>}]} {
    %c0 = arith.constant 0 : index
    %c0_0 = arith.constant 0 : index
    %0 = vector.load %arg1[%c0, %c0_0] : memref<128x288xbf16, #tpu.memory_space<vmem>>, vector<128x288xbf16>
    %c0_1 = arith.constant 0 : index
    %c0_2 = arith.constant 0 : index
    %1 = vector.load %arg2[%c0_1, %c0_2] : memref<288x128xbf16, #tpu.memory_space<vmem>>, vector<288x128xbf16>
    %cst = arith.constant dense<0.000000e+00> : vector<128x128xf32>
    %2 = tpu.matmul %0, %1, %cst {dimension_numbers = #tpu.dot_dimension_numbers<[1], [0], [0], [1], [0, 0, 1, 1], [], []>} : vector<128x288xbf16>, vector<288x128xbf16>, vector<128x128xf32> -> vector<128x128xf32>
    %3 = arith.truncf %2 : vector<128x128xf32> to vector<128x128xbf16>
    %c0_3 = arith.constant 0 : index
    %c0_4 = arith.constant 0 : index
    %4 = vector.load %arg6[%c0_3, %c0_4] : memref<128x128xbf16, #tpu.memory_space<vmem>>, vector<128x128xbf16>
    tpu.vector_store %arg6[%c0_3, %c0_4], %3 {strides = array<i32>} : memref<128x128xbf16, #tpu.memory_space<vmem>>, vector<128x128xbf16>,
    %c0_5 = arith.constant 0 : index
    %c0_6 = arith.constant 0 : index
    %5 = vector.load %arg3[%c0_5, %c0_6] : memref<2x128xf32, #tpu.memory_space<vmem>>, vector<2x128xf32>
    %6 = vector.extract_strided_slice %5 {offsets = [0, 0], sizes = [1, 128], strides = [1, 1]} : vector<2x128xf32> to vector<1x128xf32>
    %7 = vector.broadcast %6 : vector<1x128xf32> to vector<128x128xf32>
    %8 = arith.mulf %2, %7 : vector<128x128xf32>
    %9 = vector.extract_strided_slice %5 {offsets = [1, 0], sizes = [1, 128], strides = [1, 1]} : vector<2x128xf32> to vector<1x128xf32>
    %10 = vector.broadcast %9 : vector<1x128xf32> to vector<128x128xf32>
    %11 = arith.addf %8, %10 : vector<128x128xf32>
    %c0_7 = arith.constant 0 : index
    %c0_8 = arith.constant 0 : index
    %12 = vector.load %arg4[%c0_7, %c0_8] : memref<128x128xbf16, #tpu.memory_space<vmem>>, vector<128x128xbf16>
    %13 = arith.extf %12 : vector<128x128xbf16> to vector<128x128xf32>
    %14 = arith.addf %11, %13 : vector<128x128xf32>
    %cst_9 = arith.constant 0.000000e+00 : f32
    %15 = vector.broadcast %cst_9 : f32 to vector<128x128xf32>
    %16 = arith.maximumf %14, %15 : vector<128x128xf32>
    %17 = arith.truncf %16 : vector<128x128xf32> to vector<128x128xbf16>
    %c0_10 = arith.constant 0 : index
    %c0_11 = arith.constant 0 : index
    %18 = vector.load %arg5[%c0_10, %c0_11] : memref<128x128xbf16, #tpu.memory_space<vmem>>, vector<128x128xbf16>
    tpu.vector_store %arg5[%c0_10, %c0_11], %17 {strides = array<i32>} : memref<128x128xbf16, #tpu.memory_space<vmem>>, vector<128x128xbf16>,
    return
  }
  func.func @transform_0(%arg0: i32) -> (i32, i32) {
    %c0_i32 = arith.constant 0 : i32
    %c0_i32_0 = arith.constant 0 : i32
    return %arg0, %c0_i32 : i32, i32
  }
  func.func @transform_1(%arg0: i32) -> (i32, i32) {
    %c0_i32 = arith.constant 0 : i32
    %c0_i32_0 = arith.constant 0 : i32
    %c0_i32_1 = arith.constant 0 : i32
    return %c0_i32, %c0_i32_0 : i32, i32
  }
  func.func @transform_2(%arg0: i32) -> (i32, i32) {
    %c0_i32 = arith.constant 0 : i32
    %c0_i32_0 = arith.constant 0 : i32
    %c0_i32_1 = arith.constant 0 : i32
    return %c0_i32, %c0_i32_0 : i32, i32
  }
  func.func @transform_3(%arg0: i32) -> (i32, i32) {
    %c1_i32 = arith.constant 1 : i32
    %c0_i32 = arith.constant 0 : i32
    return %arg0, %c1_i32 : i32, i32
  }
  func.func @transform_4(%arg0: i32) -> (i32, i32) {
    %c0_i32 = arith.constant 0 : i32
    %c0_i32_0 = arith.constant 0 : i32
    return %arg0, %c0_i32 : i32, i32
  }
  func.func @transform_5(%arg0: i32) -> (i32, i32) {
    %c0_i32 = arith.constant 0 : i32
    %c0_i32_0 = arith.constant 0 : i32
    return %arg0, %c0_i32 : i32, i32
  }
}

module attributes {stable_mosaic.version = 11 : i64} {
  func.func @_fused_mm_kernel(%arg0: i32, %arg1: memref<32x288xbf16, #tpu.memory_space<vmem>>, %arg2: memref<288x256xbf16, #tpu.memory_space<vmem>>, %arg3: memref<2x256xf32, #tpu.memory_space<vmem>>, %arg4: memref<32x256xbf16, #tpu.memory_space<vmem>>, %arg5: memref<32x128xbf16, #tpu.memory_space<vmem>>) attributes {dimension_semantics = [#tpu.dimension_semantics<parallel>], iteration_bounds = array<i64: 1>, scalar_prefetch = 0 : i64, scratch_operands = 0 : i64, tpu.core_type = #tpu.core_type<tc>, window_params = [{transform_indices = @transform_0, window_bounds = array<i64: 32, 288>}, {pipeline_mode = #tpu.pipeline_mode<synchronous>, transform_indices = @transform_1, window_bounds = array<i64: 288, 256>}, {pipeline_mode = #tpu.pipeline_mode<synchronous>, transform_indices = @transform_2, window_bounds = array<i64: 2, 256>}, {transform_indices = @transform_3, window_bounds = array<i64: 32, 256>}, {transform_indices = @transform_4, window_bounds = array<i64: 32, 128>}]} {
    %c0 = arith.constant 0 : index
    %c0_0 = arith.constant 0 : index
    %0 = vector.load %arg1[%c0, %c0_0] : memref<32x288xbf16, #tpu.memory_space<vmem>>, vector<32x288xbf16>
    %c0_1 = arith.constant 0 : index
    %c0_2 = arith.constant 0 : index
    %1 = vector.load %arg2[%c0_1, %c0_2] : memref<288x256xbf16, #tpu.memory_space<vmem>>, vector<288x256xbf16>
    %cst = arith.constant dense<0.000000e+00> : vector<32x256xf32>
    %2 = tpu.matmul %0, %1, %cst {dimension_numbers = #tpu.dot_dimension_numbers<[1], [0], [0], [1], [0, 0, 1, 1], [], []>} : vector<32x288xbf16>, vector<288x256xbf16>, vector<32x256xf32> -> vector<32x256xf32>
    %3 = vector.extract_strided_slice %2 {offsets = [0, 0], sizes = [32, 128], strides = [1, 1]} : vector<32x256xf32> to vector<32x128xf32>
    %4 = arith.truncf %3 : vector<32x128xf32> to vector<32x128xbf16>
    %c0_3 = arith.constant 0 : index
    %c0_4 = arith.constant 0 : index
    %5 = vector.load %arg5[%c0_3, %c0_4] : memref<32x128xbf16, #tpu.memory_space<vmem>>, vector<32x128xbf16>
    tpu.vector_store %arg5[%c0_3, %c0_4], %4 {strides = array<i32>} : memref<32x128xbf16, #tpu.memory_space<vmem>>, vector<32x128xbf16>,
    %c0_5 = arith.constant 0 : index
    %c0_6 = arith.constant 0 : index
    %6 = vector.load %arg3[%c0_5, %c0_6] : memref<2x256xf32, #tpu.memory_space<vmem>>, vector<2x256xf32>
    %7 = vector.extract_strided_slice %6 {offsets = [0, 0], sizes = [1, 256], strides = [1, 1]} : vector<2x256xf32> to vector<1x256xf32>
    %8 = vector.broadcast %7 : vector<1x256xf32> to vector<32x256xf32>
    %9 = arith.mulf %2, %8 : vector<32x256xf32>
    %10 = vector.extract_strided_slice %6 {offsets = [1, 0], sizes = [1, 256], strides = [1, 1]} : vector<2x256xf32> to vector<1x256xf32>
    %11 = vector.broadcast %10 : vector<1x256xf32> to vector<32x256xf32>
    %12 = arith.addf %9, %11 : vector<32x256xf32>
    %13 = vector.extract_strided_slice %12 {offsets = [0, 0], sizes = [32, 128], strides = [1, 1]} : vector<32x256xf32> to vector<32x128xf32>
    %cst_7 = arith.constant 0.000000e+00 : f32
    %14 = vector.broadcast %cst_7 : f32 to vector<32x128xf32>
    %15 = arith.maximumf %13, %14 : vector<32x128xf32>
    %16 = arith.truncf %15 : vector<32x128xf32> to vector<32x128xbf16>
    %c0_8 = arith.constant 0 : index
    %c0_9 = arith.constant 0 : index
    %17 = vector.load %arg4[%c0_8, %c0_9] : memref<32x256xbf16, #tpu.memory_space<vmem>>, vector<32x128xbf16>
    tpu.vector_store %arg4[%c0_8, %c0_9], %16 {strides = array<i32>} : memref<32x256xbf16, #tpu.memory_space<vmem>>, vector<32x128xbf16>,
    %18 = vector.extract_strided_slice %12 {offsets = [0, 128], sizes = [32, 128], strides = [1, 1]} : vector<32x256xf32> to vector<32x128xf32>
    %19 = arith.truncf %18 : vector<32x128xf32> to vector<32x128xbf16>
    %c0_10 = arith.constant 0 : index
    %c128 = arith.constant 128 : index
    %20 = vector.load %arg4[%c0_10, %c128] : memref<32x256xbf16, #tpu.memory_space<vmem>>, vector<32x128xbf16>
    tpu.vector_store %arg4[%c0_10, %c128], %19 {strides = array<i32>} : memref<32x256xbf16, #tpu.memory_space<vmem>>, vector<32x128xbf16>,
    return
  }
  func.func @transform_0(%arg0: i32) -> (i32, i32) {
    %c0_i32 = arith.constant 0 : i32
    %c0_i32_0 = arith.constant 0 : i32
    return %arg0, %c0_i32 : i32, i32
  }
  func.func @transform_1(%arg0: i32) -> (i32, i32) {
    %c0_i32 = arith.constant 0 : i32
    %c0_i32_0 = arith.constant 0 : i32
    %c0_i32_1 = arith.constant 0 : i32
    return %c0_i32, %c0_i32_0 : i32, i32
  }
  func.func @transform_2(%arg0: i32) -> (i32, i32) {
    %c0_i32 = arith.constant 0 : i32
    %c0_i32_0 = arith.constant 0 : i32
    %c0_i32_1 = arith.constant 0 : i32
    return %c0_i32, %c0_i32_0 : i32, i32
  }
  func.func @transform_3(%arg0: i32) -> (i32, i32) {
    %c0_i32 = arith.constant 0 : i32
    %c0_i32_0 = arith.constant 0 : i32
    return %arg0, %c0_i32 : i32, i32
  }
  func.func @transform_4(%arg0: i32) -> (i32, i32) {
    %c0_i32 = arith.constant 0 : i32
    %c0_i32_0 = arith.constant 0 : i32
    return %arg0, %c0_i32 : i32, i32
  }
}

module attributes {stable_mosaic.version = 11 : i64} {
  func.func @_fused_mm_kernel(%arg0: i32, %arg1: memref<32x576xbf16, #tpu.memory_space<vmem>>, %arg2: memref<576x128xbf16, #tpu.memory_space<vmem>>, %arg3: memref<2x128xf32, #tpu.memory_space<vmem>>, %arg4: memref<32x128xbf16, #tpu.memory_space<vmem>>, %arg5: memref<32x128xbf16, #tpu.memory_space<vmem>>, %arg6: memref<32x128xbf16, #tpu.memory_space<vmem>>) attributes {dimension_semantics = [#tpu.dimension_semantics<parallel>], iteration_bounds = array<i64: 1>, scalar_prefetch = 0 : i64, scratch_operands = 0 : i64, tpu.core_type = #tpu.core_type<tc>, window_params = [{transform_indices = @transform_0, window_bounds = array<i64: 32, 576>}, {pipeline_mode = #tpu.pipeline_mode<synchronous>, transform_indices = @transform_1, window_bounds = array<i64: 576, 128>}, {pipeline_mode = #tpu.pipeline_mode<synchronous>, transform_indices = @transform_2, window_bounds = array<i64: 2, 128>}, {transform_indices = @transform_3, window_bounds = array<i64: 32, 128>}, {transform_indices = @transform_4, window_bounds = array<i64: 32, 128>}, {transform_indices = @transform_5, window_bounds = array<i64: 32, 128>}]} {
    %c0 = arith.constant 0 : index
    %c0_0 = arith.constant 0 : index
    %0 = vector.load %arg1[%c0, %c0_0] : memref<32x576xbf16, #tpu.memory_space<vmem>>, vector<32x576xbf16>
    %c0_1 = arith.constant 0 : index
    %c0_2 = arith.constant 0 : index
    %1 = vector.load %arg2[%c0_1, %c0_2] : memref<576x128xbf16, #tpu.memory_space<vmem>>, vector<576x128xbf16>
    %cst = arith.constant dense<0.000000e+00> : vector<32x128xf32>
    %2 = tpu.matmul %0, %1, %cst {dimension_numbers = #tpu.dot_dimension_numbers<[1], [0], [0], [1], [0, 0, 1, 1], [], []>} : vector<32x576xbf16>, vector<576x128xbf16>, vector<32x128xf32> -> vector<32x128xf32>
    %3 = arith.truncf %2 : vector<32x128xf32> to vector<32x128xbf16>
    %c0_3 = arith.constant 0 : index
    %c0_4 = arith.constant 0 : index
    %4 = vector.load %arg6[%c0_3, %c0_4] : memref<32x128xbf16, #tpu.memory_space<vmem>>, vector<32x128xbf16>
    tpu.vector_store %arg6[%c0_3, %c0_4], %3 {strides = array<i32>} : memref<32x128xbf16, #tpu.memory_space<vmem>>, vector<32x128xbf16>,
    %c0_5 = arith.constant 0 : index
    %c0_6 = arith.constant 0 : index
    %5 = vector.load %arg3[%c0_5, %c0_6] : memref<2x128xf32, #tpu.memory_space<vmem>>, vector<2x128xf32>
    %6 = vector.extract_strided_slice %5 {offsets = [0, 0], sizes = [1, 128], strides = [1, 1]} : vector<2x128xf32> to vector<1x128xf32>
    %7 = vector.broadcast %6 : vector<1x128xf32> to vector<32x128xf32>
    %8 = arith.mulf %2, %7 : vector<32x128xf32>
    %9 = vector.extract_strided_slice %5 {offsets = [1, 0], sizes = [1, 128], strides = [1, 1]} : vector<2x128xf32> to vector<1x128xf32>
    %10 = vector.broadcast %9 : vector<1x128xf32> to vector<32x128xf32>
    %11 = arith.addf %8, %10 : vector<32x128xf32>
    %c0_7 = arith.constant 0 : index
    %c0_8 = arith.constant 0 : index
    %12 = vector.load %arg4[%c0_7, %c0_8] : memref<32x128xbf16, #tpu.memory_space<vmem>>, vector<32x128xbf16>
    %13 = arith.extf %12 : vector<32x128xbf16> to vector<32x128xf32>
    %14 = arith.addf %11, %13 : vector<32x128xf32>
    %cst_9 = arith.constant 0.000000e+00 : f32
    %15 = vector.broadcast %cst_9 : f32 to vector<32x128xf32>
    %16 = arith.maximumf %14, %15 : vector<32x128xf32>
    %17 = arith.truncf %16 : vector<32x128xf32> to vector<32x128xbf16>
    %c0_10 = arith.constant 0 : index
    %c0_11 = arith.constant 0 : index
    %18 = vector.load %arg5[%c0_10, %c0_11] : memref<32x128xbf16, #tpu.memory_space<vmem>>, vector<32x128xbf16>
    tpu.vector_store %arg5[%c0_10, %c0_11], %17 {strides = array<i32>} : memref<32x128xbf16, #tpu.memory_space<vmem>>, vector<32x128xbf16>,
    return
  }
  func.func @transform_0(%arg0: i32) -> (i32, i32) {
    %c0_i32 = arith.constant 0 : i32
    %c0_i32_0 = arith.constant 0 : i32
    return %arg0, %c0_i32 : i32, i32
  }
  func.func @transform_1(%arg0: i32) -> (i32, i32) {
    %c0_i32 = arith.constant 0 : i32
    %c0_i32_0 = arith.constant 0 : i32
    %c0_i32_1 = arith.constant 0 : i32
    return %c0_i32, %c0_i32_0 : i32, i32
  }
  func.func @transform_2(%arg0: i32) -> (i32, i32) {
    %c0_i32 = arith.constant 0 : i32
    %c0_i32_0 = arith.constant 0 : i32
    %c0_i32_1 = arith.constant 0 : i32
    return %c0_i32, %c0_i32_0 : i32, i32
  }
  func.func @transform_3(%arg0: i32) -> (i32, i32) {
    %c1_i32 = arith.constant 1 : i32
    %c0_i32 = arith.constant 0 : i32
    return %arg0, %c1_i32 : i32, i32
  }
  func.func @transform_4(%arg0: i32) -> (i32, i32) {
    %c0_i32 = arith.constant 0 : i32
    %c0_i32_0 = arith.constant 0 : i32
    return %arg0, %c0_i32 : i32, i32
  }
  func.func @transform_5(%arg0: i32) -> (i32, i32) {
    %c0_i32 = arith.constant 0 : i32
    %c0_i32_0 = arith.constant 0 : i32
    return %arg0, %c0_i32 : i32, i32
  }
}

module attributes {stable_mosaic.version = 11 : i64} {
  func.func @_head_kernel(%arg0: i32, %arg1: memref<8x16x128xbf16, #tpu.memory_space<vmem>>, %arg2: memref<128x128xbf16, #tpu.memory_space<vmem>>, %arg3: memref<1x128xf32, #tpu.memory_space<vmem>>, %arg4: memref<8x128xf32, #tpu.memory_space<vmem>>) attributes {dimension_semantics = [#tpu.dimension_semantics<arbitrary>], iteration_bounds = array<i64: 1>, scalar_prefetch = 0 : i64, scratch_operands = 0 : i64, tpu.core_type = #tpu.core_type<tc>, window_params = [{pipeline_mode = #tpu.pipeline_mode<synchronous>, transform_indices = @transform_0, window_bounds = array<i64: 8, 16, 128>}, {pipeline_mode = #tpu.pipeline_mode<synchronous>, transform_indices = @transform_1, window_bounds = array<i64: 128, 128>}, {pipeline_mode = #tpu.pipeline_mode<synchronous>, transform_indices = @transform_2, window_bounds = array<i64: 1, 128>}, {pipeline_mode = #tpu.pipeline_mode<synchronous>, transform_indices = @transform_3, window_bounds = array<i64: 8, 128>}]} {
    %c0 = arith.constant 0 : index
    %c0_0 = arith.constant 0 : index
    %c0_1 = arith.constant 0 : index
    %0 = vector.load %arg1[%c0, %c0_0, %c0_1] : memref<8x16x128xbf16, #tpu.memory_space<vmem>>, vector<8x16x128xbf16>
    %1 = arith.extf %0 : vector<8x16x128xbf16> to vector<8x16x128xf32>
    %cst = arith.constant dense<0.000000e+00> : vector<8x128xf32>
    %2 = vector.multi_reduction <add>, %1, %cst [1] : vector<8x16x128xf32> to vector<8x128xf32>
    %cst_2 = arith.constant 1.600000e+01 : f32
    %3 = vector.broadcast %cst_2 : f32 to vector<8x128xf32>
    %4 = arith.divf %2, %3 : vector<8x128xf32>
    %5 = arith.truncf %4 : vector<8x128xf32> to vector<8x128xbf16>
    %c0_3 = arith.constant 0 : index
    %c0_4 = arith.constant 0 : index
    %6 = vector.load %arg2[%c0_3, %c0_4] : memref<128x128xbf16, #tpu.memory_space<vmem>>, vector<128x128xbf16>
    %cst_5 = arith.constant dense<0.000000e+00> : vector<8x128xf32>
    %7 = tpu.matmul %5, %6, %cst_5 {dimension_numbers = #tpu.dot_dimension_numbers<[1], [0], [0], [1], [0, 0, 1, 1], [], []>} : vector<8x128xbf16>, vector<128x128xbf16>, vector<8x128xf32> -> vector<8x128xf32>
    %c0_6 = arith.constant 0 : index
    %c0_7 = arith.constant 0 : index
    %8 = vector.load %arg3[%c0_6, %c0_7] : memref<1x128xf32, #tpu.memory_space<vmem>>, vector<1x128xf32>
    %9 = vector.broadcast %8 : vector<1x128xf32> to vector<8x128xf32>
    %10 = arith.addf %7, %9 : vector<8x128xf32>
    %c0_8 = arith.constant 0 : index
    %c0_9 = arith.constant 0 : index
    %11 = vector.load %arg4[%c0_8, %c0_9] : memref<8x128xf32, #tpu.memory_space<vmem>>, vector<8x128xf32>
    tpu.vector_store %arg4[%c0_8, %c0_9], %10 {strides = array<i32>} : memref<8x128xf32, #tpu.memory_space<vmem>>, vector<8x128xf32>,
    return
  }
  func.func @transform_0(%arg0: i32) -> (i32, i32, i32) {
    %c0_i32 = arith.constant 0 : i32
    %c0_i32_0 = arith.constant 0 : i32
    %c0_i32_1 = arith.constant 0 : i32
    %c0_i32_2 = arith.constant 0 : i32
    return %c0_i32, %c0_i32_0, %c0_i32_1 : i32, i32, i32
  }
  func.func @transform_1(%arg0: i32) -> (i32, i32) {
    %c0_i32 = arith.constant 0 : i32
    %c0_i32_0 = arith.constant 0 : i32
    %c0_i32_1 = arith.constant 0 : i32
    return %c0_i32, %c0_i32_0 : i32, i32
  }
  func.func @transform_2(%arg0: i32) -> (i32, i32) {
    %c0_i32 = arith.constant 0 : i32
    %c0_i32_0 = arith.constant 0 : i32
    %c0_i32_1 = arith.constant 0 : i32
    return %c0_i32, %c0_i32_0 : i32, i32
  }
  func.func @transform_3(%arg0: i32) -> (i32, i32) {
    %c0_i32 = arith.constant 0 : i32
    %c0_i32_0 = arith.constant 0 : i32
    %c0_i32_1 = arith.constant 0 : i32
    return %c0_i32, %c0_i32_0 : i32, i32
  }
}

</mosaic_0001>

<bundles_post_ra>
// kernel: _lambda_.8
= control target key start
LH: loop header
LB: loop body
LE: loop exit
PB: predicated region body
PF: predicated region fallthrough
CT: control target
= control target key end

     0   :  { %s551_s9 = smov 0   ;;  %s599_s0 = inlined_call_operand.vmem [shape: bf16[512,32], index: 0, kind: input, shape index: {}]   ;;  %s600_s1 = inlined_call_operand.vmem [shape: bf16[32,128], index: 1, kind: input, shape index: {}]   ;;  %s601_s2 = inlined_call_operand.vmem [shape: bf16[512,128], index: 2, kind: output, shape index: {}]  }
   0x1 LB: > { %s398_s10 = sadd.s32 4294967295, %s534_s9   ;;  %p402_p0 = scmp.ge.s32.totalorder %s534_s9, 1  ;;  %s534_s9 = sphi %s551_s9, %s12_s9  }
   0x2   : > { %p113_p1 = scmp.lt.s32.totalorder %s534_s9, 5 }
   0x4   : > { %p114_p2 = pnand %p402_p0, %p113_p1 }
   0x5   : > { %s403_s13 = sshll.u32 (!%p114_p2), %s398_s10, 4 }
   0x6   : > { %117 = sbr.rel (%p114_p2) target bundleno = 182 (0xb6), region = 28  ;;  %p136_p3 = scmp.lt.s32.totalorder (!%p114_p2), %s403_s13, 63 }
   0xb   : > { %v466_v0 = vld [vmem:[%s600_s1 + $0x8] sm:$0xff]  ;;  %v465_v1 = vld [vmem:[%s600_s1] sm:$0xff]  ;;  %s603_s13 = smov (!%p136_p3, %s403_s13), 63  ;;  %vm220_vm0 = vcmask 261120  }
   0xc   : > { %251 = vmatpush.bf16.msra.mxu0 %v466_v0  ;;  %514 = vmatpush.bf16.msra.mxu1 %v466_v0  ;;  %s404_s16 = sshll.u32 %s603_s13, 2 }
   0xd   : > { %515 = vmatpush.bf16.msra.mxu2 %v466_v0  ;;  %516 = vmatpush.bf16.msra.mxu3 %v466_v0  ;;  %s139_s19 = scalar_lea.vmem %s599_s0, %s404_s16  ;;  %s586_s22 = scalar_lea.vmem %s601_s2, %s404_s16 }
   0xe   : > { %v457_v2 = vld [vmem:[%s139_s19] sm:$0xff]  ;;  %v459_v3 = vld [vmem:[%s139_s19 + $0x10] sm:$0xff]  ;;  %v458_v6 = vld [vmem:[%s139_s19 + $0x8] sm:$0xff] }
   0xf   : > { %v461_v4 = vld [vmem:[%s139_s19 + $0x20] sm:$0xff]  ;;  %v463_v5 = vld [vmem:[%s139_s19 + $0x30] sm:$0xff]  ;;  %v460_v7 = vld [vmem:[%s139_s19 + $0x18] sm:$0xff] }
  0x10   : > { %252 = vmatpush.bf16.msra.mxu0 %v465_v1  ;;  %517 = vmatpush.bf16.msra.mxu1 %v465_v1  ;;  %v462_v8 = vld [vmem:[%s139_s19 + $0x28] sm:$0xff]  ;;  %v464_v9 = vld [vmem:[%s139_s19 + $0x38] sm:$0xff] }
  0x11   : > { %518 = vmatpush.bf16.msra.mxu2 %v465_v1  ;;  %519 = vmatpush.bf16.msra.mxu3 %v465_v1 }
  0x13   : > { %447 = vmatmul.msk.bf16.vlgmr.msra.gmra.mxu0 %vm220_vm0, %v457_v2  ;;  %449 = vmatmul.msk.bf16.vlgmr.msra.gmra.mxu1 %vm220_vm0, %v459_v3 }
  0x14   : > { %451 = vmatmul.msk.bf16.vlgmr.msra.gmra.mxu2 %vm220_vm0, %v461_v4  ;;  %453 = vmatmul.msk.bf16.vlgmr.msra.gmra.mxu3 %vm220_vm0, %v463_v5 }
  0x23   : > { %448 = vmatmul.msk.bf16.gmra.mxu0 %vm220_vm0, %v458_v6  ;;  %450 = vmatmul.msk.bf16.gmra.mxu1 %vm220_vm0, %v460_v7 }
  0x24   : > { %452 = vmatmul.msk.bf16.gmra.mxu2 %vm220_vm0, %v462_v8  ;;  %454 = vmatmul.msk.bf16.gmra.mxu3 %vm220_vm0, %v464_v9 }
  0x90   : > { %v254_v10 = vpop.f32.mrf.mxu0  ;;  %v264_v11 = vpop.f32.mrf.mxu1 }
  0x91   : > { %v294_v16 = vmax.f32 %v254_v10, 0.0  ;;  %v298_v17 = vmax.f32 %v264_v11, 0.0 }
  0x97   : > { %v274_v12 = vpop.f32.mrf.mxu2  ;;  %v284_v13 = vpop.f32.mrf.mxu3 }
  0x98   : > { %v256_v14 = vpop.f32.mrf.mxu0  ;;  %v266_v15 = vpop.f32.mrf.mxu1  ;;  %v302_v24 = vmax.f32 %v274_v12, 0.0  ;;  %v306_v25 = vmax.f32 %v284_v13, 0.0 }
  0x99   : > { %v295_v18 = vmax.f32 %v256_v14, 0.0  ;;  %v299_v19 = vmax.f32 %v266_v15, 0.0 }
  0x9b   : > { %v470_v20 = vpack.c.bf16 %v295_v18, %v294_v16  ;;  %v480_v21 = vpack.c.bf16 %v299_v19, %v298_v17 }
  0x9d   : > { %471 = vst [vmem:[%s586_s22] sm:$0xff] %v470_v20  }
  0x9e   : > { %508 = vst [vmem:[%s586_s22 + $0x10] sm:$0xff] %v480_v21  }
  0x9f   : > { %v276_v22 = vpop.f32.mrf.mxu2  ;;  %v286_v23 = vpop.f32.mrf.mxu3 }
  0xa0   : > { %v303_v26 = vmax.f32 %v276_v22, 0.0  ;;  %v307_v27 = vmax.f32 %v286_v23, 0.0  ;;  %v259_v28 = vpop.f32.mrf.mxu0  ;;  %v269_v29 = vpop.f32.mrf.mxu1 }
  0xa1   : > { %v296_v36 = vmax.f32 %v259_v28, 0.0  ;;  %v300_v37 = vmax.f32 %v269_v29, 0.0 }
  0xa2   : > { %v490_v30 = vpack.c.bf16 %v303_v26, %v302_v24  ;;  %v500_v31 = vpack.c.bf16 %v307_v27, %v306_v25 }
  0xa4   : > { %510 = vst [vmem:[%s586_s22 + $0x20] sm:$0xff] %v490_v30  }
  0xa5   : > { %512 = vst [vmem:[%s586_s22 + $0x30] sm:$0xff] %v500_v31  }
  0xa7   : > { %v279_v32 = vpop.f32.mrf.mxu2  ;;  %v289_v33 = vpop.f32.mrf.mxu3 }
  0xa8   : > { %v261_v34 = vpop.f32.mrf.mxu0  ;;  %v271_v35 = vpop.f32.mrf.mxu1  ;;  %v304_v44 = vmax.f32 %v279_v32, 0.0  ;;  %v308_v45 = vmax.f32 %v289_v33, 0.0 }
  0xa9   : > { %v297_v38 = vmax.f32 %v261_v34, 0.0  ;;  %v301_v39 = vmax.f32 %v271_v35, 0.0 }
  0xab   : > { %v475_v40 = vpack.c.bf16 %v297_v38, %v296_v36  ;;  %v485_v41 = vpack.c.bf16 %v301_v39, %v300_v37 }
  0xad   : > { %507 = vst [vmem:[%s586_s22 + $0x8] sm:$0xff] %v475_v40  }
  0xae   : > { %509 = vst [vmem:[%s586_s22 + $0x18] sm:$0xff] %v485_v41  }
  0xaf   : > { %v281_v42 = vpop.f32.mrf.mxu2  ;;  %v291_v43 = vpop.f32.mrf.mxu3 }
  0xb0   : > { %v305_v46 = vmax.f32 %v281_v42, 0.0  ;;  %v309_v47 = vmax.f32 %v291_v43, 0.0 }
  0xb2   : > { %v495_v48 = vpack.c.bf16 %v305_v46, %v304_v44  ;;  %v505_v49 = vpack.c.bf16 %v309_v47, %v308_v45 }
  0xb4   : > { %511 = vst [vmem:[%s586_s22 + $0x28] sm:$0xff] %v495_v48  }
  0xb5   : > { %513 = vst [vmem:[%s586_s22 + $0x38] sm:$0xff] %v505_v49  }
  0xb6 PF: > { %s12_s9 = sadd.s32 1, %s534_s9  }
  0xb7   : > { %p9_p4 = scmp.ge.s32.totalorder %s12_s9, 6  }
  0xb9   :  { %11 = sbr.rel (!%p9_p4) target bundleno = 1 (0x1), region = 58 }

// kernel: _lambda_.9
= control target key start
LH: loop header
LB: loop body
LE: loop exit
PB: predicated region body
PF: predicated region fallthrough
CT: control target
= control target key end

     0   :  { %s999_s15 = smov 0   ;;  %s1157_s0 = inlined_call_operand.vmem [shape: bf16[512,144], index: 0, kind: input, shape index: {}]   ;;  %s1158_s1 = inlined_call_operand.vmem [shape: bf16[144,128], index: 1, kind: input, shape index: {}]   ;;  %s1159_s2 = inlined_call_operand.vmem [shape: f32[2,128], index: 2, kind: input, shape index: {}]   ;;  %s1160_s3 = inlined_call_operand.vmem [shape: bf16[512,128], index: 3, kind: output, shape index: {0}]   ;;  %s1161_s4 = inlined_call_operand.vmem [shape: bf16[512,128], index: 4, kind: output, shape index: {1}]  }
   0x1 LB: > { %s707_s16 = sadd.s32 4294967295, %s972_s15   ;;  %p711_p0 = scmp.ge.s32.totalorder %s972_s15, 1  ;;  %s972_s15 = sphi %s999_s15, %s15_s15  }
   0x2   : > { %p167_p1 = scmp.lt.s32.totalorder %s972_s15, 5 }
   0x4   : > { %p168_p2 = pnand %p711_p0, %p167_p1 }
   0x5   : > { %s712_s21 = sshll.u32 (!%p168_p2), %s707_s16, 4 }
   0x6   : > { %171 = sbr.rel (%p168_p2) target bundleno = 242 (0xf2), region = 32  ;;  %p200_p3 = scmp.lt.s32.totalorder (!%p168_p2), %s712_s21, 63 }
   0xb   : > { %v853_v0 = vld [vmem:[%s1158_s1 + $0x38] sm:$0xff]  ;;  %v854_v1 = vld [vmem:[%s1158_s1 + $0x40] sm:$0xff]  ;;  %v852_v2 = vld [vmem:[%s1158_s1 + $0x30] sm:$0xff]  ;;  %s1163_s21 = smov (!%p200_p3, %s712_s21), 63  ;;  %vm379_vm0 = vcmask 130048  }
   0xc   : > { %404 = vmatpush.bf16.msra.mxu0 %v853_v0  ;;  %949 = vmatpush.bf16.msra.mxu2 %v853_v0  ;;  %s829_s24 = sshll.u32 %s1163_s21, 3  ;;  %v851_v3 = vld [vmem:[%s1158_s1 + $0x28] sm:$0xff]  ;;  %v850_v7 = vld [vmem:[%s1158_s1 + $0x20] sm:$0xff]  ;;  %v849_v11 = vld [vmem:[%s1158_s1 + $0x18] sm:$0xff]  ;;  %s716_s17 = sshll.u32 %s1163_s21, 2 }
   0xd   : > { %460 = vmatpush.bf16.msra.mxu1 %v854_v1  ;;  %957 = vmatpush.bf16.msra.mxu3 %v854_v1  ;;  %s1022_s27 = scalar_lea.vmem %s1157_s0, %s829_s24  ;;  %v848_v12 = vld [vmem:[%s1158_s1 + $0x10] sm:$0xff]  ;;  %v847_v16 = vld [vmem:[%s1158_s1 + $0x8] sm:$0xff]  ;;  %v846_v20 = vld [vmem:[%s1158_s1] sm:$0xff]  ;;  %s1096_s20 = scalar_lea.vmem %s1161_s4, %s716_s17 }
   0xe   : > { %v830_v4 = vld [vmem:[%s1022_s27 + $0x4] sm:$0xf]  ;;  %v723_v5 = vld [vmem:[%s1022_s27 + $0x8] sm:$0xf0]  ;;  %v840_v8 = vld [vmem:[%s1022_s27 + $0x54] sm:$0xf]  ;;  %s1107_s23 = scalar_lea.vmem %s1160_s3, %s716_s17 }
   0xf   : > { %v726_v6 = vor.u32 %v830_v4, %v723_v5  ;;  %v763_v9 = vld [vmem:[%s1022_s27 + $0x58] sm:$0xf0]  ;;  %v832_v13 = vld [vmem:[%s1022_s27 + $0x14] sm:$0xf]  ;;  %v842_v17 = vld [vmem:[%s1022_s27 + $0x64] sm:$0xf] }
  0x10   : > { %405 = vmatpush.bf16.msra.mxu0 %v852_v2  ;;  %950 = vmatpush.bf16.msra.mxu2 %v852_v2  ;;  %v766_v10 = vor.u32 %v840_v8, %v763_v9  ;;  %v731_v14 = vld [vmem:[%s1022_s27 + $0x18] sm:$0xf0]  ;;  %v771_v18 = vld [vmem:[%s1022_s27 + $0x68] sm:$0xf0]  ;;  %v721_v21 = vld [vmem:[%s1022_s27] sm:$0xf] }
  0x11   : > { %819 = vmatmul.msk.bf16.vlgmr.msra.gmra.mxu1 %vm379_vm0, %v726_v6  ;;  %v734_v15 = vor.u32 %v832_v13, %v731_v14  ;;  %v774_v19 = vor.u32 %v842_v17, %v771_v18  ;;  %v831_v22 = vld [vmem:[%s1022_s27 + $0x4] sm:$0xf0]  ;;  %v753_v23 = vld [vmem:[%s1022_s27 + $0x40] sm:$0xf]  ;;  %v834_v27 = vld [vmem:[%s1022_s27 + $0x24] sm:$0xf] }
  0x12   : > { %824 = vmatmul.msk.bf16.vlgmr.msra.gmra.mxu3 %vm379_vm0, %v766_v10  ;;  %v839_v24 = vld [vmem:[%s1022_s27 + $0x44] sm:$0xf0]  ;;  %v722_v25 = vor.u32 %v831_v22, %v721_v21  ;;  %v739_v28 = vld [vmem:[%s1022_s27 + $0x28] sm:$0xf0]  ;;  %v844_v30 = vld [vmem:[%s1022_s27 + $0x74] sm:$0xf] }
  0x13   : > { %v754_v26 = vor.u32 %v839_v24, %v753_v23  ;;  %v742_v29 = vor.u32 %v834_v27, %v739_v28  ;;  %v779_v31 = vld [vmem:[%s1022_s27 + $0x78] sm:$0xf0]  ;;  %v729_v33 = vld [vmem:[%s1022_s27 + $0x10] sm:$0xf]  ;;  %v833_v34 = vld [vmem:[%s1022_s27 + $0x14] sm:$0xf0] }
  0x14   : > { %406 = vmatpush.bf16.msra.mxu0 %v851_v3  ;;  %951 = vmatpush.bf16.msra.mxu2 %v851_v3  ;;  %v782_v32 = vor.u32 %v844_v30, %v779_v31  ;;  %v761_v35 = vld [vmem:[%s1022_s27 + $0x50] sm:$0xf]  ;;  %v841_v36 = vld [vmem:[%s1022_s27 + $0x54] sm:$0xf0]  ;;  %v730_v37 = vor.u32 %v833_v34, %v729_v33  ;;  %v836_v39 = vld [vmem:[%s1022_s27 + $0x34] sm:$0xf] }
  0x15   : > { %v762_v38 = vor.u32 %v841_v36, %v761_v35  ;;  %v747_v40 = vld [vmem:[%s1022_s27 + $0x38] sm:$0xf0]  ;;  %v737_v42 = vld [vmem:[%s1022_s27 + $0x20] sm:$0xf]  ;;  %v835_v43 = vld [vmem:[%s1022_s27 + $0x24] sm:$0xf0] }
  0x16   : > { %v750_v41 = vor.u32 %v836_v39, %v747_v40  ;;  %v769_v44 = vld [vmem:[%s1022_s27 + $0x60] sm:$0xf]  ;;  %v843_v45 = vld [vmem:[%s1022_s27 + $0x64] sm:$0xf0]  ;;  %v738_v46 = vor.u32 %v835_v43, %v737_v42  ;;  %v838_v48 = vld [vmem:[%s1022_s27 + $0x44] sm:$0xf] }
  0x17   : > { %v770_v47 = vor.u32 %v843_v45, %v769_v44  ;;  %v755_v49 = vld [vmem:[%s1022_s27 + $0x48] sm:$0xf0]  ;;  %v745_v51 = vld [vmem:[%s1022_s27 + $0x30] sm:$0xf]  ;;  %v837_v52 = vld [vmem:[%s1022_s27 + $0x34] sm:$0xf0] }
  0x18   : > { %407 = vmatpush.bf16.msra.mxu0 %v850_v7  ;;  %952 = vmatpush.bf16.msra.mxu2 %v850_v7  ;;  %v758_v50 = vor.u32 %v838_v48, %v755_v49  ;;  %v777_v53 = vld [vmem:[%s1022_s27 + $0x70] sm:$0xf]  ;;  %v845_v54 = vld [vmem:[%s1022_s27 + $0x74] sm:$0xf0]  ;;  %v746_v55 = vor.u32 %v837_v52, %v745_v51  ;;  %v534_v61 = vld [vmem:[%s1159_s2] sm:$0x3] }
  0x19   : > { %v778_v56 = vor.u32 %v845_v54, %v777_v53  ;;  %v1085_v0 = vperm.slane %v534_v61, 0  ;;  %v1088_v2 = vperm.slane %v534_v61, 1 }
  0x1c   : > { %408 = vmatpush.bf16.msra.mxu0 %v849_v11  ;;  %953 = vmatpush.bf16.msra.mxu2 %v849_v11 }
  0x20   : > { %409 = vmatpush.bf16.msra.mxu0 %v848_v12  ;;  %954 = vmatpush.bf16.msra.mxu2 %v848_v12 }
  0x21   : > { %820 = vmatmul.msk.bf16.gmra.mxu1 %vm379_vm0, %v734_v15 }
  0x22   : > { %825 = vmatmul.msk.bf16.gmra.mxu3 %vm379_vm0, %v774_v19 }
  0x24   : > { %410 = vmatpush.bf16.msra.mxu0 %v847_v16  ;;  %955 = vmatpush.bf16.msra.mxu2 %v847_v16 }
  0x28   : > { %411 = vmatpush.bf16.msra.mxu0 %v846_v20  ;;  %956 = vmatpush.bf16.msra.mxu2 %v846_v20 }
  0x2b   : > { %412 = vmatmul.bf16.vlgmr.msra.gmra.mxu0 %v722_v25  ;;  %432 = vmatmul.bf16.vlgmr.msra.gmra.mxu2 %v754_v26 }
  0x31   : > { %821 = vmatmul.msk.bf16.gmra.mxu1 %vm379_vm0, %v742_v29 }
  0x32   : > { %826 = vmatmul.msk.bf16.gmra.mxu3 %vm379_vm0, %v782_v32 }
  0x3b   : > { %417 = vmatmul.bf16.gmra.mxu0 %v730_v37  ;;  %437 = vmatmul.bf16.gmra.mxu2 %v762_v38 }
  0x41   : > { %822 = vmatmul.msk.bf16.gmra.mxu1 %vm379_vm0, %v750_v41 }
  0x4b   : > { %422 = vmatmul.bf16.gmra.mxu0 %v738_v46  ;;  %442 = vmatmul.bf16.gmra.mxu2 %v770_v47 }
  0x51   : > { %823 = vmatmul.msk.bf16.gmra.mxu1 %vm379_vm0, %v758_v50 }
  0x5b   : > { %427 = vmatmul.bf16.gmra.mxu0 %v746_v55  ;;  %447 = vmatmul.bf16.gmra.mxu2 %v778_v56 }
  0x8e   : > { %v462_v57 = vpop.f32.mrf.mxu1 }
  0x95   : > { %v487_v11 = vpop.f32.mrf.mxu3 }
  0x96   : > { %v464_v58 = vpop.f32.mrf.mxu1 }
  0x9d   : > { %v489_v21 = vpop.f32.mrf.mxu3 }
  0x9e   : > { %v467_v59 = vpop.f32.mrf.mxu1 }
  0xa5   : > { %v492_v37 = vpop.f32.mrf.mxu3 }
  0xa6   : > { %v469_v62 = vpop.f32.mrf.mxu1 }
  0xa8   : > { %v413_v60 = vpop.f32.mrf.mxu0 }
  0xa9   : > { %v463_v63 = vadd.f32 %v462_v57, %v413_v60 }
  0xab   : > { %v536_v1 = vmul.f32 %v1085_v0, %v463_v63 }
  0xad   : > { %v553_v7 = vadd.f32 %v1088_v2, %v536_v1  ;;  %v494_v54 = vpop.f32.mrf.mxu3 }
  0xae   : > { %v1090_v3 = vpop.f32.mrf.mxu2  ;;  %v472_v6 = vpop.f32.mrf.mxu1 }
  0xaf   : > { %v569_v12 = vmax.f32 %v553_v7, 0.0 }
  0xb0   : > { %v415_v4 = vpop.f32.mrf.mxu0 }
  0xb1   : > { %v465_v5 = vadd.f32 %v464_v58, %v415_v4 }
  0xb3   : > { %v858_v8 = vpack.c.bf16 %v465_v5, %v463_v63  ;;  %v537_v9 = vmul.f32 %v1085_v0, %v465_v5 }
  0xb5   : > { %859 = vst [vmem:[%s1096_s20] sm:$0xff] %v858_v8   ;;  %v554_v10 = vadd.f32 %v1088_v2, %v537_v9 }
  0xb6   : > { %v1102_v14 = vpop.f32.mrf.mxu2  ;;  %v474_v17 = vpop.f32.mrf.mxu1 }
  0xb7   : > { %v570_v13 = vmax.f32 %v554_v10, 0.0 }
  0xb8   : > { %v418_v15 = vpop.f32.mrf.mxu0 }
  0xb9   : > { %v898_v16 = vpack.c.bf16 %v570_v13, %v569_v12  ;;  %v468_v18 = vadd.f32 %v467_v59, %v418_v15 }
  0xbb   : > { %899 = vst [vmem:[%s1107_s23] sm:$0xff] %v898_v16   ;;  %v538_v19 = vmul.f32 %v1085_v0, %v468_v18  ;;  %v497_v16 = vpop.f32.mrf.mxu3 }
  0xbd   : > { %v555_v26 = vadd.f32 %v1088_v2, %v538_v19 }
  0xbe   : > { %v438_v20 = vpop.f32.mrf.mxu2  ;;  %v477_v24 = vpop.f32.mrf.mxu1 }
  0xbf   : > { %v488_v25 = vadd.f32 %v487_v11, %v438_v20  ;;  %v571_v31 = vmax.f32 %v555_v26, 0.0 }
  0xc0   : > { %v420_v22 = vpop.f32.mrf.mxu0 }
  0xc1   : > { %v470_v23 = vadd.f32 %v469_v62, %v420_v22  ;;  %v546_v30 = vmul.f32 %v1085_v0, %v488_v25 }
  0xc3   : > { %v863_v27 = vpack.c.bf16 %v470_v23, %v468_v18  ;;  %v539_v28 = vmul.f32 %v1085_v0, %v470_v23  ;;  %v563_v39 = vadd.f32 %v1088_v2, %v546_v30 }
  0xc5   : > { %935 = vst [vmem:[%s1096_s20 + $0x8] sm:$0xff] %v863_v27   ;;  %v556_v29 = vadd.f32 %v1088_v2, %v539_v28  ;;  %v579_v44 = vmax.f32 %v563_v39, 0.0 }
  0xc6   : > { %v440_v33 = vpop.f32.mrf.mxu2  ;;  %v479_v38 = vpop.f32.mrf.mxu1 }
  0xc7   : > { %v572_v32 = vmax.f32 %v556_v29, 0.0  ;;  %v490_v34 = vadd.f32 %v489_v21, %v440_v33 }
  0xc8   : > { %v423_v35 = vpop.f32.mrf.mxu0 }
  0xc9   : > { %v903_v36 = vpack.c.bf16 %v572_v32, %v571_v31  ;;  %v883_v40 = vpack.c.bf16 %v490_v34, %v488_v25  ;;  %v547_v41 = vmul.f32 %v1085_v0, %v490_v34  ;;  %v473_v42 = vadd.f32 %v472_v6, %v423_v35  ;;  %v499_v34 = vpop.f32.mrf.mxu3 }
  0xcb   : > { %942 = vst [vmem:[%s1107_s23 + $0x8] sm:$0xff] %v903_v36   ;;  %v564_v43 = vadd.f32 %v1088_v2, %v547_v41  ;;  %v540_v46 = vmul.f32 %v1085_v0, %v473_v42 }
  0xcc   : > { %939 = vst [vmem:[%s1096_s20 + $0x28] sm:$0xff] %v883_v40  }
  0xcd   : > { %v580_v45 = vmax.f32 %v564_v43, 0.0  ;;  %v557_v53 = vadd.f32 %v1088_v2, %v540_v46 }
  0xce   : > { %v443_v47 = vpop.f32.mrf.mxu2  ;;  %v482_v51 = vpop.f32.mrf.mxu1 }
  0xcf   : > { %v923_v48 = vpack.c.bf16 %v580_v45, %v579_v44  ;;  %v493_v52 = vadd.f32 %v492_v37, %v443_v47  ;;  %v483_v57 = vadd.f32 %v482_v51, %v1090_v3  ;;  %v573_v60 = vmax.f32 %v557_v53, 0.0 }
  0xd0   : > { %v425_v49 = vpop.f32.mrf.mxu0 }
  0xd1   : > { %v475_v50 = vadd.f32 %v474_v17, %v425_v49  ;;  %946 = vst [vmem:[%s1107_s23 + $0x28] sm:$0xff] %v923_v48   ;;  %v548_v59 = vmul.f32 %v1085_v0, %v493_v52  ;;  %v544_v63 = vmul.f32 %v1085_v0, %v483_v57 }
  0xd3   : > { %v868_v55 = vpack.c.bf16 %v475_v50, %v473_v42  ;;  %v541_v56 = vmul.f32 %v1085_v0, %v475_v50  ;;  %v565_v7 = vadd.f32 %v1088_v2, %v548_v59  ;;  %v561_v11 = vadd.f32 %v1088_v2, %v544_v63 }
  0xd5   : > { %936 = vst [vmem:[%s1096_s20 + $0x10] sm:$0xff] %v868_v55   ;;  %v558_v58 = vadd.f32 %v1088_v2, %v541_v56  ;;  %v581_v17 = vmax.f32 %v565_v7, 0.0  ;;  %v577_v21 = vmax.f32 %v561_v11, 0.0 }
  0xd6   : > { %v445_v62 = vpop.f32.mrf.mxu2  ;;  %v484_v6 = vpop.f32.mrf.mxu1 }
  0xd7   : > { %v574_v61 = vmax.f32 %v558_v58, 0.0  ;;  %v495_v1 = vadd.f32 %v494_v54, %v445_v62  ;;  %v485_v9 = vadd.f32 %v484_v6, %v1102_v14 }
  0xd8   : > { %v428_v4 = vpop.f32.mrf.mxu0 }
  0xd9   : > { %v908_v5 = vpack.c.bf16 %v574_v61, %v573_v60  ;;  %v888_v3 = vpack.c.bf16 %v495_v1, %v493_v52  ;;  %v549_v8 = vmul.f32 %v1085_v0, %v495_v1  ;;  %v478_v10 = vadd.f32 %v477_v24, %v428_v4 }
  0xda   : > { %v878_v13 = vpack.c.bf16 %v485_v9, %v483_v57  ;;  %v545_v15 = vmul.f32 %v1085_v0, %v485_v9 }
  0xdb   : > { %943 = vst [vmem:[%s1107_s23 + $0x10] sm:$0xff] %v908_v5   ;;  %v566_v12 = vadd.f32 %v1088_v2, %v549_v8  ;;  %v542_v14 = vmul.f32 %v1085_v0, %v478_v10 }
  0xdc   : > { %940 = vst [vmem:[%s1096_s20 + $0x30] sm:$0xff] %v888_v3   ;;  %v562_v19 = vadd.f32 %v1088_v2, %v545_v15 }
  0xdd   : > { %v582_v18 = vmax.f32 %v566_v12, 0.0  ;;  %938 = vst [vmem:[%s1096_s20 + $0x20] sm:$0xff] %v878_v13   ;;  %v559_v28 = vadd.f32 %v1088_v2, %v542_v14 }
  0xde   : > { %v448_v20 = vpop.f32.mrf.mxu2  ;;  %v578_v23 = vmax.f32 %v562_v19, 0.0 }
  0xdf   : > { %v928_v22 = vpack.c.bf16 %v582_v18, %v581_v17  ;;  %v498_v27 = vadd.f32 %v497_v16, %v448_v20  ;;  %v575_v33 = vmax.f32 %v559_v28, 0.0 }
  0xe0   : > { %v430_v24 = vpop.f32.mrf.mxu0  ;;  %v918_v26 = vpack.c.bf16 %v578_v23, %v577_v21 }
  0xe1   : > { %v480_v25 = vadd.f32 %v479_v38, %v430_v24  ;;  %947 = vst [vmem:[%s1107_s23 + $0x30] sm:$0xff] %v928_v22   ;;  %v550_v32 = vmul.f32 %v1085_v0, %v498_v27 }
  0xe2   : > { %945 = vst [vmem:[%s1107_s23 + $0x20] sm:$0xff] %v918_v26  }
  0xe3   : > { %v873_v29 = vpack.c.bf16 %v480_v25, %v478_v10  ;;  %v543_v30 = vmul.f32 %v1085_v0, %v480_v25  ;;  %v567_v39 = vadd.f32 %v1088_v2, %v550_v32 }
  0xe5   : > { %937 = vst [vmem:[%s1096_s20 + $0x18] sm:$0xff] %v873_v29   ;;  %v560_v31 = vadd.f32 %v1088_v2, %v543_v30  ;;  %v583_v43 = vmax.f32 %v567_v39, 0.0 }
  0xe6   : > { %v450_v36 = vpop.f32.mrf.mxu2 }
  0xe7   : > { %v576_v35 = vmax.f32 %v560_v31, 0.0  ;;  %v500_v37 = vadd.f32 %v499_v34, %v450_v36 }
  0xe9   : > { %v913_v38 = vpack.c.bf16 %v576_v35, %v575_v33  ;;  %v893_v40 = vpack.c.bf16 %v500_v37, %v498_v27  ;;  %v551_v41 = vmul.f32 %v1085_v0, %v500_v37 }
  0xeb   : > { %944 = vst [vmem:[%s1107_s23 + $0x18] sm:$0xff] %v913_v38   ;;  %v568_v42 = vadd.f32 %v1088_v2, %v551_v41 }
  0xec   : > { %941 = vst [vmem:[%s1096_s20 + $0x38] sm:$0xff] %v893_v40  }
  0xed   : > { %v584_v44 = vmax.f32 %v568_v42, 0.0 }
  0xef   : > { %v933_v45 = vpack.c.bf16 %v584_v44, %v583_v43 }
  0xf1   : > { %948 = vst [vmem:[%s1107_s23 + $0x38] sm:$0xff] %v933_v45  }
  0xf2 PF: > { %s15_s15 = sadd.s32 1, %s972_s15  }
  0xf3   : > { %p12_p4 = scmp.ge.s32.totalorder %s15_s15, 6  }
  0xf5   :  { %14 = sbr.rel (!%p12_p4) target bundleno = 1 (0x1), region = 74 }

// kernel: _lambda_.10
= control target key start
LH: loop header
LB: loop body
LE: loop exit
PB: predicated region body
PF: predicated region fallthrough
CT: control target
= control target key end

     0   :  { %s1154_s18 = smov 0   ;;  %s1336_s0 = inlined_call_operand.vmem [shape: bf16[512,144], index: 0, kind: input, shape index: {}]   ;;  %s1337_s1 = inlined_call_operand.vmem [shape: bf16[144,128], index: 1, kind: input, shape index: {}]   ;;  %s1338_s2 = inlined_call_operand.vmem [shape: f32[2,128], index: 2, kind: input, shape index: {}]   ;;  %s1339_s3 = inlined_call_operand.vmem [shape: bf16[512,128], index: 3, kind: input, shape index: {}]   ;;  %s1340_s4 = inlined_call_operand.vmem [shape: bf16[512,128], index: 4, kind: output, shape index: {0}]   ;;  %s1341_s5 = inlined_call_operand.vmem [shape: bf16[512,128], index: 5, kind: output, shape index: {1}]  }
   0x1 LB: > { %s816_s19 = sadd.s32 4294967295, %s1122_s18   ;;  %p820_p0 = scmp.ge.s32.totalorder %s1122_s18, 1  ;;  %s1122_s18 = sphi %s1154_s18, %s16_s18  }
   0x2   : > { %p203_p1 = scmp.lt.s32.totalorder %s1122_s18, 5 }
   0x4   : > { %p204_p2 = pnand %p820_p0, %p203_p1 }
   0x5   : > { %s821_s24 = sshll.u32 (!%p204_p2), %s816_s19, 4 }
   0x6   : > { %207 = sbr.rel (%p204_p2) target bundleno = 244 (0xf4), region = 36  ;;  %p243_p3 = scmp.lt.s32.totalorder (!%p204_p2), %s821_s24, 63 }
   0xb   : > { %v964_v0 = vld [vmem:[%s1337_s1 + $0x38] sm:$0xff]  ;;  %v965_v1 = vld [vmem:[%s1337_s1 + $0x40] sm:$0xff]  ;;  %v963_v2 = vld [vmem:[%s1337_s1 + $0x30] sm:$0xff]  ;;  %s1343_s24 = smov (!%p243_p3, %s821_s24), 63  ;;  %vm428_vm0 = vcmask 130048  }
   0xc   : > { %453 = vmatpush.bf16.msra.mxu0 %v964_v0  ;;  %1099 = vmatpush.bf16.msra.mxu2 %v964_v0  ;;  %s940_s27 = sshll.u32 %s1343_s24, 3  ;;  %v962_v3 = vld [vmem:[%s1337_s1 + $0x28] sm:$0xff]  ;;  %v961_v7 = vld [vmem:[%s1337_s1 + $0x20] sm:$0xff]  ;;  %v960_v11 = vld [vmem:[%s1337_s1 + $0x18] sm:$0xff]  ;;  %s1241_s21 = sshll.u32 %s1343_s24, 2 }
   0xd   : > { %509 = vmatpush.bf16.msra.mxu1 %v965_v1  ;;  %1107 = vmatpush.bf16.msra.mxu3 %v965_v1  ;;  %s1177_s30 = scalar_lea.vmem %s1336_s0, %s940_s27  ;;  %v959_v12 = vld [vmem:[%s1337_s1 + $0x10] sm:$0xff]  ;;  %v958_v16 = vld [vmem:[%s1337_s1 + $0x8] sm:$0xff]  ;;  %v957_v20 = vld [vmem:[%s1337_s1] sm:$0xff]  ;;  %s1249_s25 = scalar_lea.vmem %s1339_s3, %s1241_s21 }
   0xe   : > { %v941_v4 = vld [vmem:[%s1177_s30 + $0x4] sm:$0xf]  ;;  %v834_v5 = vld [vmem:[%s1177_s30 + $0x8] sm:$0xf0]  ;;  %v951_v8 = vld [vmem:[%s1177_s30 + $0x54] sm:$0xf]  ;;  %s1262_s27 = scalar_lea.vmem %s1341_s5, %s1241_s21 }
   0xf   : > { %v837_v6 = vor.u32 %v941_v4, %v834_v5  ;;  %v874_v9 = vld [vmem:[%s1177_s30 + $0x58] sm:$0xf0]  ;;  %v943_v13 = vld [vmem:[%s1177_s30 + $0x14] sm:$0xf]  ;;  %v953_v17 = vld [vmem:[%s1177_s30 + $0x64] sm:$0xf] }
  0x10   : > { %454 = vmatpush.bf16.msra.mxu0 %v963_v2  ;;  %1100 = vmatpush.bf16.msra.mxu2 %v963_v2  ;;  %v877_v10 = vor.u32 %v951_v8, %v874_v9  ;;  %v842_v14 = vld [vmem:[%s1177_s30 + $0x18] sm:$0xf0]  ;;  %v882_v18 = vld [vmem:[%s1177_s30 + $0x68] sm:$0xf0]  ;;  %v832_v21 = vld [vmem:[%s1177_s30] sm:$0xf] }
  0x11   : > { %930 = vmatmul.msk.bf16.vlgmr.msra.gmra.mxu1 %vm428_vm0, %v837_v6  ;;  %v845_v15 = vor.u32 %v943_v13, %v842_v14  ;;  %v885_v19 = vor.u32 %v953_v17, %v882_v18  ;;  %v942_v22 = vld [vmem:[%s1177_s30 + $0x4] sm:$0xf0]  ;;  %v864_v23 = vld [vmem:[%s1177_s30 + $0x40] sm:$0xf]  ;;  %v945_v27 = vld [vmem:[%s1177_s30 + $0x24] sm:$0xf] }
  0x12   : > { %935 = vmatmul.msk.bf16.vlgmr.msra.gmra.mxu3 %vm428_vm0, %v877_v10  ;;  %v950_v24 = vld [vmem:[%s1177_s30 + $0x44] sm:$0xf0]  ;;  %v833_v25 = vor.u32 %v942_v22, %v832_v21  ;;  %v850_v28 = vld [vmem:[%s1177_s30 + $0x28] sm:$0xf0]  ;;  %v955_v30 = vld [vmem:[%s1177_s30 + $0x74] sm:$0xf] }
  0x13   : > { %v865_v26 = vor.u32 %v950_v24, %v864_v23  ;;  %v853_v29 = vor.u32 %v945_v27, %v850_v28  ;;  %v890_v31 = vld [vmem:[%s1177_s30 + $0x78] sm:$0xf0]  ;;  %v840_v33 = vld [vmem:[%s1177_s30 + $0x10] sm:$0xf]  ;;  %v944_v34 = vld [vmem:[%s1177_s30 + $0x14] sm:$0xf0] }
  0x14   : > { %455 = vmatpush.bf16.msra.mxu0 %v962_v3  ;;  %1101 = vmatpush.bf16.msra.mxu2 %v962_v3  ;;  %v893_v32 = vor.u32 %v955_v30, %v890_v31  ;;  %v872_v35 = vld [vmem:[%s1177_s30 + $0x50] sm:$0xf]  ;;  %v952_v36 = vld [vmem:[%s1177_s30 + $0x54] sm:$0xf0]  ;;  %v841_v37 = vor.u32 %v944_v34, %v840_v33  ;;  %v947_v39 = vld [vmem:[%s1177_s30 + $0x34] sm:$0xf] }
  0x15   : > { %v873_v38 = vor.u32 %v952_v36, %v872_v35  ;;  %v858_v40 = vld [vmem:[%s1177_s30 + $0x38] sm:$0xf0]  ;;  %v848_v42 = vld [vmem:[%s1177_s30 + $0x20] sm:$0xf]  ;;  %v946_v43 = vld [vmem:[%s1177_s30 + $0x24] sm:$0xf0] }
  0x16   : > { %v861_v41 = vor.u32 %v947_v39, %v858_v40  ;;  %v880_v44 = vld [vmem:[%s1177_s30 + $0x60] sm:$0xf]  ;;  %v954_v45 = vld [vmem:[%s1177_s30 + $0x64] sm:$0xf0]  ;;  %v849_v46 = vor.u32 %v946_v43, %v848_v42  ;;  %v949_v48 = vld [vmem:[%s1177_s30 + $0x44] sm:$0xf] }
  0x17   : > { %v881_v47 = vor.u32 %v954_v45, %v880_v44  ;;  %v866_v49 = vld [vmem:[%s1177_s30 + $0x48] sm:$0xf0]  ;;  %v856_v51 = vld [vmem:[%s1177_s30 + $0x30] sm:$0xf]  ;;  %v948_v52 = vld [vmem:[%s1177_s30 + $0x34] sm:$0xf0] }
  0x18   : > { %456 = vmatpush.bf16.msra.mxu0 %v961_v7  ;;  %1102 = vmatpush.bf16.msra.mxu2 %v961_v7  ;;  %v869_v50 = vor.u32 %v949_v48, %v866_v49  ;;  %v888_v53 = vld [vmem:[%s1177_s30 + $0x70] sm:$0xf]  ;;  %v956_v54 = vld [vmem:[%s1177_s30 + $0x74] sm:$0xf0]  ;;  %v857_v55 = vor.u32 %v948_v52, %v856_v51  ;;  %v583_v60 = vld [vmem:[%s1338_s2] sm:$0x3]  ;;  %s1273_s30 = scalar_lea.vmem %s1340_s4, %s1241_s21 }
  0x19   : > { %v889_v56 = vor.u32 %v956_v54, %v888_v53  ;;  %v1243_v63 = vperm.slane %v583_v60, 0  ;;  %v1252_v2 = vperm.slane %v583_v60, 1  ;;  %v1007_v3 = vld [vmem:[%s1249_s25] sm:$0xff]   ;;  %v1089_v39 = vld [vmem:[%s1249_s25 + $0x28] sm:$0xff]   ;;  %v1086_v60 = vld [vmem:[%s1249_s25 + $0x10] sm:$0xff]  }
  0x1a   : > { %v1008_v7 = vunpack.c.l.bf16 %v1007_v3  ;;  %v1028_v44 = vunpack.c.l.bf16 %v1089_v39  ;;  %v1029_v54 = vunpack.c.h.bf16 %v1089_v39 }
  0x1c   : > { %457 = vmatpush.bf16.msra.mxu0 %v960_v11  ;;  %1103 = vmatpush.bf16.msra.mxu2 %v960_v11 }
  0x20   : > { %458 = vmatpush.bf16.msra.mxu0 %v959_v12  ;;  %1104 = vmatpush.bf16.msra.mxu2 %v959_v12  ;;  %v1009_v12 = vunpack.c.h.bf16 %v1007_v3 }
  0x21   : > { %931 = vmatmul.msk.bf16.gmra.mxu1 %vm428_vm0, %v845_v15 }
  0x22   : > { %936 = vmatmul.msk.bf16.gmra.mxu3 %vm428_vm0, %v885_v19 }
  0x24   : > { %459 = vmatpush.bf16.msra.mxu0 %v958_v16  ;;  %1105 = vmatpush.bf16.msra.mxu2 %v958_v16 }
  0x28   : > { %460 = vmatpush.bf16.msra.mxu0 %v957_v20  ;;  %1106 = vmatpush.bf16.msra.mxu2 %v957_v20 }
  0x2b   : > { %461 = vmatmul.bf16.vlgmr.msra.gmra.mxu0 %v833_v25  ;;  %481 = vmatmul.bf16.vlgmr.msra.gmra.mxu2 %v865_v26  ;;  %v1085_v25 = vld [vmem:[%s1249_s25 + $0x8] sm:$0xff]  }
  0x2c   : > { %v1012_v31 = vunpack.c.l.bf16 %v1085_v25  ;;  %v1013_v36 = vunpack.c.h.bf16 %v1085_v25 }
  0x31   : > { %932 = vmatmul.msk.bf16.gmra.mxu1 %vm428_vm0, %v853_v29 }
  0x32   : > { %937 = vmatmul.msk.bf16.gmra.mxu3 %vm428_vm0, %v893_v32 }
  0x3b   : > { %466 = vmatmul.bf16.gmra.mxu0 %v841_v37  ;;  %486 = vmatmul.bf16.gmra.mxu2 %v873_v38 }
  0x41   : > { %933 = vmatmul.msk.bf16.gmra.mxu1 %vm428_vm0, %v861_v41 }
  0x4b   : > { %471 = vmatmul.bf16.gmra.mxu0 %v849_v46  ;;  %491 = vmatmul.bf16.gmra.mxu2 %v881_v47 }
  0x51   : > { %934 = vmatmul.msk.bf16.gmra.mxu1 %vm428_vm0, %v869_v50 }
  0x5b   : > { %476 = vmatmul.bf16.gmra.mxu0 %v857_v55  ;;  %496 = vmatmul.bf16.gmra.mxu2 %v889_v56 }
  0x8e   : > { %v511_v57 = vpop.f32.mrf.mxu1 }
  0x95   : > { %v536_v15 = vpop.f32.mrf.mxu3 }
  0x96   : > { %v513_v58 = vpop.f32.mrf.mxu1 }
  0x9d   : > { %v538_v27 = vpop.f32.mrf.mxu3 }
  0x9e   : > { %v516_v59 = vpop.f32.mrf.mxu1 }
  0xa5   : > { %v541_v49 = vpop.f32.mrf.mxu3 }
  0xa6   : > { %v518_v0 = vpop.f32.mrf.mxu1 }
  0xa8   : > { %v462_v61 = vpop.f32.mrf.mxu0 }
  0xa9   : > { %v512_v62 = vadd.f32 %v511_v57, %v462_v61 }
  0xab   : > { %v585_v1 = vmul.f32 %v1243_v63, %v512_v62 }
  0xad   : > { %v602_v6 = vadd.f32 %v1252_v2, %v585_v1 }
  0xae   : > { %v1255_v4 = vpop.f32.mrf.mxu2  ;;  %v521_v9 = vpop.f32.mrf.mxu1 }
  0xaf   : > { %v650_v13 = vadd.f32 %v1008_v7, %v602_v6  ;;  %v1016_v6 = vunpack.c.l.bf16 %v1086_v60 }
  0xb0   : > { %v464_v5 = vpop.f32.mrf.mxu0 }
  0xb1   : > { %v514_v8 = vadd.f32 %v513_v58, %v464_v5  ;;  %v666_v19 = vmax.f32 %v650_v13, 0.0 }
  0xb3   : > { %v969_v10 = vpack.c.bf16 %v514_v8, %v512_v62  ;;  %v586_v11 = vmul.f32 %v1243_v63, %v514_v8 }
  0xb5   : > { %970 = vst [vmem:[%s1262_s27] sm:$0xff] %v969_v10   ;;  %v603_v14 = vadd.f32 %v1252_v2, %v586_v11  ;;  %v543_v11 = vpop.f32.mrf.mxu3 }
  0xb6   : > { %v1267_v17 = vpop.f32.mrf.mxu2  ;;  %v523_v22 = vpop.f32.mrf.mxu1 }
  0xb7   : > { %v651_v16 = vadd.f32 %v1009_v12, %v603_v14  ;;  %v1017_v14 = vunpack.c.h.bf16 %v1086_v60 }
  0xb8   : > { %v467_v18 = vpop.f32.mrf.mxu0 }
  0xb9   : > { %v667_v20 = vmax.f32 %v651_v16, 0.0  ;;  %v517_v21 = vadd.f32 %v516_v59, %v467_v18  ;;  %v1090_v18 = vld [vmem:[%s1249_s25 + $0x30] sm:$0xff]  }
  0xbb   : > { %v1041_v23 = vpack.c.bf16 %v667_v20, %v666_v19  ;;  %v587_v24 = vmul.f32 %v1243_v63, %v517_v21  ;;  %v1088_v20 = vld [vmem:[%s1249_s25 + $0x20] sm:$0xff]  }
  0xbc   : > { %v1024_v25 = vunpack.c.l.bf16 %v1088_v20  ;;  %v1025_v39 = vunpack.c.h.bf16 %v1088_v20 }
  0xbd   : > { %1042 = vst [vmem:[%s1273_s30] sm:$0xff] %v1041_v23   ;;  %v604_v30 = vadd.f32 %v1252_v2, %v587_v24  ;;  %v1032_v24 = vunpack.c.l.bf16 %v1090_v18 }
  0xbe   : > { %v487_v26 = vpop.f32.mrf.mxu2  ;;  %v1279_v33 = vpop.f32.mrf.mxu1 }
  0xbf   : > { %v537_v28 = vadd.f32 %v536_v15, %v487_v26  ;;  %v652_v38 = vadd.f32 %v1012_v31, %v604_v30  ;;  %v1033_v30 = vunpack.c.h.bf16 %v1090_v18 }
  0xc0   : > { %v469_v29 = vpop.f32.mrf.mxu0 }
  0xc1   : > { %v519_v32 = vadd.f32 %v518_v0, %v469_v29  ;;  %v595_v37 = vmul.f32 %v1243_v63, %v537_v28  ;;  %v668_v47 = vmax.f32 %v652_v38, 0.0 }
  0xc3   : > { %v974_v34 = vpack.c.bf16 %v519_v32, %v517_v21  ;;  %v588_v35 = vmul.f32 %v1243_v63, %v519_v32  ;;  %v612_v43 = vadd.f32 %v1252_v2, %v595_v37 }
  0xc5   : > { %1078 = vst [vmem:[%s1262_s27 + $0x8] sm:$0xff] %v974_v34   ;;  %v605_v40 = vadd.f32 %v1252_v2, %v588_v35  ;;  %v660_v56 = vadd.f32 %v1028_v44, %v612_v43 }
  0xc6   : > { %v489_v42 = vpop.f32.mrf.mxu2  ;;  %v1287_v51 = vpop.f32.mrf.mxu1 }
  0xc7   : > { %v653_v41 = vadd.f32 %v1013_v36, %v605_v40  ;;  %v539_v45 = vadd.f32 %v538_v27, %v489_v42  ;;  %v676_v62 = vmax.f32 %v660_v56, 0.0 }
  0xc8   : > { %v472_v46 = vpop.f32.mrf.mxu0 }
  0xc9   : > { %v669_v48 = vmax.f32 %v653_v41, 0.0  ;;  %v522_v50 = vadd.f32 %v521_v9, %v472_v46  ;;  %v994_v52 = vpack.c.bf16 %v539_v45, %v537_v28  ;;  %v596_v53 = vmul.f32 %v1243_v63, %v539_v45 }
  0xcb   : > { %v1046_v55 = vpack.c.bf16 %v669_v48, %v668_v47  ;;  %1082 = vst [vmem:[%s1262_s27 + $0x28] sm:$0xff] %v994_v52   ;;  %v613_v57 = vadd.f32 %v1252_v2, %v596_v53  ;;  %v589_v58 = vmul.f32 %v1243_v63, %v522_v50  ;;  %v1087_v47 = vld [vmem:[%s1249_s25 + $0x18] sm:$0xff]  }
  0xcc   : > { %v1020_v56 = vunpack.c.l.bf16 %v1087_v47 }
  0xcd   : > { %1092 = vst [vmem:[%s1273_s30 + $0x8] sm:$0xff] %v1046_v55   ;;  %v661_v59 = vadd.f32 %v1029_v54, %v613_v57  ;;  %v606_v5 = vadd.f32 %v1252_v2, %v589_v58 }
  0xce   : > { %v492_v61 = vpop.f32.mrf.mxu2  ;;  %v531_v8 = vpop.f32.mrf.mxu1 }
  0xcf   : > { %v677_v0 = vmax.f32 %v661_v59, 0.0  ;;  %v542_v1 = vadd.f32 %v541_v49, %v492_v61  ;;  %v532_v10 = vadd.f32 %v531_v8, %v1255_v4  ;;  %v654_v16 = vadd.f32 %v1016_v6, %v606_v5  ;;  %v1091_v6 = vld [vmem:[%s1249_s25 + $0x38] sm:$0xff]  }
  0xd0   : > { %v474_v3 = vpop.f32.mrf.mxu0  ;;  %v1037_v18 = vunpack.c.h.bf16 %v1091_v6 }
  0xd1   : > { %v524_v7 = vadd.f32 %v523_v22, %v474_v3  ;;  %v1066_v9 = vpack.c.bf16 %v677_v0, %v676_v62  ;;  %v597_v15 = vmul.f32 %v1243_v63, %v542_v1  ;;  %v593_v21 = vmul.f32 %v1243_v63, %v532_v10 }
  0xd2   : > { %v670_v28 = vmax.f32 %v654_v16, 0.0  ;;  %v1021_v0 = vunpack.c.h.bf16 %v1087_v47 }
  0xd3   : > { %v979_v12 = vpack.c.bf16 %v524_v7, %v522_v50  ;;  %v590_v13 = vmul.f32 %v1243_v63, %v524_v7  ;;  %1096 = vst [vmem:[%s1273_s30 + $0x28] sm:$0xff] %v1066_v9   ;;  %v614_v4 = vadd.f32 %v1252_v2, %v597_v15  ;;  %v610_v34 = vadd.f32 %v1252_v2, %v593_v21 }
  0xd5   : > { %1079 = vst [vmem:[%s1262_s27 + $0x10] sm:$0xff] %v979_v12   ;;  %v607_v19 = vadd.f32 %v1252_v2, %v590_v13  ;;  %v662_v40 = vadd.f32 %v1032_v24, %v614_v4  ;;  %v658_v45 = vadd.f32 %v1024_v25, %v610_v34 }
  0xd6   : > { %v494_v23 = vpop.f32.mrf.mxu2  ;;  %v533_v32 = vpop.f32.mrf.mxu1 }
  0xd7   : > { %v655_v22 = vadd.f32 %v1017_v14, %v607_v19  ;;  %v544_v26 = vadd.f32 %v543_v11, %v494_v23  ;;  %v534_v37 = vadd.f32 %v533_v32, %v1267_v17  ;;  %v678_v49 = vmax.f32 %v662_v40, 0.0 }
  0xd8   : > { %v477_v27 = vpop.f32.mrf.mxu0  ;;  %v674_v58 = vmax.f32 %v658_v45, 0.0  ;;  %v1036_v11 = vunpack.c.l.bf16 %v1091_v6 }
  0xd9   : > { %v671_v29 = vmax.f32 %v655_v22, 0.0  ;;  %v527_v31 = vadd.f32 %v1279_v33, %v477_v27  ;;  %v999_v35 = vpack.c.bf16 %v544_v26, %v542_v1  ;;  %v598_v36 = vmul.f32 %v1243_v63, %v544_v26  ;;  %v546_v33 = vpop.f32.mrf.mxu3 }
  0xda   : > { %v989_v42 = vpack.c.bf16 %v534_v37, %v532_v10  ;;  %v594_v43 = vmul.f32 %v1243_v63, %v534_v37 }
  0xdb   : > { %v1051_v38 = vpack.c.bf16 %v671_v29, %v670_v28  ;;  %1083 = vst [vmem:[%s1262_s27 + $0x30] sm:$0xff] %v999_v35   ;;  %v615_v41 = vadd.f32 %v1252_v2, %v598_v36  ;;  %v591_v44 = vmul.f32 %v1243_v63, %v527_v31 }
  0xdc   : > { %1081 = vst [vmem:[%s1262_s27 + $0x20] sm:$0xff] %v989_v42   ;;  %v611_v48 = vadd.f32 %v1252_v2, %v594_v43 }
  0xdd   : > { %1093 = vst [vmem:[%s1273_s30 + $0x10] sm:$0xff] %v1051_v38   ;;  %v663_v46 = vadd.f32 %v1033_v30, %v615_v41  ;;  %v608_v55 = vadd.f32 %v1252_v2, %v591_v44 }
  0xde   : > { %v497_v17 = vpop.f32.mrf.mxu2  ;;  %v659_v52 = vadd.f32 %v1025_v39, %v611_v48 }
  0xdf   : > { %v679_v50 = vmax.f32 %v663_v46, 0.0  ;;  %v547_v53 = vadd.f32 %v546_v33, %v497_v17  ;;  %v656_v5 = vadd.f32 %v1020_v56, %v608_v55 }
  0xe0   : > { %v479_v54 = vpop.f32.mrf.mxu0  ;;  %v675_v60 = vmax.f32 %v659_v52, 0.0 }
  0xe1   : > { %v529_v57 = vadd.f32 %v1287_v51, %v479_v54  ;;  %v1071_v59 = vpack.c.bf16 %v679_v50, %v678_v49  ;;  %v599_v3 = vmul.f32 %v1243_v63, %v547_v53  ;;  %v548_v51 = vpop.f32.mrf.mxu3  ;;  %v672_v13 = vmax.f32 %v656_v5, 0.0 }
  0xe2   : > { %v1061_v1 = vpack.c.bf16 %v675_v60, %v674_v58 }
  0xe3   : > { %v984_v61 = vpack.c.bf16 %v529_v57, %v527_v31  ;;  %v592_v62 = vmul.f32 %v1243_v63, %v529_v57  ;;  %1097 = vst [vmem:[%s1273_s30 + $0x30] sm:$0xff] %v1071_v59   ;;  %v616_v10 = vadd.f32 %v1252_v2, %v599_v3 }
  0xe4   : > { %1095 = vst [vmem:[%s1273_s30 + $0x20] sm:$0xff] %v1061_v1  }
  0xe5   : > { %1080 = vst [vmem:[%s1262_s27 + $0x18] sm:$0xff] %v984_v61   ;;  %v609_v7 = vadd.f32 %v1252_v2, %v592_v62  ;;  %v664_v20 = vadd.f32 %v1036_v11, %v616_v10 }
  0xe6   : > { %v499_v9 = vpop.f32.mrf.mxu2 }
  0xe7   : > { %v657_v8 = vadd.f32 %v1021_v0, %v609_v7  ;;  %v549_v12 = vadd.f32 %v548_v51, %v499_v9  ;;  %v680_v23 = vmax.f32 %v664_v20, 0.0 }
  0xe9   : > { %v673_v14 = vmax.f32 %v657_v8, 0.0  ;;  %v1004_v15 = vpack.c.bf16 %v549_v12, %v547_v53  ;;  %v600_v16 = vmul.f32 %v1243_v63, %v549_v12 }
  0xeb   : > { %v1056_v19 = vpack.c.bf16 %v673_v14, %v672_v13  ;;  %1084 = vst [vmem:[%s1262_s27 + $0x38] sm:$0xff] %v1004_v15   ;;  %v617_v21 = vadd.f32 %v1252_v2, %v600_v16 }
  0xed   : > { %1094 = vst [vmem:[%s1273_s30 + $0x18] sm:$0xff] %v1056_v19   ;;  %v665_v22 = vadd.f32 %v1037_v18, %v617_v21 }
  0xef   : > { %v681_v4 = vmax.f32 %v665_v22, 0.0 }
  0xf1   : > { %v1076_v24 = vpack.c.bf16 %v681_v4, %v680_v23 }
  0xf3   : > { %1098 = vst [vmem:[%s1273_s30 + $0x38] sm:$0xff] %v1076_v24  }
  0xf4 PF: > { %s16_s18 = sadd.s32 1, %s1122_s18  }
  0xf5   : > { %p13_p4 = scmp.ge.s32.totalorder %s16_s18, 6  }
  0xf7   :  { %15 = sbr.rel (!%p13_p4) target bundleno = 1 (0x1), region = 81 }

// kernel: _lambda_.11
= control target key start
LH: loop header
LB: loop body
LE: loop exit
PB: predicated region body
PF: predicated region fallthrough
CT: control target
= control target key end

     0   :  { %vm213_vm0 = vcmask 130048   ;;  %s1305_s1 = inlined_call_operand.vmem [shape: bf16[144,256], index: 1, kind: input, shape index: {}]   ;;  %s1306_s0 = inlined_call_operand.vmem [shape: bf16[128,144], index: 0, kind: input, shape index: {}]   ;;  %s1307_s2 = inlined_call_operand.vmem [shape: f32[2,256], index: 2, kind: input, shape index: {}]   ;;  %s1308_s3 = inlined_call_operand.vmem [shape: bf16[128,256], index: 3, kind: output, shape index: {0}]   ;;  %s1309_s4 = inlined_call_operand.vmem [shape: bf16[128,128], index: 4, kind: output, shape index: {1}]  }
   0x1   :  { %v754_v0 = vld [vmem:[%s1305_s1 + $0x70] sm:$0xf]  ;;  %v815_v1 = vld [vmem:[%s1305_s1 + $0x74] sm:$0xf0]  ;;  %v814_v2 = vld [vmem:[%s1305_s1 + $0x74] sm:$0xf] }
   0x2   :  { %v755_v3 = vor.u32 %v815_v1, %v754_v0  ;;  %v756_v4 = vld [vmem:[%s1305_s1 + $0x78] sm:$0xf0]  ;;  %v746_v5 = vld [vmem:[%s1305_s1 + $0x60] sm:$0xf]  ;;  %v813_v6 = vld [vmem:[%s1305_s1 + $0x64] sm:$0xf0] }
   0x3   :  { %v759_v7 = vor.u32 %v814_v2, %v756_v4  ;;  %v812_v8 = vld [vmem:[%s1305_s1 + $0x64] sm:$0xf]  ;;  %v748_v9 = vld [vmem:[%s1305_s1 + $0x68] sm:$0xf0]  ;;  %v747_v10 = vor.u32 %v813_v6, %v746_v5  ;;  %v738_v12 = vld [vmem:[%s1305_s1 + $0x50] sm:$0xf] }
   0x4   :  { %238 = vmatpush.bf16.msra.mxu0 %v755_v3  ;;  %v751_v11 = vor.u32 %v812_v8, %v748_v9  ;;  %v811_v13 = vld [vmem:[%s1305_s1 + $0x54] sm:$0xf0]  ;;  %v810_v14 = vld [vmem:[%s1305_s1 + $0x54] sm:$0xf]  ;;  %v740_v15 = vld [vmem:[%s1305_s1 + $0x58] sm:$0xf0] }
   0x5   :  { %336 = vmatpush.bf16.msra.mxu2 %v759_v7  ;;  %v739_v16 = vor.u32 %v811_v13, %v738_v12  ;;  %v730_v17 = vld [vmem:[%s1305_s1 + $0x40] sm:$0xf]  ;;  %v809_v18 = vld [vmem:[%s1305_s1 + $0x44] sm:$0xf0]  ;;  %v743_v19 = vor.u32 %v810_v14, %v740_v15  ;;  %v816_v20 = vld [vmem:[%s1305_s1 + $0x84] sm:$0xf] }
   0x6   :  { %v764_v21 = vld [vmem:[%s1305_s1 + $0x88] sm:$0xf0]  ;;  %v784_v22 = vld [vmem:[%s1306_s0 + $0x4] sm:$0xf]  ;;  %v762_v28 = vld [vmem:[%s1305_s1 + $0x80] sm:$0xf]  ;;  %v731_v30 = vor.u32 %v809_v18, %v730_v17 }
   0x7   :  { %v808_v23 = vld [vmem:[%s1305_s1 + $0x44] sm:$0xf]  ;;  %v732_v24 = vld [vmem:[%s1305_s1 + $0x48] sm:$0xf0]  ;;  %v767_v25 = vor.u32 %v816_v20, %v764_v21  ;;  %v817_v29 = vld [vmem:[%s1305_s1 + $0x84] sm:$0xf0] }
   0x8   :  { %239 = vmatpush.bf16.msra.mxu0 %v747_v10  ;;  %v636_v26 = vld [vmem:[%s1306_s0 + $0x8] sm:$0xf0]  ;;  %v763_v31 = vor.u32 %v817_v29, %v762_v28  ;;  %v735_v32 = vor.u32 %v808_v23, %v732_v24  ;;  %v722_v33 = vld [vmem:[%s1305_s1 + $0x30] sm:$0xf]  ;;  %v807_v34 = vld [vmem:[%s1305_s1 + $0x34] sm:$0xf0] }
   0x9   :  { %337 = vmatpush.bf16.msra.mxu2 %v751_v11  ;;  %v639_v27 = vor.u32 %v784_v22, %v636_v26  ;;  %392 = vmatpush.bf16.msra.mxu3 %v767_v25  ;;  %v806_v35 = vld [vmem:[%s1305_s1 + $0x34] sm:$0xf]  ;;  %v724_v36 = vld [vmem:[%s1305_s1 + $0x38] sm:$0xf0]  ;;  %v723_v37 = vor.u32 %v807_v34, %v722_v33  ;;  %v714_v39 = vld [vmem:[%s1305_s1 + $0x20] sm:$0xf] }
   0xa   :  { %294 = vmatpush.bf16.msra.mxu1 %v763_v31  ;;  %v727_v38 = vor.u32 %v806_v35, %v724_v36  ;;  %v805_v40 = vld [vmem:[%s1305_s1 + $0x24] sm:$0xf0]  ;;  %v804_v41 = vld [vmem:[%s1305_s1 + $0x24] sm:$0xf]  ;;  %v716_v42 = vld [vmem:[%s1305_s1 + $0x28] sm:$0xf0] }
   0xb   :  { %v715_v43 = vor.u32 %v805_v40, %v714_v39  ;;  %v719_v44 = vor.u32 %v804_v41, %v716_v42  ;;  %v706_v45 = vld [vmem:[%s1305_s1 + $0x10] sm:$0xf]  ;;  %v803_v46 = vld [vmem:[%s1305_s1 + $0x14] sm:$0xf0]  ;;  %v802_v47 = vld [vmem:[%s1305_s1 + $0x14] sm:$0xf] }
   0xc   :  { %240 = vmatpush.bf16.msra.mxu0 %v739_v16  ;;  %776 = vmatmul.msk.bf16.vlgmr.msra.gmra.mxu3 %vm213_vm0, %v639_v27  ;;  %v708_v48 = vld [vmem:[%s1305_s1 + $0x18] sm:$0xf0]  ;;  %v707_v49 = vor.u32 %v803_v46, %v706_v45  ;;  %v786_v50 = vld [vmem:[%s1306_s0 + $0x14] sm:$0xf]  ;;  %v698_v53 = vld [vmem:[%s1305_s1] sm:$0xf] }
   0xd   :  { %338 = vmatpush.bf16.msra.mxu2 %v743_v19  ;;  %768 = vmatmul.msk.bf16.vlgmr.msra.gmra.mxu1 %vm213_vm0, %v639_v27  ;;  %v644_v51 = vld [vmem:[%s1306_s0 + $0x18] sm:$0xf0]  ;;  %v711_v52 = vor.u32 %v802_v47, %v708_v48  ;;  %v801_v54 = vld [vmem:[%s1305_s1 + $0x4] sm:$0xf0]  ;;  %v800_v55 = vld [vmem:[%s1305_s1 + $0x4] sm:$0xf] }
   0xe   :  { %v700_v56 = vld [vmem:[%s1305_s1 + $0x8] sm:$0xf0]  ;;  %v647_v57 = vor.u32 %v786_v50, %v644_v51  ;;  %v699_v58 = vor.u32 %v801_v54, %v698_v53  ;;  %v634_v59 = vld [vmem:[%s1306_s0] sm:$0xf]  ;;  %v785_v60 = vld [vmem:[%s1306_s0 + $0x4] sm:$0xf0] }
   0xf   :  { %v703_v61 = vor.u32 %v800_v55, %v700_v56  ;;  %v635_v62 = vor.u32 %v785_v60, %v634_v59  ;;  %v788_v63 = vld [vmem:[%s1306_s0 + $0x24] sm:$0xf]  ;;  %v652_v0 = vld [vmem:[%s1306_s0 + $0x28] sm:$0xf0]  ;;  %v642_v2 = vld [vmem:[%s1306_s0 + $0x10] sm:$0xf] }
  0x10   :  { %241 = vmatpush.bf16.msra.mxu0 %v731_v30  ;;  %v655_v1 = vor.u32 %v788_v63, %v652_v0  ;;  %v787_v3 = vld [vmem:[%s1306_s0 + $0x14] sm:$0xf0]  ;;  %v790_v5 = vld [vmem:[%s1306_s0 + $0x34] sm:$0xf]  ;;  %v660_v6 = vld [vmem:[%s1306_s0 + $0x38] sm:$0xf0] }
  0x11   :  { %339 = vmatpush.bf16.msra.mxu2 %v735_v32  ;;  %v643_v4 = vor.u32 %v787_v3, %v642_v2  ;;  %v663_v7 = vor.u32 %v790_v5, %v660_v6  ;;  %v650_v8 = vld [vmem:[%s1306_s0 + $0x20] sm:$0xf]  ;;  %v789_v9 = vld [vmem:[%s1306_s0 + $0x24] sm:$0xf0]  ;;  %v792_v11 = vld [vmem:[%s1306_s0 + $0x44] sm:$0xf] }
  0x12   :  { %v651_v10 = vor.u32 %v789_v9, %v650_v8  ;;  %v668_v12 = vld [vmem:[%s1306_s0 + $0x48] sm:$0xf0]  ;;  %v658_v14 = vld [vmem:[%s1306_s0 + $0x30] sm:$0xf]  ;;  %v791_v15 = vld [vmem:[%s1306_s0 + $0x34] sm:$0xf0] }
  0x13   :  { %v671_v13 = vor.u32 %v792_v11, %v668_v12  ;;  %v659_v16 = vor.u32 %v791_v15, %v658_v14  ;;  %v794_v17 = vld [vmem:[%s1306_s0 + $0x54] sm:$0xf]  ;;  %v676_v18 = vld [vmem:[%s1306_s0 + $0x58] sm:$0xf0]  ;;  %v666_v20 = vld [vmem:[%s1306_s0 + $0x40] sm:$0xf] }
  0x14   :  { %242 = vmatpush.bf16.msra.mxu0 %v723_v37  ;;  %v679_v19 = vor.u32 %v794_v17, %v676_v18  ;;  %v793_v21 = vld [vmem:[%s1306_s0 + $0x44] sm:$0xf0]  ;;  %v796_v23 = vld [vmem:[%s1306_s0 + $0x64] sm:$0xf]  ;;  %v684_v24 = vld [vmem:[%s1306_s0 + $0x68] sm:$0xf0] }
  0x15   :  { %340 = vmatpush.bf16.msra.mxu2 %v727_v38  ;;  %v667_v22 = vor.u32 %v793_v21, %v666_v20  ;;  %v687_v25 = vor.u32 %v796_v23, %v684_v24  ;;  %v674_v26 = vld [vmem:[%s1306_s0 + $0x50] sm:$0xf]  ;;  %v795_v27 = vld [vmem:[%s1306_s0 + $0x54] sm:$0xf0]  ;;  %v798_v29 = vld [vmem:[%s1306_s0 + $0x74] sm:$0xf] }
  0x16   :  { %v675_v28 = vor.u32 %v795_v27, %v674_v26  ;;  %v692_v30 = vld [vmem:[%s1306_s0 + $0x78] sm:$0xf0]  ;;  %v682_v32 = vld [vmem:[%s1306_s0 + $0x60] sm:$0xf]  ;;  %v797_v33 = vld [vmem:[%s1306_s0 + $0x64] sm:$0xf0] }
  0x17   :  { %v695_v31 = vor.u32 %v798_v29, %v692_v30  ;;  %v683_v34 = vor.u32 %v797_v33, %v682_v32  ;;  %v690_v35 = vld [vmem:[%s1306_s0 + $0x70] sm:$0xf]  ;;  %v799_v36 = vld [vmem:[%s1306_s0 + $0x74] sm:$0xf0]  ;;  %v466_v41 = vld [vmem:[%s1307_s2] sm:$0xf] }
  0x18   :  { %243 = vmatpush.bf16.msra.mxu0 %v715_v43  ;;  %v691_v38 = vor.u32 %v799_v36, %v690_v35  ;;  %v468_v43 = vperm.slane %v466_v41, 0  ;;  %v469_v50 = vperm.slane %v466_v41, 2  ;;  %v507_v53 = vperm.slane %v466_v41, 3 }
  0x19   :  { %341 = vmatpush.bf16.msra.mxu2 %v719_v44  ;;  %v506_v44 = vperm.slane %v466_v41, 1 }
  0x1a   :  { %v1113_v46 = vperm.slane %v468_v43, 0  ;;  %v1119_v55 = vperm.slane %v469_v50, 0  ;;  %v1121_v60 = vperm.slane %v507_v53, 1 }
  0x1c   :  { %244 = vmatpush.bf16.msra.mxu0 %v707_v49  ;;  %777 = vmatmul.msk.bf16.gmra.mxu3 %vm213_vm0, %v647_v57  ;;  %v1115_v49 = vperm.slane %v506_v44, 1 }
  0x1d   :  { %342 = vmatpush.bf16.msra.mxu2 %v711_v52  ;;  %769 = vmatmul.msk.bf16.gmra.mxu1 %vm213_vm0, %v647_v57 }
  0x20   :  { %245 = vmatpush.bf16.msra.mxu0 %v699_v58 }
  0x21   :  { %343 = vmatpush.bf16.msra.mxu2 %v703_v61 }
  0x23   :  { %246 = vmatmul.bf16.vlgmr.msra.gmra.mxu0 %v635_v62 }
  0x24   :  { %344 = vmatmul.bf16.vlgmr.msra.gmra.mxu2 %v635_v62 }
  0x2c   :  { %778 = vmatmul.msk.bf16.gmra.mxu3 %vm213_vm0, %v655_v1 }
  0x2d   :  { %770 = vmatmul.msk.bf16.gmra.mxu1 %vm213_vm0, %v655_v1 }
  0x33   :  { %251 = vmatmul.bf16.gmra.mxu0 %v643_v4 }
  0x34   :  { %349 = vmatmul.bf16.gmra.mxu2 %v643_v4 }
  0x3c   :  { %779 = vmatmul.msk.bf16.gmra.mxu3 %vm213_vm0, %v663_v7 }
  0x3d   :  { %771 = vmatmul.msk.bf16.gmra.mxu1 %vm213_vm0, %v663_v7 }
  0x43   :  { %256 = vmatmul.bf16.gmra.mxu0 %v651_v10 }
  0x44   :  { %354 = vmatmul.bf16.gmra.mxu2 %v651_v10 }
  0x4c   :  { %780 = vmatmul.msk.bf16.gmra.mxu3 %vm213_vm0, %v671_v13 }
  0x4d   :  { %772 = vmatmul.msk.bf16.gmra.mxu1 %vm213_vm0, %v671_v13 }
  0x53   :  { %261 = vmatmul.bf16.gmra.mxu0 %v659_v16 }
  0x54   :  { %359 = vmatmul.bf16.gmra.mxu2 %v659_v16 }
  0x5c   :  { %781 = vmatmul.msk.bf16.gmra.mxu3 %vm213_vm0, %v679_v19 }
  0x5d   :  { %773 = vmatmul.msk.bf16.gmra.mxu1 %vm213_vm0, %v679_v19 }
  0x63   :  { %266 = vmatmul.bf16.gmra.mxu0 %v667_v22 }
  0x64   :  { %364 = vmatmul.bf16.gmra.mxu2 %v667_v22 }
  0x6c   :  { %782 = vmatmul.msk.bf16.gmra.mxu3 %vm213_vm0, %v687_v25 }
  0x6d   :  { %774 = vmatmul.msk.bf16.gmra.mxu1 %vm213_vm0, %v687_v25 }
  0x73   :  { %271 = vmatmul.bf16.gmra.mxu0 %v675_v28 }
  0x74   :  { %369 = vmatmul.bf16.gmra.mxu2 %v675_v28 }
  0x7c   :  { %783 = vmatmul.msk.bf16.gmra.mxu3 %vm213_vm0, %v695_v31 }
  0x7d   :  { %775 = vmatmul.msk.bf16.gmra.mxu1 %vm213_vm0, %v695_v31 }
  0x83   :  { %276 = vmatmul.bf16.gmra.mxu0 %v683_v34 }
  0x84   :  { %374 = vmatmul.bf16.gmra.mxu2 %v683_v34 }
  0x8a   :  { %v296_v37 = vpop.f32.mrf.mxu1 }
  0x8f   :  { %v394_v39 = vpop.f32.mrf.mxu3 }
  0x92   :  { %v298_v40 = vpop.f32.mrf.mxu1 }
  0x93   :  { %281 = vmatmul.bf16.gmra.mxu0 %v691_v38 }
  0x94   :  { %379 = vmatmul.bf16.gmra.mxu2 %v691_v38 }
  0x97   :  { %v396_v42 = vpop.f32.mrf.mxu3 }
  0x9a   :  { %v301_v45 = vpop.f32.mrf.mxu1 }
  0x9f   :  { %v399_v51 = vpop.f32.mrf.mxu3 }
  0xa0   :  { %v247_v47 = vpop.f32.mrf.mxu0 }
  0xa1   :  { %v297_v48 = vadd.f32 %v296_v37, %v247_v47 }
  0xa2   :  { %v303_v56 = vpop.f32.mrf.mxu1 }
  0xa3   :  { %v474_v52 = vmul.f32 %v1113_v46, %v297_v48 }
  0xa5   :  { %v512_v54 = vadd.f32 %v1115_v49, %v474_v52 }
  0xa7   :  { %v544_v57 = vmax.f32 %v512_v54, 0.0  ;;  %v345_v58 = vpop.f32.mrf.mxu2  ;;  %v401_v1 = vpop.f32.mrf.mxu3 }
  0xa8   :  { %v395_v59 = vadd.f32 %v394_v39, %v345_v58  ;;  %v249_v61 = vpop.f32.mrf.mxu0 }
  0xa9   :  { %v560_v62 = vpack.c.bf16 %v544_v57, %v544_v57  ;;  %v299_v63 = vadd.f32 %v298_v40, %v249_v61 }
  0xaa   :  { %v475_v0 = vmul.f32 %v1119_v55, %v395_v59  ;;  %v306_v7 = vpop.f32.mrf.mxu1 }
  0xab   :  { %576 = vst [vmem:[%s1308_s3] sm:$0xf] %v560_v62  ;;  %v821_v2 = vpack.c.bf16 %v299_v63, %v297_v48  ;;  %v476_v3 = vmul.f32 %v1113_v46, %v299_v63 }
  0xac   :  { %v513_v4 = vadd.f32 %v1121_v60, %v475_v0 }
  0xad   :  { %822 = vst [vmem:[%s1309_s4] sm:$0xff] %v821_v2   ;;  %v514_v5 = vadd.f32 %v1115_v49, %v476_v3 }
  0xae   :  { %v592_v6 = vpack.c.bf16 %v513_v4, %v513_v4 }
  0xaf   :  { %v545_v8 = vmax.f32 %v514_v5, 0.0  ;;  %v347_v9 = vpop.f32.mrf.mxu2  ;;  %v404_v15 = vpop.f32.mrf.mxu3 }
  0xb0   :  { %608 = vst [vmem:[%s1308_s3 + $0x4] sm:$0xf] %v592_v6  ;;  %v397_v10 = vadd.f32 %v396_v42, %v347_v9  ;;  %v252_v11 = vpop.f32.mrf.mxu0 }
  0xb1   :  { %v561_v12 = vpack.c.bf16 %v545_v8, %v545_v8  ;;  %v302_v13 = vadd.f32 %v301_v45, %v252_v11 }
  0xb2   :  { %v477_v14 = vmul.f32 %v1119_v55, %v397_v10  ;;  %v308_v20 = vpop.f32.mrf.mxu1 }
  0xb3   :  { %577 = vst [vmem:[%s1308_s3 + $0x8] sm:$0xf] %v561_v12  ;;  %v478_v16 = vmul.f32 %v1113_v46, %v302_v13 }
  0xb4   :  { %v515_v17 = vadd.f32 %v1121_v60, %v477_v14 }
  0xb5   :  { %v516_v18 = vadd.f32 %v1115_v49, %v478_v16 }
  0xb6   :  { %v593_v19 = vpack.c.bf16 %v515_v17, %v515_v17 }
  0xb7   :  { %v546_v21 = vmax.f32 %v516_v18, 0.0  ;;  %v350_v22 = vpop.f32.mrf.mxu2  ;;  %v406_v30 = vpop.f32.mrf.mxu3 }
  0xb8   :  { %609 = vst [vmem:[%s1308_s3 + $0xc] sm:$0xf] %v593_v19  ;;  %v400_v23 = vadd.f32 %v399_v51, %v350_v22  ;;  %v254_v24 = vpop.f32.mrf.mxu0 }
  0xb9   :  { %v562_v25 = vpack.c.bf16 %v546_v21, %v546_v21  ;;  %v304_v26 = vadd.f32 %v303_v56, %v254_v24 }
  0xba   :  { %v479_v27 = vmul.f32 %v1119_v55, %v400_v23  ;;  %v311_v34 = vpop.f32.mrf.mxu1 }
  0xbb   :  { %578 = vst [vmem:[%s1308_s3 + $0x10] sm:$0xf] %v562_v25  ;;  %v826_v28 = vpack.c.bf16 %v304_v26, %v302_v13  ;;  %v480_v29 = vmul.f32 %v1113_v46, %v304_v26 }
  0xbc   :  { %v517_v31 = vadd.f32 %v1121_v60, %v479_v27 }
  0xbd   :  { %858 = vst [vmem:[%s1309_s4 + $0x8] sm:$0xff] %v826_v28   ;;  %v518_v32 = vadd.f32 %v1115_v49, %v480_v29 }
  0xbe   :  { %v594_v33 = vpack.c.bf16 %v517_v31, %v517_v31 }
  0xbf   :  { %v547_v35 = vmax.f32 %v518_v32, 0.0  ;;  %v352_v36 = vpop.f32.mrf.mxu2  ;;  %v409_v45 = vpop.f32.mrf.mxu3 }
  0xc0   :  { %610 = vst [vmem:[%s1308_s3 + $0x14] sm:$0xf] %v594_v33  ;;  %v402_v37 = vadd.f32 %v401_v1, %v352_v36  ;;  %v257_v38 = vpop.f32.mrf.mxu0 }
  0xc1   :  { %v563_v39 = vpack.c.bf16 %v547_v35, %v547_v35  ;;  %v307_v40 = vadd.f32 %v306_v7, %v257_v38 }
  0xc2   :  { %v481_v41 = vmul.f32 %v1119_v55, %v402_v37  ;;  %v313_v53 = vpop.f32.mrf.mxu1 }
  0xc3   :  { %579 = vst [vmem:[%s1308_s3 + $0x18] sm:$0xf] %v563_v39  ;;  %v482_v42 = vmul.f32 %v1113_v46, %v307_v40 }
  0xc4   :  { %v519_v43 = vadd.f32 %v1121_v60, %v481_v41 }
  0xc5   :  { %v520_v44 = vadd.f32 %v1115_v49, %v482_v42 }
  0xc6   :  { %v595_v47 = vpack.c.bf16 %v519_v43, %v519_v43 }
  0xc7   :  { %v548_v48 = vmax.f32 %v520_v44, 0.0  ;;  %v355_v50 = vpop.f32.mrf.mxu2  ;;  %v411_v2 = vpop.f32.mrf.mxu3 }
  0xc8   :  { %611 = vst [vmem:[%s1308_s3 + $0x1c] sm:$0xf] %v595_v47  ;;  %v405_v51 = vadd.f32 %v404_v15, %v355_v50  ;;  %v259_v52 = vpop.f32.mrf.mxu0 }
  0xc9   :  { %v564_v54 = vpack.c.bf16 %v548_v48, %v548_v48  ;;  %v309_v56 = vadd.f32 %v308_v20, %v259_v52 }
  0xca   :  { %v483_v57 = vmul.f32 %v1119_v55, %v405_v51  ;;  %v316_v8 = vpop.f32.mrf.mxu1 }
  0xcb   :  { %580 = vst [vmem:[%s1308_s3 + $0x20] sm:$0xf] %v564_v54  ;;  %v831_v58 = vpack.c.bf16 %v309_v56, %v307_v40  ;;  %v484_v59 = vmul.f32 %v1113_v46, %v309_v56 }
  0xcc   :  { %v521_v61 = vadd.f32 %v1121_v60, %v483_v57 }
  0xcd   :  { %859 = vst [vmem:[%s1309_s4 + $0x10] sm:$0xff] %v831_v58   ;;  %v522_v62 = vadd.f32 %v1115_v49, %v484_v59 }
  0xce   :  { %v596_v63 = vpack.c.bf16 %v521_v61, %v521_v61 }
  0xcf   :  { %v549_v0 = vmax.f32 %v522_v62, 0.0  ;;  %v357_v1 = vpop.f32.mrf.mxu2  ;;  %v414_v19 = vpop.f32.mrf.mxu3 }
  0xd0   :  { %612 = vst [vmem:[%s1308_s3 + $0x24] sm:$0xf] %v596_v63  ;;  %v407_v3 = vadd.f32 %v406_v30, %v357_v1  ;;  %v262_v4 = vpop.f32.mrf.mxu0 }
  0xd1   :  { %v565_v5 = vpack.c.bf16 %v549_v0, %v549_v0  ;;  %v312_v6 = vadd.f32 %v311_v34, %v262_v4 }
  0xd2   :  { %v485_v7 = vmul.f32 %v1119_v55, %v407_v3  ;;  %v318_v24 = vpop.f32.mrf.mxu1 }
  0xd3   :  { %581 = vst [vmem:[%s1308_s3 + $0x28] sm:$0xf] %v565_v5  ;;  %v486_v9 = vmul.f32 %v1113_v46, %v312_v6 }
  0xd4   :  { %v523_v10 = vadd.f32 %v1121_v60, %v485_v7 }
  0xd5   :  { %v524_v11 = vadd.f32 %v1115_v49, %v486_v9 }
  0xd6   :  { %v597_v12 = vpack.c.bf16 %v523_v10, %v523_v10 }
  0xd7   :  { %v550_v13 = vmax.f32 %v524_v11, 0.0  ;;  %v360_v14 = vpop.f32.mrf.mxu2  ;;  %v416_v35 = vpop.f32.mrf.mxu3 }
  0xd8   :  { %613 = vst [vmem:[%s1308_s3 + $0x2c] sm:$0xf] %v597_v12  ;;  %v410_v15 = vadd.f32 %v409_v45, %v360_v14  ;;  %v264_v16 = vpop.f32.mrf.mxu0 }
  0xd9   :  { %v566_v17 = vpack.c.bf16 %v550_v13, %v550_v13  ;;  %v314_v18 = vadd.f32 %v313_v53, %v264_v16 }
  0xda   :  { %v487_v20 = vmul.f32 %v1119_v55, %v410_v15  ;;  %v321_v39 = vpop.f32.mrf.mxu1 }
  0xdb   :  { %582 = vst [vmem:[%s1308_s3 + $0x30] sm:$0xf] %v566_v17  ;;  %v836_v21 = vpack.c.bf16 %v314_v18, %v312_v6  ;;  %v488_v22 = vmul.f32 %v1113_v46, %v314_v18 }
  0xdc   :  { %v525_v23 = vadd.f32 %v1121_v60, %v487_v20 }
  0xdd   :  { %860 = vst [vmem:[%s1309_s4 + $0x18] sm:$0xff] %v836_v21   ;;  %v526_v25 = vadd.f32 %v1115_v49, %v488_v22 }
  0xde   :  { %v598_v26 = vpack.c.bf16 %v525_v23, %v525_v23 }
  0xdf   :  { %v551_v27 = vmax.f32 %v526_v25, 0.0  ;;  %v362_v28 = vpop.f32.mrf.mxu2  ;;  %v419_v53 = vpop.f32.mrf.mxu3 }
  0xe0   :  { %614 = vst [vmem:[%s1308_s3 + $0x34] sm:$0xf] %v598_v26  ;;  %v412_v29 = vadd.f32 %v411_v2, %v362_v28  ;;  %v267_v30 = vpop.f32.mrf.mxu0 }
  0xe1   :  { %v567_v31 = vpack.c.bf16 %v551_v27, %v551_v27  ;;  %v317_v32 = vadd.f32 %v316_v8, %v267_v30 }
  0xe2   :  { %v489_v33 = vmul.f32 %v1119_v55, %v412_v29  ;;  %v323_v61 = vpop.f32.mrf.mxu1 }
  0xe3   :  { %583 = vst [vmem:[%s1308_s3 + $0x38] sm:$0xf] %v567_v31  ;;  %v490_v34 = vmul.f32 %v1113_v46, %v317_v32 }
  0xe4   :  { %v527_v36 = vadd.f32 %v1121_v60, %v489_v33 }
  0xe5   :  { %v528_v37 = vadd.f32 %v1115_v49, %v490_v34 }
  0xe6   :  { %v599_v38 = vpack.c.bf16 %v527_v36, %v527_v36 }
  0xe7   :  { %v552_v40 = vmax.f32 %v528_v37, 0.0  ;;  %v365_v41 = vpop.f32.mrf.mxu2  ;;  %v421_v7 = vpop.f32.mrf.mxu3 }
  0xe8   :  { %615 = vst [vmem:[%s1308_s3 + $0x3c] sm:$0xf] %v599_v38  ;;  %v415_v42 = vadd.f32 %v414_v19, %v365_v41  ;;  %v269_v43 = vpop.f32.mrf.mxu0 }
  0xe9   :  { %v568_v44 = vpack.c.bf16 %v552_v40, %v552_v40  ;;  %v319_v45 = vadd.f32 %v318_v24, %v269_v43 }
  0xea   :  { %v491_v47 = vmul.f32 %v1119_v55, %v415_v42  ;;  %v326_v13 = vpop.f32.mrf.mxu1 }
  0xeb   :  { %584 = vst [vmem:[%s1308_s3 + $0x40] sm:$0xf] %v568_v44  ;;  %v841_v48 = vpack.c.bf16 %v319_v45, %v317_v32  ;;  %v492_v50 = vmul.f32 %v1113_v46, %v319_v45 }
  0xec   :  { %v529_v51 = vadd.f32 %v1121_v60, %v491_v47 }
  0xed   :  { %861 = vst [vmem:[%s1309_s4 + $0x20] sm:$0xff] %v841_v48   ;;  %v530_v52 = vadd.f32 %v1115_v49, %v492_v50 }
  0xee   :  { %v600_v54 = vpack.c.bf16 %v529_v51, %v529_v51 }
  0xef   :  { %v553_v56 = vmax.f32 %v530_v52, 0.0  ;;  %v367_v57 = vpop.f32.mrf.mxu2  ;;  %v424_v24 = vpop.f32.mrf.mxu3 }
  0xf0   :  { %616 = vst [vmem:[%s1308_s3 + $0x44] sm:$0xf] %v600_v54  ;;  %v417_v58 = vadd.f32 %v416_v35, %v367_v57  ;;  %v272_v59 = vpop.f32.mrf.mxu0 }
  0xf1   :  { %v569_v62 = vpack.c.bf16 %v553_v56, %v553_v56  ;;  %v322_v63 = vadd.f32 %v321_v39, %v272_v59 }
  0xf2   :  { %v493_v0 = vmul.f32 %v1119_v55, %v417_v58  ;;  %v328_v29 = vpop.f32.mrf.mxu1 }
  0xf3   :  { %585 = vst [vmem:[%s1308_s3 + $0x48] sm:$0xf] %v569_v62  ;;  %v494_v1 = vmul.f32 %v1113_v46, %v322_v63 }
  0xf4   :  { %v531_v2 = vadd.f32 %v1121_v60, %v493_v0 }
  0xf5   :  { %v532_v3 = vadd.f32 %v1115_v49, %v494_v1 }
  0xf6   :  { %v601_v4 = vpack.c.bf16 %v531_v2, %v531_v2 }
  0xf7   :  { %v554_v5 = vmax.f32 %v532_v3, 0.0  ;;  %v370_v6 = vpop.f32.mrf.mxu2  ;;  %v426_v39 = vpop.f32.mrf.mxu3 }
  0xf8   :  { %617 = vst [vmem:[%s1308_s3 + $0x4c] sm:$0xf] %v601_v4  ;;  %v420_v8 = vadd.f32 %v419_v53, %v370_v6  ;;  %v274_v9 = vpop.f32.mrf.mxu0 }
  0xf9   :  { %v570_v10 = vpack.c.bf16 %v554_v5, %v554_v5  ;;  %v324_v11 = vadd.f32 %v323_v61, %v274_v9 }
  0xfa   :  { %v495_v12 = vmul.f32 %v1119_v55, %v420_v8  ;;  %v331_v45 = vpop.f32.mrf.mxu1 }
  0xfb   :  { %586 = vst [vmem:[%s1308_s3 + $0x50] sm:$0xf] %v570_v10  ;;  %v846_v14 = vpack.c.bf16 %v324_v11, %v322_v63  ;;  %v496_v15 = vmul.f32 %v1113_v46, %v324_v11 }
  0xfc   :  { %v533_v16 = vadd.f32 %v1121_v60, %v495_v12 }
  0xfd   :  { %862 = vst [vmem:[%s1309_s4 + $0x28] sm:$0xff] %v846_v14   ;;  %v534_v17 = vadd.f32 %v1115_v49, %v496_v15 }
  0xfe   :  { %v602_v18 = vpack.c.bf16 %v533_v16, %v533_v16 }
  0xff   :  { %v555_v19 = vmax.f32 %v534_v17, 0.0  ;;  %v372_v20 = vpop.f32.mrf.mxu2  ;;  %v429_v58 = vpop.f32.mrf.mxu3 }
 0x100   :  { %618 = vst [vmem:[%s1308_s3 + $0x54] sm:$0xf] %v602_v18  ;;  %v422_v21 = vadd.f32 %v421_v7, %v372_v20  ;;  %v277_v22 = vpop.f32.mrf.mxu0 }
 0x101   :  { %v571_v23 = vpack.c.bf16 %v555_v19, %v555_v19  ;;  %v327_v25 = vadd.f32 %v326_v13, %v277_v22 }
 0x102   :  { %v497_v26 = vmul.f32 %v1119_v55, %v422_v21  ;;  %v333_v0 = vpop.f32.mrf.mxu1 }
 0x103   :  { %587 = vst [vmem:[%s1308_s3 + $0x58] sm:$0xf] %v571_v23  ;;  %v498_v27 = vmul.f32 %v1113_v46, %v327_v25 }
 0x104   :  { %v535_v28 = vadd.f32 %v1121_v60, %v497_v26 }
 0x105   :  { %v536_v30 = vadd.f32 %v1115_v49, %v498_v27 }
 0x106   :  { %v603_v31 = vpack.c.bf16 %v535_v28, %v535_v28 }
 0x107   :  { %v556_v32 = vmax.f32 %v536_v30, 0.0  ;;  %v375_v33 = vpop.f32.mrf.mxu2  ;;  %v431_v11 = vpop.f32.mrf.mxu3 }
 0x108   :  { %619 = vst [vmem:[%s1308_s3 + $0x5c] sm:$0xf] %v603_v31  ;;  %v425_v34 = vadd.f32 %v424_v24, %v375_v33  ;;  %v279_v35 = vpop.f32.mrf.mxu0 }
 0x109   :  { %v572_v36 = vpack.c.bf16 %v556_v32, %v556_v32  ;;  %v329_v37 = vadd.f32 %v328_v29, %v279_v35 }
 0x10a   :  { %v499_v38 = vmul.f32 %v1119_v55, %v425_v34 }
 0x10b   :  { %588 = vst [vmem:[%s1308_s3 + $0x60] sm:$0xf] %v572_v36  ;;  %v851_v40 = vpack.c.bf16 %v329_v37, %v327_v25  ;;  %v500_v41 = vmul.f32 %v1113_v46, %v329_v37 }
 0x10c   :  { %v537_v42 = vadd.f32 %v1121_v60, %v499_v38 }
 0x10d   :  { %863 = vst [vmem:[%s1309_s4 + $0x30] sm:$0xff] %v851_v40   ;;  %v538_v43 = vadd.f32 %v1115_v49, %v500_v41 }
 0x10e   :  { %v604_v44 = vpack.c.bf16 %v537_v42, %v537_v42 }
 0x10f   :  { %v557_v47 = vmax.f32 %v538_v43, 0.0  ;;  %v377_v48 = vpop.f32.mrf.mxu2 }
 0x110   :  { %620 = vst [vmem:[%s1308_s3 + $0x64] sm:$0xf] %v604_v44  ;;  %v427_v50 = vadd.f32 %v426_v39, %v377_v48  ;;  %v282_v51 = vpop.f32.mrf.mxu0 }
 0x111   :  { %v573_v52 = vpack.c.bf16 %v557_v47, %v557_v47  ;;  %v332_v53 = vadd.f32 %v331_v45, %v282_v51 }
 0x112   :  { %v501_v54 = vmul.f32 %v1119_v55, %v427_v50 }
 0x113   :  { %589 = vst [vmem:[%s1308_s3 + $0x68] sm:$0xf] %v573_v52  ;;  %v502_v56 = vmul.f32 %v1113_v46, %v332_v53 }
 0x114   :  { %v539_v57 = vadd.f32 %v1121_v60, %v501_v54 }
 0x115   :  { %v540_v59 = vadd.f32 %v1115_v49, %v502_v56 }
 0x116   :  { %v605_v61 = vpack.c.bf16 %v539_v57, %v539_v57 }
 0x117   :  { %v558_v62 = vmax.f32 %v540_v59, 0.0  ;;  %v380_v63 = vpop.f32.mrf.mxu2 }
 0x118   :  { %621 = vst [vmem:[%s1308_s3 + $0x6c] sm:$0xf] %v605_v61  ;;  %v430_v1 = vadd.f32 %v429_v58, %v380_v63  ;;  %v284_v2 = vpop.f32.mrf.mxu0 }
 0x119   :  { %v574_v3 = vpack.c.bf16 %v558_v62, %v558_v62  ;;  %v334_v4 = vadd.f32 %v333_v0, %v284_v2 }
 0x11a   :  { %v503_v5 = vmul.f32 %v1119_v55, %v430_v1 }
 0x11b   :  { %590 = vst [vmem:[%s1308_s3 + $0x70] sm:$0xf] %v574_v3  ;;  %v856_v6 = vpack.c.bf16 %v334_v4, %v332_v53  ;;  %v504_v7 = vmul.f32 %v1113_v46, %v334_v4 }
 0x11c   :  { %v541_v8 = vadd.f32 %v1121_v60, %v503_v5 }
 0x11d   :  { %864 = vst [vmem:[%s1309_s4 + $0x38] sm:$0xff] %v856_v6   ;;  %v542_v9 = vadd.f32 %v1115_v49, %v504_v7 }
 0x11e   :  { %v606_v10 = vpack.c.bf16 %v541_v8, %v541_v8 }
 0x11f   :  { %v559_v12 = vmax.f32 %v542_v9, 0.0  ;;  %v382_v13 = vpop.f32.mrf.mxu2 }
 0x120   :  { %622 = vst [vmem:[%s1308_s3 + $0x74] sm:$0xf] %v606_v10  ;;  %v432_v14 = vadd.f32 %v431_v11, %v382_v13 }
 0x121   :  { %v575_v15 = vpack.c.bf16 %v559_v12, %v559_v12 }
 0x122   :  { %v505_v46 = vmul.f32 %v1119_v55, %v432_v14 }
 0x123   :  { %591 = vst [vmem:[%s1308_s3 + $0x78] sm:$0xf] %v575_v15 }
 0x124   :  { %v543_v16 = vadd.f32 %v1121_v60, %v505_v46 }
 0x126   :  { %v607_v17 = vpack.c.bf16 %v543_v16, %v543_v16 }
 0x128   :  { %623 = vst [vmem:[%s1308_s3 + $0x7c] sm:$0xf] %v607_v17 }

// kernel: _lambda_.12
= control target key start
LH: loop header
LB: loop body
LE: loop exit
PB: predicated region body
PF: predicated region fallthrough
CT: control target
= control target key end

     0   :  { %vm420_vm0 = vcmask 261120   ;;  %s1533_s0 = inlined_call_operand.vmem [shape: bf16[128,288], index: 0, kind: input, shape index: {}]   ;;  %s1534_s1 = inlined_call_operand.vmem [shape: bf16[288,128], index: 1, kind: input, shape index: {}]   ;;  %s1535_s2 = inlined_call_operand.vmem [shape: f32[2,128], index: 2, kind: input, shape index: {}]   ;;  %s1536_s3 = inlined_call_operand.vmem [shape: bf16[128,256], index: 3, kind: input, shape index: {}]   ;;  %s1537_s4 = inlined_call_operand.vmem [shape: bf16[128,128], index: 4, kind: output, shape index: {0}]   ;;  %s1538_s5 = inlined_call_operand.vmem [shape: bf16[128,128], index: 5, kind: output, shape index: {1}]  }
   0x1   :  { %v990_v0 = vld [vmem:[%s1534_s1 + $0x38] sm:$0xff]  ;;  %v1000_v2 = vld [vmem:[%s1534_s1 + $0x88] sm:$0xff]  ;;  %v989_v3 = vld [vmem:[%s1534_s1 + $0x30] sm:$0xff] }
   0x2   :  { %v998_v1 = vld [vmem:[%s1534_s1 + $0x78] sm:$0xff]  ;;  %445 = vmatpush.bf16.msra.mxu0 %v990_v0  ;;  %1134 = vmatpush.bf16.msra.mxu3 %v990_v0  ;;  %v997_v4 = vld [vmem:[%s1534_s1 + $0x70] sm:$0xff]  ;;  %v999_v5 = vld [vmem:[%s1534_s1 + $0x80] sm:$0xff] }
   0x3   :  { %494 = vmatpush.bf16.msra.mxu1 %v998_v1  ;;  %549 = vmatpush.bf16.msra.mxu2 %v1000_v2  ;;  %v793_v6 = vld [vmem:[%s1533_s0 + $0x8] sm:$0xf]  ;;  %v961_v7 = vld [vmem:[%s1533_s0 + $0x10] sm:$0xf0]  ;;  %v987_v11 = vld [vmem:[%s1534_s1 + $0x20] sm:$0xff] }
   0x4   :  { %v794_v8 = vor.u32 %v961_v7, %v793_v6  ;;  %v988_v9 = vld [vmem:[%s1534_s1 + $0x28] sm:$0xff]  ;;  %v995_v12 = vld [vmem:[%s1534_s1 + $0x60] sm:$0xff]  ;;  %v986_v13 = vld [vmem:[%s1534_s1 + $0x18] sm:$0xff] }
   0x5   :  { %v996_v10 = vld [vmem:[%s1534_s1 + $0x68] sm:$0xff]  ;;  %v994_v14 = vld [vmem:[%s1534_s1 + $0x58] sm:$0xff]  ;;  %v985_v15 = vld [vmem:[%s1534_s1 + $0x10] sm:$0xff] }
   0x6   :  { %446 = vmatpush.bf16.msra.mxu0 %v989_v3  ;;  %1135 = vmatpush.bf16.msra.mxu3 %v989_v3  ;;  %v993_v16 = vld [vmem:[%s1534_s1 + $0x50] sm:$0xff]  ;;  %v805_v17 = vld [vmem:[%s1533_s0 + $0x20] sm:$0xf]  ;;  %v964_v18 = vld [vmem:[%s1533_s0 + $0x28] sm:$0xf0] }
   0x7   :  { %495 = vmatpush.bf16.msra.mxu1 %v997_v4  ;;  %550 = vmatpush.bf16.msra.mxu2 %v999_v5  ;;  %v806_v19 = vor.u32 %v964_v18, %v805_v17  ;;  %v984_v20 = vld [vmem:[%s1534_s1 + $0x8] sm:$0xff]  ;;  %v983_v22 = vld [vmem:[%s1534_s1] sm:$0xff]  ;;  %v857_v26 = vld [vmem:[%s1533_s0 + $0x90] sm:$0xf] }
   0x8   :  { %v992_v21 = vld [vmem:[%s1534_s1 + $0x48] sm:$0xff]  ;;  %v991_v23 = vld [vmem:[%s1534_s1 + $0x40] sm:$0xff]  ;;  %v978_v27 = vld [vmem:[%s1533_s0 + $0x98] sm:$0xf0] }
   0x9   :  { %v785_v24 = vld [vmem:[%s1533_s0] sm:$0xf]  ;;  %v960_v25 = vld [vmem:[%s1533_s0 + $0x8] sm:$0xf0]  ;;  %v959_v28 = vld [vmem:[%s1533_s0 + $0x4] sm:$0xf]  ;;  %v858_v31 = vor.u32 %v978_v27, %v857_v26 }
   0xa   :  { %951 = vmatmul.msk.bf16.vlgmr.msra.gmra.mxu2 %vm420_vm0, %v794_v8  ;;  %447 = vmatpush.bf16.msra.mxu0 %v988_v9  ;;  %v787_v29 = vld [vmem:[%s1533_s0 + $0xc] sm:$0xf0]  ;;  %v786_v30 = vor.u32 %v960_v25, %v785_v24  ;;  %v817_v33 = vld [vmem:[%s1533_s0 + $0x38] sm:$0xf]  ;;  %v967_v34 = vld [vmem:[%s1533_s0 + $0x40] sm:$0xf0] }
   0xb   :  { %1136 = vmatpush.bf16.msra.mxu3 %v988_v9  ;;  %496 = vmatpush.bf16.msra.mxu1 %v996_v10  ;;  %v790_v32 = vor.u32 %v959_v28, %v787_v29  ;;  %v818_v35 = vor.u32 %v967_v34, %v817_v33  ;;  %v797_v36 = vld [vmem:[%s1533_s0 + $0x18] sm:$0xf]  ;;  %v963_v37 = vld [vmem:[%s1533_s0 + $0x20] sm:$0xf0]  ;;  %v869_v38 = vld [vmem:[%s1533_s0 + $0xa8] sm:$0xf] }
   0xc   :  { %v981_v39 = vld [vmem:[%s1533_s0 + $0xb0] sm:$0xf0]  ;;  %v962_v40 = vld [vmem:[%s1533_s0 + $0x1c] sm:$0xf]  ;;  %v799_v41 = vld [vmem:[%s1533_s0 + $0x24] sm:$0xf0]  ;;  %v798_v42 = vor.u32 %v963_v37, %v797_v36 }
   0xd   :  { %v870_v43 = vor.u32 %v981_v39, %v869_v38  ;;  %v802_v44 = vor.u32 %v962_v40, %v799_v41  ;;  %v829_v45 = vld [vmem:[%s1533_s0 + $0x50] sm:$0xf]  ;;  %v970_v46 = vld [vmem:[%s1533_s0 + $0x58] sm:$0xf0]  ;;  %v965_v50 = vld [vmem:[%s1533_s0 + $0x34] sm:$0xf] }
   0xe   :  { %448 = vmatpush.bf16.msra.mxu0 %v987_v11  ;;  %v830_v47 = vor.u32 %v970_v46, %v829_v45  ;;  %v809_v48 = vld [vmem:[%s1533_s0 + $0x30] sm:$0xf]  ;;  %v966_v49 = vld [vmem:[%s1533_s0 + $0x38] sm:$0xf0]  ;;  %v811_v51 = vld [vmem:[%s1533_s0 + $0x3c] sm:$0xf0] }
   0xf   :  { %1137 = vmatpush.bf16.msra.mxu3 %v987_v11  ;;  %497 = vmatpush.bf16.msra.mxu1 %v995_v12  ;;  %v977_v52 = vld [vmem:[%s1533_s0 + $0x94] sm:$0xf]  ;;  %v859_v53 = vld [vmem:[%s1533_s0 + $0x9c] sm:$0xf0]  ;;  %v810_v54 = vor.u32 %v966_v49, %v809_v48  ;;  %v814_v55 = vor.u32 %v965_v50, %v811_v51  ;;  %v841_v57 = vld [vmem:[%s1533_s0 + $0x68] sm:$0xf] }
  0x10   :  { %v862_v56 = vor.u32 %v977_v52, %v859_v53  ;;  %v973_v58 = vld [vmem:[%s1533_s0 + $0x70] sm:$0xf0]  ;;  %v821_v60 = vld [vmem:[%s1533_s0 + $0x48] sm:$0xf]  ;;  %v968_v62 = vld [vmem:[%s1533_s0 + $0x4c] sm:$0xf] }
  0x11   :  { %v842_v59 = vor.u32 %v973_v58, %v841_v57  ;;  %v969_v61 = vld [vmem:[%s1533_s0 + $0x50] sm:$0xf0]  ;;  %v823_v63 = vld [vmem:[%s1533_s0 + $0x54] sm:$0xf0]  ;;  %v980_v0 = vld [vmem:[%s1533_s0 + $0xac] sm:$0xf] }
  0x12   :  { %449 = vmatpush.bf16.msra.mxu0 %v986_v13  ;;  %v822_v2 = vor.u32 %v969_v61, %v821_v60  ;;  %v826_v3 = vor.u32 %v968_v62, %v823_v63  ;;  %v853_v5 = vld [vmem:[%s1533_s0 + $0x80] sm:$0xf]  ;;  %v976_v6 = vld [vmem:[%s1533_s0 + $0x88] sm:$0xf0]  ;;  %v835_v11 = vld [vmem:[%s1533_s0 + $0x6c] sm:$0xf0] }
  0x13   :  { %1138 = vmatpush.bf16.msra.mxu3 %v986_v13  ;;  %498 = vmatpush.bf16.msra.mxu1 %v994_v14  ;;  %v854_v7 = vor.u32 %v976_v6, %v853_v5  ;;  %v833_v8 = vld [vmem:[%s1533_s0 + $0x60] sm:$0xf]  ;;  %v972_v9 = vld [vmem:[%s1533_s0 + $0x68] sm:$0xf0]  ;;  %v845_v17 = vld [vmem:[%s1533_s0 + $0x78] sm:$0xf] }
  0x14   :  { %v975_v18 = vld [vmem:[%s1533_s0 + $0x80] sm:$0xf0]  ;;  %v982_v24 = vld [vmem:[%s1533_s0 + $0xb8] sm:$0xf0]  ;;  %v768_v27 = vld [vmem:[%s1536_s3 + $0xc] sm:$0xf] }
  0x15   :  { %v767_v26 = vld [vmem:[%s1536_s3 + $0x4] sm:$0xf]  ;;  %39 = vst [vmem:[#allocation2 + $0x4] sm:$0xf] %v768_v27  ;;  %v769_v29 = vld [vmem:[%s1536_s3 + $0x14] sm:$0xf] }
  0x16   :  { %450 = vmatpush.bf16.msra.mxu0 %v985_v15  ;;  %37 = vst [vmem:[#allocation2] sm:$0xf] %v767_v26  ;;  %v771_v33 = vld [vmem:[%s1536_s3 + $0x24] sm:$0xf]  ;;  %v772_v34 = vld [vmem:[%s1536_s3 + $0x2c] sm:$0xf] }
  0x17   :  { %1139 = vmatpush.bf16.msra.mxu3 %v985_v15  ;;  %499 = vmatpush.bf16.msra.mxu1 %v993_v16  ;;  %v979_v15 = vld [vmem:[%s1533_s0 + $0xa0] sm:$0xf0]  ;;  %41 = vst [vmem:[#allocation2 + $0x8] sm:$0xf] %v769_v29  ;;  %v624_v37 = vld [vmem:[%s1535_s2] sm:$0x3] }
  0x18   :  { %45 = vst [vmem:[#allocation2 + $0x10] sm:$0xf] %v771_v33  ;;  %v1407_v40 = vperm.slane %v624_v37, 0 }
  0x19   :  { %47 = vst [vmem:[#allocation2 + $0x14] sm:$0xf] %v772_v34 }
  0x1a   :  { %952 = vmatmul.msk.bf16.gmra.mxu2 %vm420_vm0, %v806_v19  ;;  %451 = vmatpush.bf16.msra.mxu0 %v984_v20  ;;  %v974_v19 = vld [vmem:[%s1533_s0 + $0x7c] sm:$0xf] }
  0x1b   :  { %1140 = vmatpush.bf16.msra.mxu3 %v984_v20  ;;  %500 = vmatpush.bf16.msra.mxu1 %v992_v21  ;;  %v847_v20 = vld [vmem:[%s1533_s0 + $0x84] sm:$0xf0] }
  0x1d   :  { %v1042_v45 = vld [vmem:[#allocation2] sm:$0xff]  }
  0x1e   :  { %452 = vmatpush.bf16.msra.mxu0 %v983_v22  ;;  %v1043_v49 = vunpack.c.l.bf16 %v1042_v45  ;;  %v1044_v53 = vunpack.c.h.bf16 %v1042_v45 }
  0x1f   :  { %1141 = vmatpush.bf16.msra.mxu3 %v983_v22  ;;  %501 = vmatpush.bf16.msra.mxu1 %v991_v23  ;;  %v850_v22 = vor.u32 %v974_v19, %v847_v20 }
  0x20   :  { %v1121_v33 = vld [vmem:[#allocation2 + $0x10] sm:$0xff]  }
  0x21   :  { %453 = vmatmul.bf16.vlgmr.msra.gmra.mxu0 %v786_v30  ;;  %v770_v30 = vld [vmem:[%s1536_s3 + $0x1c] sm:$0xf]  ;;  %v1052_v45 = vunpack.c.h.bf16 %v1121_v33 }
  0x22   :  { %483 = vmatmul.bf16.vlgmr.msra.gmra.mxu3 %v858_v31  ;;  %502 = vmatmul.bf16.vlgmr.msra.gmra.mxu1 %v790_v32  ;;  %43 = vst [vmem:[#allocation2 + $0xc] sm:$0xf] %v770_v30 }
  0x23   :  { %1142 = vmatpush.bf16.msrb.mxu3 %v998_v1  ;;  %v871_v1 = vld [vmem:[%s1533_s0 + $0xb4] sm:$0xf0] }
  0x27   :  { %1143 = vmatpush.bf16.msrb.mxu3 %v997_v4  ;;  %v874_v4 = vor.u32 %v980_v0, %v871_v1 }
  0x29   :  { %v1120_v6 = vld [vmem:[#allocation2 + $0x8] sm:$0xff]  }
  0x2a   :  { %953 = vmatmul.msk.bf16.gmra.mxu2 %vm420_vm0, %v818_v35 }
  0x2b   :  { %1144 = vmatpush.bf16.msrb.mxu3 %v996_v10  ;;  %v971_v10 = vld [vmem:[%s1533_s0 + $0x64] sm:$0xf] }
  0x2c   :  { %v838_v13 = vor.u32 %v971_v10, %v835_v11  ;;  %v1047_v10 = vunpack.c.l.bf16 %v1120_v6 }
  0x2f   :  { %1145 = vmatpush.bf16.msrb.mxu3 %v995_v12  ;;  %v834_v12 = vor.u32 %v972_v9, %v833_v8 }
  0x31   :  { %458 = vmatmul.bf16.gmra.mxu0 %v798_v42 }
  0x32   :  { %488 = vmatmul.bf16.gmra.mxu3 %v870_v43  ;;  %507 = vmatmul.bf16.gmra.mxu1 %v802_v44  ;;  %v1410_v43 = vperm.slane %v624_v37, 1  ;;  %v780_v37 = vld [vmem:[%s1536_s3 + $0x6c] sm:$0xf] }
  0x33   :  { %1146 = vmatpush.bf16.msrb.mxu3 %v994_v14  ;;  %v865_v14 = vld [vmem:[%s1533_s0 + $0x98] sm:$0xf]  ;;  %63 = vst [vmem:[#allocation2 + $0x34] sm:$0xf] %v780_v37 }
  0x37   :  { %1147 = vmatpush.bf16.msrb.mxu3 %v993_v16  ;;  %v866_v16 = vor.u32 %v979_v15, %v865_v14  ;;  %v1048_v15 = vunpack.c.h.bf16 %v1120_v6 }
  0x3a   :  { %954 = vmatmul.msk.bf16.gmra.mxu2 %vm420_vm0, %v830_v47 }
  0x3b   :  { %1148 = vmatpush.bf16.msrb.mxu3 %v992_v21  ;;  %v846_v21 = vor.u32 %v975_v18, %v845_v17  ;;  %v775_v17 = vld [vmem:[%s1536_s3 + $0x44] sm:$0xf]  ;;  %v776_v18 = vld [vmem:[%s1536_s3 + $0x4c] sm:$0xf] }
  0x3c   :  { %53 = vst [vmem:[#allocation2 + $0x20] sm:$0xf] %v775_v17 }
  0x3d   :  { %55 = vst [vmem:[#allocation2 + $0x24] sm:$0xf] %v776_v18 }
  0x3f   :  { %1149 = vmatpush.bf16.msrb.mxu3 %v991_v23  ;;  %v877_v23 = vld [vmem:[%s1533_s0 + $0xb0] sm:$0xf] }
  0x40   :  { %v878_v25 = vor.u32 %v982_v24, %v877_v23 }
  0x41   :  { %463 = vmatmul.bf16.gmra.mxu0 %v810_v54 }
  0x42   :  { %512 = vmatmul.bf16.gmra.mxu1 %v814_v55  ;;  %532 = vmatmul.bf16.vlgmr.msrb.gmra.mxu3 %v862_v56  ;;  %v773_v55 = vld [vmem:[%s1536_s3 + $0x34] sm:$0xf]  ;;  %v774_v56 = vld [vmem:[%s1536_s3 + $0x3c] sm:$0xf] }
  0x43   :  { %49 = vst [vmem:[#allocation2 + $0x18] sm:$0xf] %v773_v55 }
  0x44   :  { %51 = vst [vmem:[#allocation2 + $0x1c] sm:$0xf] %v774_v56 }
  0x4a   :  { %955 = vmatmul.msk.bf16.gmra.mxu2 %vm420_vm0, %v842_v59 }
  0x51   :  { %468 = vmatmul.bf16.gmra.mxu0 %v822_v2 }
  0x52   :  { %517 = vmatmul.bf16.gmra.mxu1 %v826_v3  ;;  %537 = vmatmul.bf16.gmra.mxu3 %v874_v4 }
  0x5a   :  { %956 = vmatmul.msk.bf16.gmra.mxu2 %vm420_vm0, %v854_v7 }
  0x61   :  { %473 = vmatmul.bf16.gmra.mxu0 %v834_v12 }
  0x62   :  { %522 = vmatmul.bf16.gmra.mxu1 %v838_v13 }
  0x6a   :  { %957 = vmatmul.msk.bf16.gmra.mxu2 %vm420_vm0, %v866_v16 }
  0x71   :  { %478 = vmatmul.bf16.gmra.mxu0 %v846_v21 }
  0x72   :  { %527 = vmatmul.bf16.gmra.mxu1 %v850_v22 }
  0x7a   :  { %958 = vmatmul.msk.bf16.gmra.mxu2 %vm420_vm0, %v878_v25 }
  0x8d   :  { %v552_v28 = vpop.f32.mrf.mxu2 }
  0x95   :  { %v554_v31 = vpop.f32.mrf.mxu2 }
  0x9d   :  { %v557_v32 = vpop.f32.mrf.mxu2 }
  0x9e   :  { %v454_v35 = vpop.f32.mrf.mxu0 }
  0x9f   :  { %v503_v36 = vpop.f32.mrf.mxu1 }
  0xa0   :  { %v504_v38 = vadd.f32 %v503_v36, %v454_v35  ;;  %v779_v36 = vld [vmem:[%s1536_s3 + $0x64] sm:$0xf] }
  0xa1   :  { %61 = vst [vmem:[#allocation2 + $0x30] sm:$0xf] %v779_v36 }
  0xa2   :  { %v553_v39 = vadd.f32 %v552_v28, %v504_v38 }
  0xa4   :  { %v626_v42 = vmul.f32 %v1407_v40, %v553_v39 }
  0xa5   :  { %v559_v41 = vpop.f32.mrf.mxu2  ;;  %v1429_v12 = vpop.f32.mrf.mxu3 }
  0xa6   :  { %v456_v44 = vpop.f32.mrf.mxu0  ;;  %v643_v48 = vadd.f32 %v1410_v43, %v626_v42 }
  0xa7   :  { %v505_v46 = vpop.f32.mrf.mxu1 }
  0xa8   :  { %v506_v47 = vadd.f32 %v505_v46, %v456_v44  ;;  %v691_v57 = vadd.f32 %v1043_v49, %v643_v48  ;;  %v778_v48 = vld [vmem:[%s1536_s3 + $0x5c] sm:$0xf] }
  0xa9   :  { %59 = vst [vmem:[#allocation2 + $0x2c] sm:$0xf] %v778_v48 }
  0xaa   :  { %v555_v50 = vadd.f32 %v554_v31, %v506_v47  ;;  %v707_v63 = vmax.f32 %v691_v57, 0.0  ;;  %v777_v47 = vld [vmem:[%s1536_s3 + $0x54] sm:$0xf] }
  0xab   :  { %57 = vst [vmem:[#allocation2 + $0x28] sm:$0xf] %v777_v47 }
  0xac   :  { %v1004_v51 = vpack.c.bf16 %v555_v50, %v553_v39  ;;  %v627_v52 = vmul.f32 %v1407_v40, %v555_v50  ;;  %v1051_v39 = vunpack.c.l.bf16 %v1121_v33 }
  0xad   :  { %v562_v54 = vpop.f32.mrf.mxu2  ;;  %v1442_v29 = vpop.f32.mrf.mxu3 }
  0xae   :  { %1005 = vst [vmem:[%s1538_s5] sm:$0xff] %v1004_v51   ;;  %v644_v58 = vadd.f32 %v1410_v43, %v627_v52  ;;  %v459_v59 = vpop.f32.mrf.mxu0 }
  0xaf   :  { %v508_v60 = vpop.f32.mrf.mxu1 }
  0xb0   :  { %v692_v61 = vadd.f32 %v1044_v53, %v644_v58  ;;  %v509_v62 = vadd.f32 %v508_v60, %v459_v59 }
  0xb2   :  { %v708_v0 = vmax.f32 %v692_v61, 0.0  ;;  %v558_v1 = vadd.f32 %v557_v32, %v509_v62 }
  0xb4   :  { %v1076_v2 = vpack.c.bf16 %v708_v0, %v707_v63  ;;  %v628_v4 = vmul.f32 %v1407_v40, %v558_v1  ;;  %v1122_v63 = vld [vmem:[#allocation2 + $0x18] sm:$0xff]  }
  0xb5   :  { %v564_v3 = vpop.f32.mrf.mxu2  ;;  %v1466_v52 = vpop.f32.mrf.mxu3  ;;  %v1055_v6 = vunpack.c.l.bf16 %v1122_v63 }
  0xb6   :  { %1077 = vst [vmem:[%s1537_s4] sm:$0xff] %v1076_v2   ;;  %v461_v5 = vpop.f32.mrf.mxu0  ;;  %v645_v9 = vadd.f32 %v1410_v43, %v628_v4  ;;  %v782_v4 = vld [vmem:[%s1536_s3 + $0x7c] sm:$0xf] }
  0xb7   :  { %v510_v7 = vpop.f32.mrf.mxu1  ;;  %67 = vst [vmem:[#allocation2 + $0x3c] sm:$0xf] %v782_v4 }
  0xb8   :  { %v511_v8 = vadd.f32 %v510_v7, %v461_v5  ;;  %v693_v19 = vadd.f32 %v1047_v10, %v645_v9  ;;  %v1056_v10 = vunpack.c.h.bf16 %v1122_v63  ;;  %v1124_v63 = vld [vmem:[#allocation2 + $0x28] sm:$0xff]  }
  0xba   :  { %v560_v11 = vadd.f32 %v559_v41, %v511_v8  ;;  %v709_v25 = vmax.f32 %v693_v19, 0.0 }
  0xbc   :  { %v1009_v13 = vpack.c.bf16 %v560_v11, %v558_v1  ;;  %v629_v14 = vmul.f32 %v1407_v40, %v560_v11 }
  0xbd   :  { %v567_v16 = vpop.f32.mrf.mxu2  ;;  %v1472_v2 = vpop.f32.mrf.mxu3 }
  0xbe   :  { %1113 = vst [vmem:[%s1538_s5 + $0x8] sm:$0xff] %v1009_v13   ;;  %v646_v20 = vadd.f32 %v1410_v43, %v629_v14  ;;  %v464_v21 = vpop.f32.mrf.mxu0 }
  0xbf   :  { %v513_v22 = vpop.f32.mrf.mxu1 }
  0xc0   :  { %v694_v23 = vadd.f32 %v1048_v15, %v646_v20  ;;  %v514_v24 = vadd.f32 %v513_v22, %v464_v21 }
  0xc2   :  { %v710_v26 = vmax.f32 %v694_v23, 0.0  ;;  %v563_v27 = vadd.f32 %v562_v54, %v514_v24 }
  0xc4   :  { %v1081_v28 = vpack.c.bf16 %v710_v26, %v709_v25  ;;  %v630_v31 = vmul.f32 %v1407_v40, %v563_v27 }
  0xc5   :  { %v569_v30 = vpop.f32.mrf.mxu2  ;;  %v533_v22 = vpop.f32.mrf.mxu3 }
  0xc6   :  { %1127 = vst [vmem:[%s1537_s4 + $0x8] sm:$0xff] %v1081_v28   ;;  %v466_v32 = vpop.f32.mrf.mxu0  ;;  %v647_v38 = vadd.f32 %v1410_v43, %v630_v31 }
  0xc7   :  { %v515_v34 = vpop.f32.mrf.mxu1 }
  0xc8   :  { %v516_v35 = vadd.f32 %v515_v34, %v466_v32  ;;  %v695_v49 = vadd.f32 %v1051_v39, %v647_v38  ;;  %v534_v34 = vadd.f32 %v533_v22, %v1429_v12 }
  0xca   :  { %v565_v41 = vadd.f32 %v564_v3, %v516_v35  ;;  %v711_v56 = vmax.f32 %v695_v49, 0.0  ;;  %v781_v3 = vld [vmem:[%s1536_s3 + $0x74] sm:$0xf] }
  0xcb   :  { %65 = vst [vmem:[#allocation2 + $0x38] sm:$0xf] %v781_v3 }
  0xcc   :  { %v1014_v42 = vpack.c.bf16 %v565_v41, %v563_v27  ;;  %v631_v44 = vmul.f32 %v1407_v40, %v565_v41  ;;  %v1123_v27 = vld [vmem:[#allocation2 + $0x20] sm:$0xff]  }
  0xcd   :  { %v572_v46 = vpop.f32.mrf.mxu2  ;;  %v1059_v32 = vunpack.c.l.bf16 %v1123_v27  ;;  %v1060_v37 = vunpack.c.h.bf16 %v1123_v27  ;;  %v535_v38 = vpop.f32.mrf.mxu3 }
  0xce   :  { %1114 = vst [vmem:[%s1538_s5 + $0x10] sm:$0xff] %v1014_v42   ;;  %v648_v50 = vadd.f32 %v1410_v43, %v631_v44  ;;  %v469_v51 = vpop.f32.mrf.mxu0 }
  0xcf   :  { %v518_v53 = vpop.f32.mrf.mxu1 }
  0xd0   :  { %v696_v54 = vadd.f32 %v1052_v45, %v648_v50  ;;  %v519_v55 = vadd.f32 %v518_v53, %v469_v51  ;;  %v1125_v51 = vld [vmem:[#allocation2 + $0x30] sm:$0xff]  }
  0xd2   :  { %v712_v57 = vmax.f32 %v696_v54, 0.0  ;;  %v568_v58 = vadd.f32 %v567_v16, %v519_v55  ;;  %v536_v54 = vadd.f32 %v535_v38, %v1442_v29  ;;  %v1068_v29 = vunpack.c.h.bf16 %v1125_v51  ;;  %v1126_v27 = vld [vmem:[#allocation2 + $0x38] sm:$0xff]  }
  0xd4   :  { %v1086_v59 = vpack.c.bf16 %v712_v57, %v711_v56  ;;  %v632_v61 = vmul.f32 %v1407_v40, %v568_v58  ;;  %v1067_v57 = vunpack.c.l.bf16 %v1125_v51 }
  0xd5   :  { %v574_v60 = vpop.f32.mrf.mxu2 }
  0xd6   :  { %1128 = vst [vmem:[%s1537_s4 + $0x10] sm:$0xff] %v1086_v59   ;;  %v471_v62 = vpop.f32.mrf.mxu0  ;;  %v649_v5 = vadd.f32 %v1410_v43, %v632_v61 }
  0xd7   :  { %v520_v0 = vpop.f32.mrf.mxu1 }
  0xd8   :  { %v521_v1 = vadd.f32 %v520_v0, %v471_v62  ;;  %v697_v13 = vadd.f32 %v1055_v6, %v649_v5  ;;  %v538_v62 = vpop.f32.mrf.mxu3 }
  0xda   :  { %v570_v7 = vadd.f32 %v569_v30, %v521_v1  ;;  %v713_v19 = vmax.f32 %v697_v13, 0.0 }
  0xdc   :  { %v1019_v8 = vpack.c.bf16 %v570_v7, %v568_v58  ;;  %v633_v9 = vmul.f32 %v1407_v40, %v570_v7  ;;  %v1063_v7 = vunpack.c.l.bf16 %v1124_v63 }
  0xdd   :  { %v577_v11 = vpop.f32.mrf.mxu2 }
  0xde   :  { %1115 = vst [vmem:[%s1538_s5 + $0x18] sm:$0xff] %v1019_v8   ;;  %v650_v14 = vadd.f32 %v1410_v43, %v633_v9  ;;  %v474_v15 = vpop.f32.mrf.mxu0 }
  0xdf   :  { %v523_v16 = vpop.f32.mrf.mxu1 }
  0xe0   :  { %v698_v17 = vadd.f32 %v1056_v10, %v650_v14  ;;  %v524_v18 = vadd.f32 %v523_v16, %v474_v15  ;;  %v539_v10 = vadd.f32 %v538_v62, %v1466_v52  ;;  %v1064_v15 = vunpack.c.h.bf16 %v1124_v63 }
  0xe2   :  { %v714_v20 = vmax.f32 %v698_v17, 0.0  ;;  %v573_v21 = vadd.f32 %v572_v46, %v524_v18 }
  0xe4   :  { %v1091_v23 = vpack.c.bf16 %v714_v20, %v713_v19  ;;  %v634_v25 = vmul.f32 %v1407_v40, %v573_v21 }
  0xe5   :  { %v579_v24 = vpop.f32.mrf.mxu2 }
  0xe6   :  { %1129 = vst [vmem:[%s1537_s4 + $0x18] sm:$0xff] %v1091_v23   ;;  %v476_v26 = vpop.f32.mrf.mxu0  ;;  %v651_v31 = vadd.f32 %v1410_v43, %v634_v25 }
  0xe7   :  { %v525_v28 = vpop.f32.mrf.mxu1 }
  0xe8   :  { %v526_v30 = vadd.f32 %v525_v28, %v476_v26  ;;  %v699_v41 = vadd.f32 %v1059_v32, %v651_v31 }
  0xea   :  { %v575_v33 = vadd.f32 %v574_v60, %v526_v30  ;;  %v715_v49 = vmax.f32 %v699_v41, 0.0 }
  0xec   :  { %v1024_v35 = vpack.c.bf16 %v575_v33, %v573_v21  ;;  %v635_v36 = vmul.f32 %v1407_v40, %v575_v33  ;;  %v1071_v33 = vunpack.c.l.bf16 %v1126_v27 }
  0xed   :  { %v582_v39 = vpop.f32.mrf.mxu2 }
  0xee   :  { %1116 = vst [vmem:[%s1538_s5 + $0x20] sm:$0xff] %v1024_v35   ;;  %v652_v42 = vadd.f32 %v1410_v43, %v635_v36  ;;  %v583_v44 = vadd.f32 %v582_v39, %v534_v34  ;;  %v479_v45 = vpop.f32.mrf.mxu0 }
  0xef   :  { %v528_v46 = vpop.f32.mrf.mxu1 }
  0xf0   :  { %v700_v47 = vadd.f32 %v1060_v37, %v652_v42  ;;  %v529_v48 = vadd.f32 %v528_v46, %v479_v45  ;;  %v638_v12 = vmul.f32 %v1407_v40, %v583_v44  ;;  %v1072_v37 = vunpack.c.h.bf16 %v1126_v27 }
  0xf2   :  { %v716_v50 = vmax.f32 %v700_v47, 0.0  ;;  %v578_v53 = vadd.f32 %v577_v11, %v529_v48  ;;  %v655_v56 = vadd.f32 %v1410_v43, %v638_v12 }
  0xf4   :  { %v1096_v55 = vpack.c.bf16 %v716_v50, %v715_v49  ;;  %v636_v59 = vmul.f32 %v1407_v40, %v578_v53  ;;  %v703_v5 = vadd.f32 %v1067_v57, %v655_v56 }
  0xf5   :  { %v584_v58 = vpop.f32.mrf.mxu2 }
  0xf6   :  { %1130 = vst [vmem:[%s1537_s4 + $0x20] sm:$0xff] %v1096_v55   ;;  %v585_v60 = vadd.f32 %v584_v58, %v536_v54  ;;  %v481_v61 = vpop.f32.mrf.mxu0  ;;  %v653_v6 = vadd.f32 %v1410_v43, %v636_v59  ;;  %v719_v16 = vmax.f32 %v703_v5, 0.0 }
  0xf7   :  { %v530_v0 = vpop.f32.mrf.mxu1 }
  0xf8   :  { %v1034_v1 = vpack.c.bf16 %v585_v60, %v583_v44  ;;  %v639_v3 = vmul.f32 %v1407_v40, %v585_v60  ;;  %v531_v4 = vadd.f32 %v530_v0, %v481_v61  ;;  %v701_v18 = vadd.f32 %v1063_v7, %v653_v6 }
  0xfa   :  { %1118 = vst [vmem:[%s1538_s5 + $0x30] sm:$0xff] %v1034_v1   ;;  %v656_v8 = vadd.f32 %v1410_v43, %v639_v3  ;;  %v580_v9 = vadd.f32 %v579_v24, %v531_v4  ;;  %v540_v24 = vpop.f32.mrf.mxu3  ;;  %v717_v52 = vmax.f32 %v701_v18, 0.0 }
  0xfb   :  { %v541_v28 = vadd.f32 %v540_v24, %v1472_v2 }
  0xfc   :  { %v704_v11 = vadd.f32 %v1068_v29, %v656_v8  ;;  %v1029_v13 = vpack.c.bf16 %v580_v9, %v578_v53  ;;  %v637_v14 = vmul.f32 %v1407_v40, %v580_v9 }
  0xfd   :  { %v587_v17 = vpop.f32.mrf.mxu2 }
  0xfe   :  { %v720_v19 = vmax.f32 %v704_v11, 0.0  ;;  %1117 = vst [vmem:[%s1538_s5 + $0x28] sm:$0xff] %v1029_v13   ;;  %v654_v20 = vadd.f32 %v1410_v43, %v637_v14  ;;  %v588_v21 = vadd.f32 %v587_v17, %v539_v10 }
 0x100   :  { %v1106_v22 = vpack.c.bf16 %v720_v19, %v719_v16  ;;  %v702_v23 = vadd.f32 %v1064_v15, %v654_v20  ;;  %v640_v26 = vmul.f32 %v1407_v40, %v588_v21 }
 0x102   :  { %1132 = vst [vmem:[%s1537_s4 + $0x30] sm:$0xff] %v1106_v22   ;;  %v718_v25 = vmax.f32 %v702_v23, 0.0  ;;  %v657_v32 = vadd.f32 %v1410_v43, %v640_v26 }
 0x104   :  { %v1101_v30 = vpack.c.bf16 %v718_v25, %v717_v52  ;;  %v705_v38 = vadd.f32 %v1071_v33, %v657_v32 }
 0x105   :  { %v589_v31 = vpop.f32.mrf.mxu2 }
 0x106   :  { %1131 = vst [vmem:[%s1537_s4 + $0x28] sm:$0xff] %v1101_v30   ;;  %v590_v34 = vadd.f32 %v589_v31, %v541_v28  ;;  %v721_v41 = vmax.f32 %v705_v38, 0.0 }
 0x108   :  { %v1039_v35 = vpack.c.bf16 %v590_v34, %v588_v21  ;;  %v641_v36 = vmul.f32 %v1407_v40, %v590_v34 }
 0x10a   :  { %1119 = vst [vmem:[%s1538_s5 + $0x38] sm:$0xff] %v1039_v35   ;;  %v658_v2 = vadd.f32 %v1410_v43, %v641_v36 }
 0x10c   :  { %v706_v39 = vadd.f32 %v1072_v37, %v658_v2 }
 0x10e   :  { %v722_v42 = vmax.f32 %v706_v39, 0.0 }
 0x110   :  { %v1111_v44 = vpack.c.bf16 %v722_v42, %v721_v41 }
 0x112   :  { %1133 = vst [vmem:[%s1537_s4 + $0x38] sm:$0xff] %v1111_v44  }

// kernel: _lambda_.13
= control target key start
LH: loop header
LB: loop body
LE: loop exit
PB: predicated region body
PF: predicated region fallthrough
CT: control target
= control target key end

     0   :  { %vm271_vm0 = vcmask 261120   ;;  %s1007_s1 = inlined_call_operand.vmem [shape: bf16[288,256], index: 1, kind: input, shape index: {}]   ;;  %s1008_s0 = inlined_call_operand.vmem [shape: bf16[32,288], index: 0, kind: input, shape index: {}]   ;;  %s1009_s2 = inlined_call_operand.vmem [shape: f32[2,256], index: 2, kind: input, shape index: {}]   ;;  %s1010_s3 = inlined_call_operand.vmem [shape: bf16[32,256], index: 3, kind: output, shape index: {0}]   ;;  %s1011_s4 = inlined_call_operand.vmem [shape: bf16[32,128], index: 4, kind: output, shape index: {1}]  }
   0x1   :  { %v540_v0 = vld [vmem:[%s1007_s1 + $0x70] sm:$0xf]  ;;  %v651_v1 = vld [vmem:[%s1007_s1 + $0x74] sm:$0xf0]  ;;  %v650_v9 = vld [vmem:[%s1007_s1 + $0x74] sm:$0xf] }
   0x2   :  { %v604_v2 = vld [vmem:[%s1007_s1 + $0xf0] sm:$0xf]  ;;  %v541_v3 = vor.u32 %v651_v1, %v540_v0  ;;  %v667_v4 = vld [vmem:[%s1007_s1 + $0xf4] sm:$0xf0]  ;;  %v542_v10 = vld [vmem:[%s1007_s1 + $0x78] sm:$0xf0] }
   0x3   :  { %v620_v5 = vld [vmem:[%s1007_s1 + $0x110] sm:$0xf]  ;;  %v671_v6 = vld [vmem:[%s1007_s1 + $0x114] sm:$0xf0]  ;;  %v605_v7 = vor.u32 %v667_v4, %v604_v2  ;;  %v532_v11 = vld [vmem:[%s1007_s1 + $0x60] sm:$0xf]  ;;  %v545_v12 = vor.u32 %v650_v9, %v542_v10 }
   0x4   :  { %v621_v8 = vor.u32 %v671_v6, %v620_v5  ;;  %278 = vmatpush.bf16.msra.mxu0 %v541_v3  ;;  %v649_v13 = vld [vmem:[%s1007_s1 + $0x64] sm:$0xf0]  ;;  %v596_v14 = vld [vmem:[%s1007_s1 + $0xe0] sm:$0xf]  ;;  %v648_v20 = vld [vmem:[%s1007_s1 + $0x64] sm:$0xf] }
   0x5   :  { %v665_v15 = vld [vmem:[%s1007_s1 + $0xe4] sm:$0xf0]  ;;  %297 = vmatpush.bf16.msra.mxu1 %v605_v7  ;;  %v533_v16 = vor.u32 %v649_v13, %v532_v11  ;;  %v612_v18 = vld [vmem:[%s1007_s1 + $0x100] sm:$0xf]  ;;  %335 = vmatpush.bf16.msra.mxu3 %v545_v12  ;;  %v534_v22 = vld [vmem:[%s1007_s1 + $0x68] sm:$0xf0] }
   0x6   :  { %322 = vmatpush.bf16.msra.mxu2 %v621_v8  ;;  %v597_v17 = vor.u32 %v665_v15, %v596_v14  ;;  %v669_v19 = vld [vmem:[%s1007_s1 + $0x104] sm:$0xf0]  ;;  %v632_v24 = vld [vmem:[%s1008_s0 + $0x10] sm:$0xf0]  ;;  %v537_v25 = vor.u32 %v648_v20, %v534_v22  ;;  %v606_v27 = vld [vmem:[%s1007_s1 + $0xf8] sm:$0xf0] }
   0x7   :  { %v613_v21 = vor.u32 %v669_v19, %v612_v18  ;;  %v468_v23 = vld [vmem:[%s1008_s0 + $0x8] sm:$0xf]  ;;  %v666_v26 = vld [vmem:[%s1007_s1 + $0xf4] sm:$0xf]  ;;  %v524_v28 = vld [vmem:[%s1007_s1 + $0x50] sm:$0xf] }
   0x8   :  { %279 = vmatpush.bf16.msra.mxu0 %v533_v16  ;;  %v773_v29 = vor.u32 %v632_v24, %v468_v23  ;;  %v609_v30 = vor.u32 %v666_v26, %v606_v27  ;;  %v647_v31 = vld [vmem:[%s1007_s1 + $0x54] sm:$0xf0]  ;;  %v588_v32 = vld [vmem:[%s1007_s1 + $0xd0] sm:$0xf]  ;;  %v646_v36 = vld [vmem:[%s1007_s1 + $0x54] sm:$0xf] }
   0x9   :  { %v663_v33 = vld [vmem:[%s1007_s1 + $0xd4] sm:$0xf0]  ;;  %298 = vmatpush.bf16.msra.mxu1 %v597_v17  ;;  %v525_v34 = vor.u32 %v647_v31, %v524_v28  ;;  %v526_v37 = vld [vmem:[%s1007_s1 + $0x58] sm:$0xf0]  ;;  %v664_v38 = vld [vmem:[%s1007_s1 + $0xe4] sm:$0xf]  ;;  %336 = vmatpush.bf16.msra.mxu3 %v537_v25 }
   0xa   :  { %323 = vmatpush.bf16.msra.mxu2 %v613_v21  ;;  %v589_v35 = vor.u32 %v663_v33, %v588_v32  ;;  %v529_v39 = vor.u32 %v646_v36, %v526_v37  ;;  %v598_v40 = vld [vmem:[%s1007_s1 + $0xe8] sm:$0xf0]  ;;  %v516_v41 = vld [vmem:[%s1007_s1 + $0x40] sm:$0xf]  ;;  %v645_v42 = vld [vmem:[%s1007_s1 + $0x44] sm:$0xf0] }
   0xb   :  { %v601_v43 = vor.u32 %v664_v38, %v598_v40  ;;  %v580_v44 = vld [vmem:[%s1007_s1 + $0xc0] sm:$0xf]  ;;  %v661_v45 = vld [vmem:[%s1007_s1 + $0xc4] sm:$0xf0]  ;;  %v644_v46 = vld [vmem:[%s1007_s1 + $0x44] sm:$0xf]  ;;  %v517_v47 = vor.u32 %v645_v42, %v516_v41 }
   0xc   :  { %280 = vmatpush.bf16.msra.mxu0 %v525_v34  ;;  %v518_v48 = vld [vmem:[%s1007_s1 + $0x48] sm:$0xf0]  ;;  %v662_v49 = vld [vmem:[%s1007_s1 + $0xd4] sm:$0xf]  ;;  %v590_v50 = vld [vmem:[%s1007_s1 + $0xd8] sm:$0xf0]  ;;  %v581_v51 = vor.u32 %v661_v45, %v580_v44 }
   0xd   :  { %626 = vmatmul.msk.bf16.vlgmr.msra.gmra.mxu2 %vm271_vm0, %v773_v29  ;;  %299 = vmatpush.bf16.msra.mxu1 %v589_v35  ;;  %v508_v52 = vld [vmem:[%s1007_s1 + $0x30] sm:$0xf]  ;;  %v643_v53 = vld [vmem:[%s1007_s1 + $0x34] sm:$0xf0]  ;;  %v521_v54 = vor.u32 %v644_v46, %v518_v48  ;;  %v593_v55 = vor.u32 %v662_v49, %v590_v50  ;;  %v642_v58 = vld [vmem:[%s1007_s1 + $0x34] sm:$0xf] }
   0xe   :  { %354 = vmatpush.bf16.msrb.mxu2 %v609_v30  ;;  %337 = vmatpush.bf16.msra.mxu3 %v529_v39  ;;  %v572_v56 = vld [vmem:[%s1007_s1 + $0xb0] sm:$0xf]  ;;  %v659_v57 = vld [vmem:[%s1007_s1 + $0xb4] sm:$0xf0]  ;;  %v510_v59 = vld [vmem:[%s1007_s1 + $0x38] sm:$0xf0]  ;;  %v509_v62 = vor.u32 %v643_v53, %v508_v52 }
   0xf   :  { %v660_v60 = vld [vmem:[%s1007_s1 + $0xc4] sm:$0xf]  ;;  %v582_v61 = vld [vmem:[%s1007_s1 + $0xc8] sm:$0xf0]  ;;  %v573_v63 = vor.u32 %v659_v57, %v572_v56  ;;  %v500_v0 = vld [vmem:[%s1007_s1 + $0x20] sm:$0xf]  ;;  %v513_v2 = vor.u32 %v642_v58, %v510_v59 }
  0x10   :  { %281 = vmatpush.bf16.msra.mxu0 %v517_v47  ;;  %v641_v1 = vld [vmem:[%s1007_s1 + $0x24] sm:$0xf0]  ;;  %v585_v3 = vor.u32 %v660_v60, %v582_v61  ;;  %v564_v4 = vld [vmem:[%s1007_s1 + $0xa0] sm:$0xf]  ;;  %v640_v6 = vld [vmem:[%s1007_s1 + $0x24] sm:$0xf] }
  0x11   :  { %300 = vmatpush.bf16.msra.mxu1 %v581_v51  ;;  %v657_v5 = vld [vmem:[%s1007_s1 + $0xa4] sm:$0xf0]  ;;  %v502_v7 = vld [vmem:[%s1007_s1 + $0x28] sm:$0xf0]  ;;  %v658_v8 = vld [vmem:[%s1007_s1 + $0xb4] sm:$0xf]  ;;  %v501_v10 = vor.u32 %v641_v1, %v500_v0 }
  0x12   :  { %355 = vmatpush.bf16.msrb.mxu2 %v601_v43  ;;  %338 = vmatpush.bf16.msra.mxu3 %v521_v54  ;;  %v574_v9 = vld [vmem:[%s1007_s1 + $0xb8] sm:$0xf0]  ;;  %v480_v11 = vld [vmem:[%s1008_s0 + $0x20] sm:$0xf]  ;;  %v565_v12 = vor.u32 %v657_v5, %v564_v4  ;;  %v635_v13 = vld [vmem:[%s1008_s0 + $0x28] sm:$0xf0]  ;;  %v505_v16 = vor.u32 %v640_v6, %v502_v7 }
  0x13   :  { %v492_v14 = vld [vmem:[%s1007_s1 + $0x10] sm:$0xf]  ;;  %v639_v15 = vld [vmem:[%s1007_s1 + $0x14] sm:$0xf0]  ;;  %v577_v17 = vor.u32 %v658_v8, %v574_v9  ;;  %v638_v20 = vld [vmem:[%s1007_s1 + $0x14] sm:$0xf]  ;;  %v900_v24 = vor.u32 %v635_v13, %v480_v11 }
  0x14   :  { %282 = vmatpush.bf16.msra.mxu0 %v509_v62  ;;  %v556_v18 = vld [vmem:[%s1007_s1 + $0x90] sm:$0xf]  ;;  %v655_v19 = vld [vmem:[%s1007_s1 + $0x94] sm:$0xf0]  ;;  %v494_v21 = vld [vmem:[%s1007_s1 + $0x18] sm:$0xf0]  ;;  %v493_v25 = vor.u32 %v639_v15, %v492_v14 }
  0x15   :  { %301 = vmatpush.bf16.msra.mxu1 %v573_v63  ;;  %v656_v22 = vld [vmem:[%s1007_s1 + $0xa4] sm:$0xf]  ;;  %v566_v23 = vld [vmem:[%s1007_s1 + $0xa8] sm:$0xf0]  ;;  %v484_v26 = vld [vmem:[%s1007_s1] sm:$0xf]  ;;  %v557_v27 = vor.u32 %v655_v19, %v556_v18  ;;  %v497_v32 = vor.u32 %v638_v20, %v494_v21 }
  0x16   :  { %356 = vmatpush.bf16.msrb.mxu2 %v593_v55  ;;  %339 = vmatpush.bf16.msra.mxu3 %v513_v2  ;;  %v637_v28 = vld [vmem:[%s1007_s1 + $0x4] sm:$0xf0]  ;;  %v548_v30 = vld [vmem:[%s1007_s1 + $0x80] sm:$0xf]  ;;  %v569_v33 = vor.u32 %v656_v22, %v566_v23  ;;  %v636_v34 = vld [vmem:[%s1007_s1 + $0x4] sm:$0xf] }
  0x17   :  { %v653_v31 = vld [vmem:[%s1007_s1 + $0x84] sm:$0xf0]  ;;  %v670_v35 = vld [vmem:[%s1007_s1 + $0x114] sm:$0xf]  ;;  %v622_v36 = vld [vmem:[%s1007_s1 + $0x118] sm:$0xf0]  ;;  %v485_v40 = vor.u32 %v637_v28, %v484_v26 }
  0x18   :  { %283 = vmatpush.bf16.msra.mxu0 %v501_v10  ;;  %v486_v37 = vld [vmem:[%s1007_s1 + $0x8] sm:$0xf0]  ;;  %v654_v38 = vld [vmem:[%s1007_s1 + $0x94] sm:$0xf]  ;;  %v558_v39 = vld [vmem:[%s1007_s1 + $0x98] sm:$0xf0]  ;;  %v549_v43 = vor.u32 %v653_v31, %v548_v30  ;;  %v625_v46 = vor.u32 %v670_v35, %v622_v36 }
  0x19   :  { %302 = vmatpush.bf16.msra.mxu1 %v565_v12  ;;  %v460_v41 = vld [vmem:[%s1008_s0] sm:$0xf]  ;;  %v631_v42 = vld [vmem:[%s1008_s0 + $0x8] sm:$0xf0]  ;;  %v630_v44 = vld [vmem:[%s1008_s0 + $0x4] sm:$0xf]  ;;  %v489_v47 = vor.u32 %v636_v34, %v486_v37  ;;  %v561_v48 = vor.u32 %v654_v38, %v558_v39 }
  0x1a   :  { %357 = vmatpush.bf16.msrb.mxu2 %v585_v3  ;;  %340 = vmatpush.bf16.msra.mxu3 %v505_v16  ;;  %v462_v45 = vld [vmem:[%s1008_s0 + $0xc] sm:$0xf0]  ;;  %v668_v49 = vld [vmem:[%s1007_s1 + $0x104] sm:$0xf]  ;;  %v614_v50 = vld [vmem:[%s1007_s1 + $0x108] sm:$0xf0]  ;;  %v461_v51 = vor.u32 %v631_v42, %v460_v41 }
  0x1b   :  { %v652_v52 = vld [vmem:[%s1007_s1 + $0x84] sm:$0xf]  ;;  %v550_v53 = vld [vmem:[%s1007_s1 + $0x88] sm:$0xf0]  ;;  %v465_v54 = vor.u32 %v630_v44, %v462_v45  ;;  %v617_v55 = vor.u32 %v668_v49, %v614_v50  ;;  %v472_v57 = vld [vmem:[%s1008_s0 + $0x18] sm:$0xf] }
  0x1c   :  { %284 = vmatpush.bf16.msra.mxu0 %v493_v25  ;;  %v553_v56 = vor.u32 %v652_v52, %v550_v53  ;;  %v634_v58 = vld [vmem:[%s1008_s0 + $0x20] sm:$0xf0]  ;;  %v633_v59 = vld [vmem:[%s1008_s0 + $0x1c] sm:$0xf]  ;;  %v474_v60 = vld [vmem:[%s1008_s0 + $0x24] sm:$0xf0] }
  0x1d   :  { %627 = vmatmul.msk.bf16.gmra.mxu2 %vm271_vm0, %v900_v24  ;;  %303 = vmatpush.bf16.msra.mxu1 %v557_v27  ;;  %v473_v61 = vor.u32 %v634_v58, %v472_v57  ;;  %v477_v62 = vor.u32 %v633_v59, %v474_v60  ;;  %v400_v1 = vld [vmem:[%s1009_s2] sm:$0xf] }
  0x1e   :  { %358 = vmatpush.bf16.msrb.mxu2 %v577_v17  ;;  %341 = vmatpush.bf16.msra.mxu3 %v497_v32  ;;  %v402_v2 = vperm.slane %v400_v1, 0  ;;  %v416_v5 = vperm.slane %v400_v1, 1  ;;  %v403_v39 = vperm.slane %v400_v1, 2 }
  0x20   :  { %285 = vmatpush.bf16.msra.mxu0 %v485_v40  ;;  %v406_v8 = vperm.slane %v402_v2, 0  ;;  %v420_v10 = vperm.slane %v416_v5, 1 }
  0x21   :  { %304 = vmatpush.bf16.msra.mxu1 %v549_v43  ;;  %v417_v43 = vperm.slane %v400_v1, 3 }
  0x22   :  { %359 = vmatpush.bf16.msrb.mxu2 %v569_v33  ;;  %342 = vmatpush.bf16.msra.mxu3 %v489_v47 }
  0x23   :  { %286 = vmatmul.bf16.vlgmr.msra.gmra.mxu0 %v461_v51  ;;  %v421_v53 = vperm.slane %v417_v43, 1 }
  0x24   :  { %379 = vmatpush.bf16.msrb.mxu0 %v625_v46  ;;  %305 = vmatmul.bf16.vlgmr.msra.gmra.mxu1 %v465_v54 }
  0x25   :  { %683 = vmatpush.bf16.msrb.mxu1 %v625_v46  ;;  %343 = vmatmul.bf16.vlgmr.msra.gmra.mxu3 %v461_v51 }
  0x26   :  { %360 = vmatpush.bf16.msrb.mxu2 %v561_v48  ;;  %v407_v48 = vperm.slane %v403_v39, 0 }
  0x28   :  { %380 = vmatpush.bf16.msrb.mxu0 %v617_v55 }
  0x29   :  { %684 = vmatpush.bf16.msrb.mxu1 %v617_v55 }
  0x2a   :  { %361 = vmatpush.bf16.msrb.mxu2 %v553_v56 }
  0x2d   :  { %362 = vmatmul.bf16.vlgmr.msrb.gmra.mxu2 %v465_v54 }
  0x33   :  { %291 = vmatmul.bf16.gmra.mxu0 %v473_v61 }
  0x34   :  { %310 = vmatmul.bf16.gmra.mxu1 %v477_v62 }
  0x35   :  { %348 = vmatmul.bf16.gmra.mxu3 %v473_v61 }
  0x3d   :  { %367 = vmatmul.bf16.gmra.mxu2 %v477_v62 }
  0x43   :  { %628 = vmatmul.msk.bf16.vlgmr.msrb.gmra.mxu0 %vm271_vm0, %v773_v29 }
  0x44   :  { %629 = vmatmul.msk.bf16.vlgmr.msrb.gmra.mxu1 %vm271_vm0, %v900_v24 }
  0x90   :  { %v325_v63 = vpop.f32.mrf.mxu2 }
  0x98   :  { %v327_v0 = vpop.f32.mrf.mxu2 }
  0xa0   :  { %v330_v3 = vpop.f32.mrf.mxu2  ;;  %v287_v4 = vpop.f32.mrf.mxu0 }
  0xa1   :  { %v306_v6 = vpop.f32.mrf.mxu1 }
  0xa2   :  { %v307_v7 = vadd.f32 %v306_v6, %v287_v4 }
  0xa4   :  { %v326_v9 = vadd.f32 %v325_v63, %v307_v7 }
  0xa6   :  { %v408_v11 = vmul.f32 %v406_v8, %v326_v9 }
  0xa8   :  { %v332_v29 = vpop.f32.mrf.mxu2  ;;  %v422_v12 = vadd.f32 %v420_v10, %v408_v11  ;;  %v289_v13 = vpop.f32.mrf.mxu0 }
  0xa9   :  { %v344_v14 = vpop.f32.mrf.mxu3  ;;  %v308_v15 = vpop.f32.mrf.mxu1 }
  0xaa   :  { %v430_v16 = vmax.f32 %v422_v12, 0.0  ;;  %v309_v17 = vadd.f32 %v308_v15, %v289_v13 }
  0xac   :  { %v434_v18 = vpack.c.bf16 %v430_v16, %v430_v16  ;;  %v328_v19 = vadd.f32 %v327_v0, %v309_v17 }
  0xae   :  { %438 = vst [vmem:[%s1010_s3] sm:$0xf] %v434_v18  ;;  %v675_v20 = vpack.c.bf16 %v328_v19, %v326_v9  ;;  %v410_v21 = vmul.f32 %v406_v8, %v328_v19 }
  0xb0   :  { %v363_v22 = vpop.f32.mrf.mxu2  ;;  %676 = vst [vmem:[%s1011_s4] sm:$0xff] %v675_v20   ;;  %v424_v23 = vadd.f32 %v420_v10, %v410_v21  ;;  %v292_v24 = vpop.f32.mrf.mxu0 }
  0xb1   :  { %v311_v25 = vpop.f32.mrf.mxu1  ;;  %v346_v28 = vpop.f32.mrf.mxu3  ;;  %v364_v46 = vadd.f32 %v363_v22, %v344_v14 }
  0xb2   :  { %v431_v26 = vmax.f32 %v424_v23, 0.0  ;;  %v312_v27 = vadd.f32 %v311_v25, %v292_v24 }
  0xb4   :  { %v435_v30 = vpack.c.bf16 %v431_v26, %v431_v26  ;;  %v331_v31 = vadd.f32 %v330_v3, %v312_v27 }
  0xb6   :  { %439 = vst [vmem:[%s1010_s3 + $0x8] sm:$0xf] %v435_v30  ;;  %v412_v32 = vmul.f32 %v406_v8, %v331_v31 }
  0xb8   :  { %v365_v33 = vpop.f32.mrf.mxu2  ;;  %v426_v34 = vadd.f32 %v420_v10, %v412_v32  ;;  %v294_v35 = vpop.f32.mrf.mxu0 }
  0xb9   :  { %v313_v36 = vpop.f32.mrf.mxu1  ;;  %v349_v42 = vpop.f32.mrf.mxu3  ;;  %v366_v62 = vadd.f32 %v365_v33, %v346_v28 }
  0xba   :  { %v432_v37 = vmax.f32 %v426_v34, 0.0  ;;  %v314_v38 = vadd.f32 %v313_v36, %v294_v35 }
  0xbc   :  { %v436_v40 = vpack.c.bf16 %v432_v37, %v432_v37  ;;  %v333_v41 = vadd.f32 %v332_v29, %v314_v38 }
  0xbe   :  { %440 = vst [vmem:[%s1010_s3 + $0x10] sm:$0xf] %v436_v40  ;;  %v680_v44 = vpack.c.bf16 %v333_v41, %v331_v31  ;;  %v414_v45 = vmul.f32 %v406_v8, %v333_v41 }
  0xc0   :  { %v368_v47 = vpop.f32.mrf.mxu2  ;;  %682 = vst [vmem:[%s1011_s4 + $0x8] sm:$0xff] %v680_v44   ;;  %v428_v49 = vadd.f32 %v420_v10, %v414_v45  ;;  %v382_v51 = vpop.f32.mrf.mxu0 }
  0xc1   :  { %v369_v50 = vadd.f32 %v368_v47, %v349_v42  ;;  %v383_v52 = vadd.f32 %v382_v51, %v364_v46  ;;  %v387_v54 = vpop.f32.mrf.mxu1  ;;  %v351_v63 = vpop.f32.mrf.mxu3 }
  0xc2   :  { %v433_v55 = vmax.f32 %v428_v49, 0.0 }
  0xc3   :  { %v388_v56 = vadd.f32 %v387_v54, %v369_v50  ;;  %v409_v57 = vmul.f32 %v407_v48, %v383_v52 }
  0xc4   :  { %v437_v58 = vpack.c.bf16 %v433_v55, %v433_v55 }
  0xc5   :  { %v413_v59 = vmul.f32 %v407_v48, %v388_v56  ;;  %v423_v60 = vadd.f32 %v421_v53, %v409_v57 }
  0xc6   :  { %441 = vst [vmem:[%s1010_s3 + $0x18] sm:$0xf] %v437_v58 }
  0xc7   :  { %v427_v61 = vadd.f32 %v421_v53, %v413_v59  ;;  %v442_v0 = vpack.c.bf16 %v423_v60, %v423_v60 }
  0xc8   :  { %v370_v1 = vpop.f32.mrf.mxu2  ;;  %v384_v4 = vpop.f32.mrf.mxu0 }
  0xc9   :  { %v444_v2 = vpack.c.bf16 %v427_v61, %v427_v61  ;;  %v371_v3 = vadd.f32 %v370_v1, %v351_v63  ;;  %446 = vst [vmem:[%s1010_s3 + $0x4] sm:$0xf] %v442_v0  ;;  %v385_v5 = vadd.f32 %v384_v4, %v366_v62  ;;  %v389_v6 = vpop.f32.mrf.mxu1 }
  0xcb   :  { %448 = vst [vmem:[%s1010_s3 + $0x14] sm:$0xf] %v444_v2  ;;  %v390_v7 = vadd.f32 %v389_v6, %v371_v3  ;;  %v411_v8 = vmul.f32 %v407_v48, %v385_v5 }
  0xcd   :  { %v415_v9 = vmul.f32 %v407_v48, %v390_v7  ;;  %v425_v10 = vadd.f32 %v421_v53, %v411_v8 }
  0xcf   :  { %v429_v11 = vadd.f32 %v421_v53, %v415_v9  ;;  %v443_v29 = vpack.c.bf16 %v425_v10, %v425_v10 }
  0xd1   :  { %v445_v12 = vpack.c.bf16 %v429_v11, %v429_v11  ;;  %447 = vst [vmem:[%s1010_s3 + $0xc] sm:$0xf] %v443_v29 }
  0xd3   :  { %449 = vst [vmem:[%s1010_s3 + $0x1c] sm:$0xf] %v445_v12 }

// kernel: _lambda_.14
= control target key start
LH: loop header
LB: loop body
LE: loop exit
PB: predicated region body
PF: predicated region fallthrough
CT: control target
= control target key end

     0   :  { %vm426_vm0 = vcmask 523264   ;;  %s1079_s0 = inlined_call_operand.vmem [shape: bf16[32,576], index: 0, kind: input, shape index: {}]   ;;  %s1080_s1 = inlined_call_operand.vmem [shape: bf16[576,128], index: 1, kind: input, shape index: {}]   ;;  %s1081_s2 = inlined_call_operand.vmem [shape: f32[2,128], index: 2, kind: input, shape index: {}]   ;;  %s1082_s3 = inlined_call_operand.vmem [shape: bf16[32,256], index: 3, kind: input, shape index: {}]   ;;  %s1083_s4 = inlined_call_operand.vmem [shape: bf16[32,128], index: 4, kind: output, shape index: {0}]   ;;  %s1084_s5 = inlined_call_operand.vmem [shape: bf16[32,128], index: 5, kind: output, shape index: {1}]  }
   0x1   :  { %v790_v0 = vld [vmem:[%s1080_s1 + $0x38] sm:$0xff]  ;;  %v789_v4 = vld [vmem:[%s1080_s1 + $0x30] sm:$0xff]  ;;  %v788_v8 = vld [vmem:[%s1080_s1 + $0x28] sm:$0xff] }
   0x2   :  { %v798_v1 = vld [vmem:[%s1080_s1 + $0x78] sm:$0xff]  ;;  %433 = vmatpush.bf16.msra.mxu0 %v790_v0  ;;  %v797_v5 = vld [vmem:[%s1080_s1 + $0x70] sm:$0xff]  ;;  %v796_v9 = vld [vmem:[%s1080_s1 + $0x68] sm:$0xff] }
   0x3   :  { %v806_v2 = vld [vmem:[%s1080_s1 + $0xb8] sm:$0xff]  ;;  %452 = vmatpush.bf16.msra.mxu1 %v798_v1  ;;  %v805_v6 = vld [vmem:[%s1080_s1 + $0xb0] sm:$0xff]  ;;  %v804_v10 = vld [vmem:[%s1080_s1 + $0xa8] sm:$0xff] }
   0x4   :  { %v814_v3 = vld [vmem:[%s1080_s1 + $0xf8] sm:$0xff]  ;;  %471 = vmatpush.bf16.msra.mxu2 %v806_v2  ;;  %v813_v7 = vld [vmem:[%s1080_s1 + $0xf0] sm:$0xff]  ;;  %v812_v11 = vld [vmem:[%s1080_s1 + $0xe8] sm:$0xff] }
   0x5   :  { %490 = vmatpush.bf16.msra.mxu3 %v814_v3  ;;  %v787_v12 = vld [vmem:[%s1080_s1 + $0x20] sm:$0xff]  ;;  %v786_v16 = vld [vmem:[%s1080_s1 + $0x18] sm:$0xff]  ;;  %v785_v20 = vld [vmem:[%s1080_s1 + $0x10] sm:$0xff] }
   0x6   :  { %434 = vmatpush.bf16.msra.mxu0 %v789_v4  ;;  %v795_v13 = vld [vmem:[%s1080_s1 + $0x60] sm:$0xff]  ;;  %v794_v17 = vld [vmem:[%s1080_s1 + $0x58] sm:$0xff]  ;;  %v793_v21 = vld [vmem:[%s1080_s1 + $0x50] sm:$0xff] }
   0x7   :  { %453 = vmatpush.bf16.msra.mxu1 %v797_v5  ;;  %v803_v14 = vld [vmem:[%s1080_s1 + $0xa0] sm:$0xff]  ;;  %v802_v18 = vld [vmem:[%s1080_s1 + $0x98] sm:$0xff]  ;;  %v801_v22 = vld [vmem:[%s1080_s1 + $0x90] sm:$0xff] }
   0x8   :  { %472 = vmatpush.bf16.msra.mxu2 %v805_v6  ;;  %v811_v15 = vld [vmem:[%s1080_s1 + $0xe0] sm:$0xff]  ;;  %v810_v19 = vld [vmem:[%s1080_s1 + $0xd8] sm:$0xff]  ;;  %v809_v23 = vld [vmem:[%s1080_s1 + $0xd0] sm:$0xff] }
   0x9   :  { %491 = vmatpush.bf16.msra.mxu3 %v813_v7  ;;  %v784_v24 = vld [vmem:[%s1080_s1 + $0x8] sm:$0xff]  ;;  %v783_v28 = vld [vmem:[%s1080_s1] sm:$0xff]  ;;  %v775_v33 = vld [vmem:[%s1079_s0 + $0x10] sm:$0xf0] }
   0xa   :  { %435 = vmatpush.bf16.msra.mxu0 %v788_v8  ;;  %v792_v25 = vld [vmem:[%s1080_s1 + $0x48] sm:$0xff]  ;;  %v791_v29 = vld [vmem:[%s1080_s1 + $0x40] sm:$0xff]  ;;  %v591_v35 = vld [vmem:[%s1079_s0 + $0x14] sm:$0xf0] }
   0xb   :  { %454 = vmatpush.bf16.msra.mxu1 %v796_v9  ;;  %v800_v26 = vld [vmem:[%s1080_s1 + $0x88] sm:$0xff]  ;;  %v799_v30 = vld [vmem:[%s1080_s1 + $0x80] sm:$0xff]  ;;  %v776_v37 = vld [vmem:[%s1079_s0 + $0x18] sm:$0xf0] }
   0xc   :  { %473 = vmatpush.bf16.msra.mxu2 %v804_v10  ;;  %v808_v27 = vld [vmem:[%s1080_s1 + $0xc8] sm:$0xff]  ;;  %v807_v31 = vld [vmem:[%s1080_s1 + $0xc0] sm:$0xff]  ;;  %v818_v40 = vld [vmem:[%s1080_s1 + $0x118] sm:$0xff] }
   0xd   :  { %492 = vmatpush.bf16.msra.mxu3 %v812_v11  ;;  %v589_v32 = vld [vmem:[%s1079_s0] sm:$0xf]  ;;  %v773_v34 = vld [vmem:[%s1079_s0 + $0x4] sm:$0xf]  ;;  %v597_v36 = vld [vmem:[%s1079_s0 + $0x8] sm:$0xf] }
   0xe   :  { %436 = vmatpush.bf16.msra.mxu0 %v787_v12  ;;  %v774_v38 = vld [vmem:[%s1079_s0 + $0xc] sm:$0xf]  ;;  %v599_v39 = vld [vmem:[%s1079_s0 + $0x1c] sm:$0xf0]  ;;  %v590_v41 = vor.u32 %v775_v33, %v589_v32  ;;  %v594_v42 = vor.u32 %v773_v34, %v591_v35  ;;  %v598_v43 = vor.u32 %v776_v37, %v597_v36  ;;  %v817_v45 = vld [vmem:[%s1080_s1 + $0x110] sm:$0xff] }
   0xf   :  { %455 = vmatpush.bf16.msra.mxu1 %v795_v13  ;;  %v602_v44 = vor.u32 %v774_v38, %v599_v39  ;;  %v816_v46 = vld [vmem:[%s1080_s1 + $0x108] sm:$0xff]  ;;  %v815_v47 = vld [vmem:[%s1080_s1 + $0x100] sm:$0xff]  ;;  %v780_v49 = vld [vmem:[%s1079_s0 + $0x38] sm:$0xf0] }
  0x10   :  { %474 = vmatpush.bf16.msra.mxu2 %v803_v14  ;;  %v609_v48 = vld [vmem:[%s1079_s0 + $0x28] sm:$0xf]  ;;  %v778_v50 = vld [vmem:[%s1079_s0 + $0x2c] sm:$0xf]  ;;  %v611_v51 = vld [vmem:[%s1079_s0 + $0x3c] sm:$0xf0] }
  0x11   :  { %493 = vmatpush.bf16.msra.mxu3 %v811_v15  ;;  %v617_v52 = vld [vmem:[%s1079_s0 + $0x30] sm:$0xf]  ;;  %v781_v53 = vld [vmem:[%s1079_s0 + $0x40] sm:$0xf0]  ;;  %v779_v54 = vld [vmem:[%s1079_s0 + $0x34] sm:$0xf]  ;;  %v610_v56 = vor.u32 %v780_v49, %v609_v48  ;;  %v614_v57 = vor.u32 %v778_v50, %v611_v51 }
  0x12   :  { %437 = vmatpush.bf16.msra.mxu0 %v786_v16  ;;  %v619_v55 = vld [vmem:[%s1079_s0 + $0x44] sm:$0xf0]  ;;  %v618_v58 = vor.u32 %v781_v53, %v617_v52  ;;  %v605_v60 = vld [vmem:[%s1079_s0 + $0x10] sm:$0xf]  ;;  %v777_v61 = vld [vmem:[%s1079_s0 + $0x20] sm:$0xf0] }
  0x13   :  { %456 = vmatpush.bf16.msra.mxu1 %v794_v17  ;;  %v622_v59 = vor.u32 %v779_v54, %v619_v55  ;;  %v625_v62 = vld [vmem:[%s1079_s0 + $0x38] sm:$0xf]  ;;  %v782_v63 = vld [vmem:[%s1079_s0 + $0x48] sm:$0xf0]  ;;  %v606_v0 = vor.u32 %v777_v61, %v605_v60  ;;  %v583_v2 = vld [vmem:[%s1082_s3 + $0x4] sm:$0xf] }
  0x14   :  { %475 = vmatpush.bf16.msra.mxu2 %v802_v18  ;;  %v626_v1 = vor.u32 %v782_v63, %v625_v62  ;;  %v584_v3 = vld [vmem:[%s1082_s3 + $0xc] sm:$0xf]  ;;  %v585_v4 = vld [vmem:[%s1082_s3 + $0x14] sm:$0xf]  ;;  %37 = vst [vmem:[#allocation2] sm:$0xf] %v583_v2 }
  0x15   :  { %494 = vmatpush.bf16.msra.mxu3 %v810_v19  ;;  %v586_v5 = vld [vmem:[%s1082_s3 + $0x1c] sm:$0xf]  ;;  %39 = vst [vmem:[#allocation2 + $0x4] sm:$0xf] %v584_v3 }
  0x16   :  { %438 = vmatpush.bf16.msra.mxu0 %v785_v20  ;;  %41 = vst [vmem:[#allocation2 + $0x8] sm:$0xf] %v585_v4 }
  0x17   :  { %457 = vmatpush.bf16.msra.mxu1 %v793_v21  ;;  %43 = vst [vmem:[#allocation2 + $0xc] sm:$0xf] %v586_v5 }
  0x18   :  { %476 = vmatpush.bf16.msra.mxu2 %v801_v22 }
  0x19   :  { %495 = vmatpush.bf16.msra.mxu3 %v809_v23 }
  0x1a   :  { %439 = vmatpush.bf16.msra.mxu0 %v784_v24  ;;  %v536_v24 = vld [vmem:[%s1081_s2] sm:$0x3] }
  0x1b   :  { %458 = vmatpush.bf16.msra.mxu1 %v792_v25  ;;  %v542_v38 = vperm.slane %v536_v24, 1 }
  0x1c   :  { %477 = vmatpush.bf16.msra.mxu2 %v800_v26  ;;  %v830_v39 = vld [vmem:[#allocation2] sm:$0xff]  }
  0x1d   :  { %496 = vmatpush.bf16.msra.mxu3 %v808_v27  ;;  %v832_v53 = vunpack.c.h.bf16 %v830_v39 }
  0x1e   :  { %440 = vmatpush.bf16.msra.mxu0 %v783_v28 }
  0x1f   :  { %459 = vmatpush.bf16.msra.mxu1 %v791_v29  ;;  %v537_v29 = vperm.slane %v536_v24, 0 }
  0x20   :  { %478 = vmatpush.bf16.msra.mxu2 %v799_v30 }
  0x21   :  { %497 = vmatpush.bf16.msra.mxu3 %v807_v31  ;;  %441 = vmatmul.bf16.vlgmr.msra.gmra.mxu0 %v590_v41  ;;  %v848_v41 = vld [vmem:[#allocation2 + $0x8] sm:$0xff]  }
  0x22   :  { %513 = vmatpush.bf16.msrb.mxu0 %v818_v40  ;;  %460 = vmatmul.bf16.vlgmr.msra.gmra.mxu1 %v594_v42  ;;  %v836_v54 = vunpack.c.h.bf16 %v848_v41 }
  0x23   :  { %850 = vmatpush.bf16.msrb.mxu1 %v818_v40  ;;  %479 = vmatmul.bf16.vlgmr.msra.gmra.mxu2 %v598_v43 }
  0x24   :  { %498 = vmatmul.bf16.vlgmr.msra.gmra.mxu3 %v602_v44 }
  0x26   :  { %514 = vmatpush.bf16.msrb.mxu0 %v817_v45 }
  0x27   :  { %851 = vmatpush.bf16.msrb.mxu1 %v817_v45  ;;  %v831_v45 = vunpack.c.l.bf16 %v830_v39 }
  0x2a   :  { %515 = vmatpush.bf16.msrb.mxu0 %v816_v46 }
  0x2b   :  { %852 = vmatpush.bf16.msrb.mxu1 %v816_v46  ;;  %v835_v46 = vunpack.c.l.bf16 %v848_v41 }
  0x2e   :  { %516 = vmatpush.bf16.msrb.mxu0 %v815_v47 }
  0x2f   :  { %853 = vmatpush.bf16.msrb.mxu1 %v815_v47 }
  0x31   :  { %446 = vmatmul.bf16.gmra.mxu0 %v610_v56 }
  0x32   :  { %465 = vmatmul.bf16.gmra.mxu1 %v614_v57 }
  0x33   :  { %484 = vmatmul.bf16.gmra.mxu2 %v618_v58 }
  0x34   :  { %503 = vmatmul.bf16.gmra.mxu3 %v622_v59 }
  0x41   :  { %771 = vmatmul.msk.bf16.vlgmr.msrb.gmra.mxu0 %vm426_vm0, %v606_v0 }
  0x42   :  { %772 = vmatmul.msk.bf16.vlgmr.msrb.gmra.mxu1 %vm426_vm0, %v626_v1 }
  0x9e   :  { %v442_v6 = vpop.f32.mrf.mxu0 }
  0x9f   :  { %v461_v7 = vpop.f32.mrf.mxu1 }
  0xa0   :  { %v462_v19 = vadd.f32 %v461_v7, %v442_v6 }
  0xa6   :  { %v480_v8 = vpop.f32.mrf.mxu2  ;;  %v444_v10 = vpop.f32.mrf.mxu0 }
  0xa7   :  { %v499_v9 = vpop.f32.mrf.mxu3  ;;  %v463_v11 = vpop.f32.mrf.mxu1  ;;  %v481_v21 = vadd.f32 %v480_v8, %v462_v19 }
  0xa8   :  { %v464_v31 = vadd.f32 %v463_v11, %v444_v10 }
  0xa9   :  { %v500_v25 = vadd.f32 %v499_v9, %v481_v21 }
  0xae   :  { %v482_v12 = vpop.f32.mrf.mxu2  ;;  %v447_v13 = vpop.f32.mrf.mxu0 }
  0xaf   :  { %v466_v14 = vpop.f32.mrf.mxu1  ;;  %v501_v15 = vpop.f32.mrf.mxu3  ;;  %v483_v35 = vadd.f32 %v482_v12, %v464_v31 }
  0xb0   :  { %v467_v20 = vadd.f32 %v466_v14, %v447_v13 }
  0xb1   :  { %v502_v43 = vadd.f32 %v501_v15, %v483_v35 }
  0xb6   :  { %v485_v16 = vpop.f32.mrf.mxu2  ;;  %v449_v17 = vpop.f32.mrf.mxu0 }
  0xb7   :  { %v468_v18 = vpop.f32.mrf.mxu1  ;;  %v486_v22 = vadd.f32 %v485_v16, %v467_v20  ;;  %v504_v23 = vpop.f32.mrf.mxu3 }
  0xb8   :  { %v469_v32 = vadd.f32 %v468_v18, %v449_v17 }
  0xb9   :  { %v505_v26 = vadd.f32 %v504_v23, %v486_v22 }
  0xbe   :  { %v487_v27 = vpop.f32.mrf.mxu2  ;;  %v518_v28 = vpop.f32.mrf.mxu0 }
  0xbf   :  { %v523_v30 = vpop.f32.mrf.mxu1  ;;  %v519_v33 = vadd.f32 %v518_v28, %v500_v25  ;;  %v488_v36 = vadd.f32 %v487_v27, %v469_v32  ;;  %v506_v42 = vpop.f32.mrf.mxu3 }
  0xc0   :  { %v524_v34 = vadd.f32 %v523_v30, %v505_v26 }
  0xc1   :  { %v538_v37 = vmul.f32 %v537_v29, %v519_v33  ;;  %v507_v44 = vadd.f32 %v506_v42, %v488_v36 }
  0xc2   :  { %v540_v40 = vmul.f32 %v537_v29, %v524_v34 }
  0xc3   :  { %v543_v49 = vadd.f32 %v542_v38, %v538_v37 }
  0xc4   :  { %v545_v50 = vadd.f32 %v542_v38, %v540_v40 }
  0xc5   :  { %v555_v59 = vadd.f32 %v831_v45, %v543_v49 }
  0xc6   :  { %v520_v47 = vpop.f32.mrf.mxu0  ;;  %v557_v60 = vadd.f32 %v835_v46, %v545_v50 }
  0xc7   :  { %v525_v48 = vpop.f32.mrf.mxu1  ;;  %v521_v51 = vadd.f32 %v520_v47, %v502_v43  ;;  %v559_v1 = vmax.f32 %v555_v59, 0.0 }
  0xc8   :  { %v526_v52 = vadd.f32 %v525_v48, %v507_v44  ;;  %v561_v2 = vmax.f32 %v557_v60, 0.0 }
  0xc9   :  { %v822_v55 = vpack.c.bf16 %v521_v51, %v519_v33  ;;  %v539_v56 = vmul.f32 %v537_v29, %v521_v51 }
  0xca   :  { %v827_v57 = vpack.c.bf16 %v526_v52, %v524_v34  ;;  %v541_v58 = vmul.f32 %v537_v29, %v526_v52 }
  0xcb   :  { %823 = vst [vmem:[%s1084_s5] sm:$0xff] %v822_v55   ;;  %v544_v61 = vadd.f32 %v542_v38, %v539_v56 }
  0xcc   :  { %v546_v62 = vadd.f32 %v542_v38, %v541_v58  ;;  %847 = vst [vmem:[%s1084_s5 + $0x8] sm:$0xff] %v827_v57  }
  0xcd   :  { %v556_v63 = vadd.f32 %v832_v53, %v544_v61 }
  0xce   :  { %v558_v0 = vadd.f32 %v836_v54, %v546_v62 }
  0xcf   :  { %v560_v3 = vmax.f32 %v556_v63, 0.0 }
  0xd0   :  { %v562_v4 = vmax.f32 %v558_v0, 0.0 }
  0xd1   :  { %v840_v5 = vpack.c.bf16 %v560_v3, %v559_v1 }
  0xd2   :  { %v845_v6 = vpack.c.bf16 %v562_v4, %v561_v2 }
  0xd3   :  { %841 = vst [vmem:[%s1083_s4] sm:$0xff] %v840_v5  }
  0xd4   :  { %849 = vst [vmem:[%s1083_s4 + $0x8] sm:$0xff] %v845_v6  }

// kernel: _lambda_.15
= control target key start
LH: loop header
LB: loop body
LE: loop exit
PB: predicated region body
PF: predicated region fallthrough
CT: control target
= control target key end

     0   :  { %v326_v8 = vmov 16.0   ;;  %vm161_vm1 = vcmask 1041409   ;;  %vm163_vm2 = vcmask 1042434   ;;  %vm165_vm3 = vcmask 1043459   ;;  %s410_s1 = inlined_call_operand.vmem [shape: bf16[128,128], index: 1, kind: input, shape index: {}]   ;;  %s411_s0 = inlined_call_operand.vmem [shape: bf16[8,16,128], index: 0, kind: input, shape index: {}]   ;;  %s412_s2 = inlined_call_operand.vmem [shape: f32[1,128], index: 2, kind: input, shape index: {}]   ;;  %s413_s3 = inlined_call_operand.vmem [shape: f32[8,128], index: 3, kind: output, shape index: {}]  }
   0x1   :  { %v282_v0 = vld [vmem:[%s410_s1 + $0x38] sm:$0xff]  ;;  %v281_v1 = vld [vmem:[%s410_s1 + $0x30] sm:$0xff]  ;;  %v284_v2 = vld [vmem:[%s411_s0] sm:$0xff]   ;;  %324 = vrcp.f32 %v326_v8  ;;  %vm167_vm4 = vcmask 1044484   ;;  %vm169_vm5 = vcmask 1045509   ;;  %vm171_vm6 = vcmask 1046534  }
   0x2   :  { %225 = vmatpush.bf16.msra.mxu0 %v282_v0  ;;  %v285_v3 = vunpack.c.l.bf16 %v284_v2  ;;  %v286_v4 = vunpack.c.h.bf16 %v284_v2  ;;  %v315_v5 = vld [vmem:[%s411_s0 + $0x8] sm:$0xff]   ;;  %v316_v6 = vld [vmem:[%s411_s0 + $0x10] sm:$0xff]   ;;  %v317_v7 = vld [vmem:[%s411_s0 + $0x18] sm:$0xff]   ;;  %vm173_vm7 = vcmask 1047559  }
   0x3   :  { %v289_v9 = vunpack.c.l.bf16 %v315_v5  ;;  %v290_v10 = vunpack.c.h.bf16 %v315_v5  ;;  %v293_v11 = vunpack.c.l.bf16 %v316_v6  ;;  %v294_v12 = vunpack.c.h.bf16 %v316_v6  ;;  %v318_v13 = vld [vmem:[%s411_s0 + $0x20] sm:$0xff]   ;;  %v319_v14 = vld [vmem:[%s411_s0 + $0x28] sm:$0xff]   ;;  %v320_v15 = vld [vmem:[%s411_s0 + $0x30] sm:$0xff]  }
   0x4   :  { %v297_v16 = vunpack.c.l.bf16 %v317_v7  ;;  %v298_v17 = vunpack.c.h.bf16 %v317_v7  ;;  %v301_v18 = vunpack.c.l.bf16 %v318_v13  ;;  %v302_v19 = vunpack.c.h.bf16 %v318_v13  ;;  %v321_v20 = vld [vmem:[%s411_s0 + $0x38] sm:$0xff]   ;;  %v280_v21 = vld [vmem:[%s410_s1 + $0x28] sm:$0xff]  ;;  %v279_v39 = vld [vmem:[%s410_s1 + $0x20] sm:$0xff] }
   0x5   :  { %v305_v22 = vunpack.c.l.bf16 %v319_v14  ;;  %v306_v23 = vunpack.c.h.bf16 %v319_v14  ;;  %v309_v24 = vunpack.c.l.bf16 %v320_v15  ;;  %v310_v25 = vunpack.c.h.bf16 %v320_v15  ;;  %v278_v56 = vld [vmem:[%s410_s1 + $0x18] sm:$0xff] }
   0x6   :  { %226 = vmatpush.bf16.msra.mxu0 %v281_v1  ;;  %v313_v26 = vunpack.c.l.bf16 %v321_v20  ;;  %v314_v27 = vunpack.c.h.bf16 %v321_v20  ;;  %v46_v28 = vadd.f32 %v286_v4, %v285_v3  ;;  %v53_v29 = vadd.f32 %v290_v10, %v289_v9  ;;  %v277_v1 = vld [vmem:[%s410_s1 + $0x10] sm:$0xff] }
   0x7   :  { %v60_v30 = vadd.f32 %v294_v12, %v293_v11  ;;  %v67_v31 = vadd.f32 %v298_v17, %v297_v16  ;;  %v74_v32 = vadd.f32 %v302_v19, %v301_v18  ;;  %v81_v33 = vadd.f32 %v306_v23, %v305_v22  ;;  %v380_v34 = vpop.eup %324  ;;  %v276_v11 = vld [vmem:[%s410_s1 + $0x8] sm:$0xff]  ;;  %v275_v22 = vld [vmem:[%s410_s1] sm:$0xff] }
   0x8   :  { %v47_v35 = vrot.slane %v46_v28, 4  ;;  %v54_v36 = vrot.slane %v53_v29, 4  ;;  %v88_v37 = vadd.f32 %v310_v25, %v309_v24  ;;  %v95_v38 = vadd.f32 %v314_v27, %v313_v26 }
   0x9   :  { %v61_v40 = vrot.slane %v60_v30, 4  ;;  %v68_v41 = vrot.slane %v67_v31, 4  ;;  %v75_v42 = vrot.slane %v74_v32, 4  ;;  %v82_v43 = vrot.slane %v81_v33, 4 }
   0xa   :  { %227 = vmatpush.bf16.msra.mxu0 %v280_v21  ;;  %v48_v44 = vadd.f32 %v47_v35, %v46_v28  ;;  %v55_v45 = vadd.f32 %v54_v36, %v53_v29  ;;  %v89_v46 = vrot.slane %v88_v37, 4  ;;  %v96_v47 = vrot.slane %v95_v38, 4 }
   0xb   :  { %v62_v48 = vadd.f32 %v61_v40, %v60_v30  ;;  %v69_v49 = vadd.f32 %v68_v41, %v67_v31  ;;  %v76_v50 = vadd.f32 %v75_v42, %v74_v32  ;;  %v83_v51 = vadd.f32 %v82_v43, %v81_v33 }
   0xc   :  { %v49_v52 = vrot.slane %v48_v44, 2  ;;  %v56_v53 = vrot.slane %v55_v45, 2  ;;  %v90_v54 = vadd.f32 %v89_v46, %v88_v37  ;;  %v97_v55 = vadd.f32 %v96_v47, %v95_v38 }
   0xd   :  { %v63_v57 = vrot.slane %v62_v48, 2  ;;  %v70_v58 = vrot.slane %v69_v49, 2  ;;  %v77_v59 = vrot.slane %v76_v50, 2  ;;  %v84_v60 = vrot.slane %v83_v51, 2 }
   0xe   :  { %228 = vmatpush.bf16.msra.mxu0 %v279_v39  ;;  %v91_v61 = vrot.slane %v90_v54, 2  ;;  %v98_v62 = vrot.slane %v97_v55, 2  ;;  %v50_v63 = vadd.f32 %v49_v52, %v48_v44  ;;  %v57_v0 = vadd.f32 %v56_v53, %v55_v45 }
   0xf   :  { %v64_v2 = vadd.f32 %v63_v57, %v62_v48  ;;  %v71_v3 = vadd.f32 %v70_v58, %v69_v49  ;;  %v78_v4 = vadd.f32 %v77_v59, %v76_v50  ;;  %v85_v5 = vadd.f32 %v84_v60, %v83_v51 }
  0x10   :  { %v92_v6 = vadd.f32 %v91_v61, %v90_v54  ;;  %v99_v7 = vadd.f32 %v98_v62, %v97_v55  ;;  %v51_v8 = vrot.slane %v50_v63, 1  ;;  %v58_v9 = vrot.slane %v57_v0, 1 }
  0x11   :  { %v103_v10 = vmul.f32 16.0, %v380_v34  ;;  %v65_v12 = vrot.slane %v64_v2, 1  ;;  %v72_v13 = vrot.slane %v71_v3, 1  ;;  %v79_v14 = vrot.slane %v78_v4, 1 }
  0x12   :  { %229 = vmatpush.bf16.msra.mxu0 %v278_v56  ;;  %v86_v15 = vrot.slane %v85_v5, 1  ;;  %v93_v16 = vrot.slane %v92_v6, 1  ;;  %v100_v17 = vrot.slane %v99_v7, 1  ;;  %v52_v19 = vadd.f32 %v51_v8, %v50_v63  ;;  %v323_v63 = vld [vmem:[%s412_s2] ss:$0 sm:$0xff] }
  0x13   :  { %v104_v18 = vsub.f32 1.0, %v103_v10  ;;  %v59_v20 = vadd.f32 %v58_v9, %v57_v0  ;;  %v66_v23 = vadd.f32 %v65_v12, %v64_v2  ;;  %v73_v24 = vadd.f32 %v72_v13, %v71_v3 }
  0x14   :  { %v80_v25 = vadd.f32 %v79_v14, %v78_v4  ;;  %vm107_vm0 = vweird.f32 %v380_v34  ;;  %v87_v26 = vadd.f32 %v86_v15, %v85_v5  ;;  %v94_v27 = vadd.f32 %v93_v16, %v92_v6 }
  0x15   :  { %v105_v21 = vmul.f32 %v380_v34, %v104_v18  ;;  %v101_v28 = vadd.f32 %v100_v17, %v99_v7 }
  0x16   :  { %230 = vmatpush.bf16.msra.mxu0 %v277_v1 }
  0x17   :  { %v106_v29 = vadd.f32 %v380_v34, %v105_v21 }
  0x19   :  { %v108_v30 = vsel %vm107_vm0, %v380_v34, %v106_v29 }
  0x1a   :  { %231 = vmatpush.bf16.msra.mxu0 %v276_v11  ;;  %v109_v31 = vmul.f32 %v108_v30, %v52_v19  ;;  %v110_v32 = vmul.f32 %v108_v30, %v59_v20  ;;  %v111_v33 = vmul.f32 %v108_v30, %v66_v23  ;;  %v112_v35 = vmul.f32 %v108_v30, %v73_v24 }
  0x1b   :  { %v113_v36 = vmul.f32 %v108_v30, %v80_v25  ;;  %v114_v37 = vmul.f32 %v108_v30, %v87_v26  ;;  %v115_v38 = vmul.f32 %v108_v30, %v94_v27  ;;  %v116_v39 = vmul.f32 %v108_v30, %v101_v28 }
  0x1c   :  { %v117_v40 = vpack.c.bf16 %v109_v31, %v109_v31  ;;  %v118_v41 = vpack.c.bf16 %v110_v32, %v110_v32  ;;  %v119_v42 = vpack.c.bf16 %v111_v33, %v111_v33  ;;  %v120_v43 = vpack.c.bf16 %v112_v35, %v112_v35 }
  0x1d   :  { %v121_v44 = vpack.c.bf16 %v113_v36, %v113_v36  ;;  %v122_v45 = vpack.c.bf16 %v114_v37, %v114_v37  ;;  %v123_v46 = vpack.c.bf16 %v115_v38, %v115_v38  ;;  %v124_v47 = vpack.c.bf16 %v116_v39, %v116_v39 }
  0x1e   :  { %232 = vmatpush.bf16.msra.mxu0 %v275_v22  ;;  %v153_v34 = vunpack.c.l.b16 %v117_v40  ;;  %v154_v48 = vunpack.c.l.b16 %v118_v41  ;;  %v155_v49 = vunpack.c.l.b16 %v119_v42  ;;  %v156_v50 = vunpack.c.l.b16 %v120_v43 }
  0x1f   :  { %v157_v51 = vunpack.c.l.b16 %v121_v44  ;;  %v158_v52 = vunpack.c.l.b16 %v122_v45  ;;  %v159_v54 = vunpack.c.l.b16 %v123_v46  ;;  %v160_v56 = vunpack.c.l.b16 %v124_v47 }
  0x20   :  { %v162_v53 = vsel %vm161_vm1, %v154_v48, %v153_v34 }
  0x21   :  { %v164_v55 = vsel %vm163_vm2, %v155_v49, %v162_v53 }
  0x22   :  { %v166_v57 = vsel %vm165_vm3, %v156_v50, %v164_v55 }
  0x23   :  { %v168_v58 = vsel %vm167_vm4, %v157_v51, %v166_v57 }
  0x24   :  { %v170_v59 = vsel %vm169_vm5, %v158_v52, %v168_v58 }
  0x25   :  { %v172_v60 = vsel %vm171_vm6, %v159_v54, %v170_v59 }
  0x26   :  { %v174_v61 = vsel %vm173_vm7, %v160_v56, %v172_v60 }
  0x27   :  { %v175_v62 = vpack.c.b16 %v174_v61, %v174_v61 }
  0x29   :  { %233 = vmatmul.bf16.vlgmr.msra.gmra.mxu0 %v175_v62 }
  0xa6   :  { %v234_v0 = vpop.f32.mrf.mxu0 }
  0xa7   :  { %v235_v1 = vadd.f32 %v323_v63, %v234_v0 }
  0xa9   :  { %238 = vst [vmem:[%s413_s3] sm:$0xff] %v235_v1 }
  0xae   :  { %v236_v2 = vpop.f32.mrf.mxu0 }

</bundles_post_ra>
